<compile_context>
chip_gen: v7x
topology: tpu7x:2x2x1
jax: 0.10.0
libtpu: 0.0.40
codegen_flags: <defaults>
</compile_context>

<pallas_src>
import numpy as np
import jax
import jax.numpy as jnp
from jax.experimental import pallas as pl
from jax.experimental.pallas import tpu as pltpu

# ---- model hyper-params (mirror the torch __init__ arithmetic) -------------
NUM_FEATURES = 32
NUM_CLASSES = 10
BATCH = 2

L = NUM_FEATURES
L1 = L - 3 + 1          # conv1 output length  = 30
P1 = L1 // 2            # after first pool     = 15
assert P1 > 2           # -> conv2 exists
L2 = P1 - 3 + 1         # conv2 output length  = 13
assert L2 > 2           # -> second pool used
P2 = L2 // 2            # after second pool    = 6
C1, C2 = 6, 16
FC_IN = C2 * P2         # 96
H1, H2 = 120, 84

# ---- packed-parameter buffer layout (row offsets, 8-aligned; 128 lanes) ----
LANES = 128
TB = 8                                   # batch tile (full sublane group)

R_W1 = 0                                 # 3 rows,  cols [0:C1)      conv1 w
R_B1 = 8                                 # 1 row,   cols [0:C1)      conv1 b
R_W2 = 16                                # C1 rows, cols [0:3*C2)    conv2 w (k-concat on N)
R_B2 = 24                                # 1 row,   cols [0:C2)      conv2 b
R_FC1W = 32                              # FC_IN rows, cols [0:H1)   (rest zero)
R_FC1B = R_FC1W + FC_IN                  # 128
R_FC2W = 136                             # 128 rows, cols [0:H2)     (rows>=H1, cols>=H2 zero)
R_FC2B = R_FC2W + LANES                  # 264
R_FC3W = 272                             # 128 rows, cols [0:NUM_CLASSES) (rest zero)
R_FC3B = R_FC3W + LANES                  # 400
R_TOTAL = 408                            # padded to a multiple of 8


# ---- Pallas kernel: full forward pass on one (TB, L) batch tile ------------
def net_kernel(x_ref, p_ref, out_ref):
    x = x_ref[...]                       # (TB, L)
    tb = x.shape[0]

    # conv1 (1 -> C1 channels, k=3, VALID): 3 shifted VPU MACs + ReLU
    w1 = p_ref[R_W1:R_W1 + 3, :C1]       # (3, C1)
    b1 = p_ref[R_B1:R_B1 + 1, :C1]       # (1, C1)
    h1 = jnp.broadcast_to(b1[None], (tb, L1, C1))
    for k in range(3):
        h1 = h1 + x[:, k:k + L1][:, :, None] * w1[k][None, None, :]
    h1 = jnp.maximum(h1, 0.0)

    # MaxPool1d(kernel=2, stride=2), floor mode
    # (kept as a pair-reshape max: tiny tensor, known-good lowering)
    h1p = jnp.max(h1[:, :2 * P1, :].reshape(tb, P1, 2, C1), axis=2)   # (tb,P1,C1)

    # conv2 (C1 -> C2, k=3, VALID) as ONE MXU matmul:
    #   y[b,p,k*C2+o] = sum_c h1p[b,p,c] * W2[o,c,k]; combine taps with 3 shifted adds.
    w2 = p_ref[R_W2:R_W2 + C1, :3 * C2]  # (C1, 3*C2)
    b2 = p_ref[R_B2:R_B2 + 1, :C2]       # (1, C2)
    y = jnp.dot(h1p.reshape(tb * P1, C1), w2,
                preferred_element_type=jnp.float32).reshape(tb, P1, 3 * C2)
    h2 = (y[:, 0:L2, 0:C2]
          + y[:, 1:1 + L2, C2:2 * C2]
          + y[:, 2:2 + L2, 2 * C2:3 * C2]
          + b2[None])
    h2 = jnp.maximum(h2, 0.0)            # (tb, L2, C2)

    # second MaxPool1d(kernel=2, stride=2), floor mode (drops the odd tail)
    h2p = jnp.max(h2[:, :2 * P2, :].reshape(tb, P2, 2, C2), axis=2)   # (tb,P2,C2)

    # flatten (length-major, channel-minor); fc1 rows pre-permuted host-side
    flat = h2p.reshape(tb, P2 * C2)      # (tb, FC_IN)

    # FC stack — weights/biases zero-padded to 128 lanes, so every dot is
    # lane-dense and the final store is one unmasked (TB, 128) block write.
    fc1w = p_ref[R_FC1W:R_FC1W + FC_IN, :]
    fc1b = p_ref[R_FC1B:R_FC1B + 1, :]
    z1 = jnp.maximum(
        jnp.dot(flat, fc1w, preferred_element_type=jnp.float32) + fc1b, 0.0)

    fc2w = p_ref[R_FC2W:R_FC2W + LANES, :]
    fc2b = p_ref[R_FC2B:R_FC2B + 1, :]
    z2 = jnp.maximum(
        jnp.dot(z1, fc2w, preferred_element_type=jnp.float32) + fc2b, 0.0)

    fc3w = p_ref[R_FC3W:R_FC3W + LANES, :]
    fc3b = p_ref[R_FC3B:R_FC3B + 1, :]
    out_ref[...] = (
        jnp.dot(z2, fc3w, preferred_element_type=jnp.float32) + fc3b)


@jax.jit
def net_forward(x, packed):
    b = x.shape[0]
    bp = ((b + TB - 1) // TB) * TB               # pad batch to the tile size
    if bp != b:
        x = jnp.pad(x, ((0, bp - b), (0, 0)))

    flops = 2 * bp * (L1 * C1 * 3 + P1 * C1 * 3 * C2
                      + FC_IN * H1 + H1 * H2 + H2 * NUM_CLASSES)
    bytes_accessed = (bp * L + R_TOTAL * LANES + bp * LANES) * 4

    out = pl.pallas_call(
        net_kernel,
        out_shape=jax.ShapeDtypeStruct((bp, LANES), jnp.float32),
        grid=(bp // TB,),
        in_specs=[pl.BlockSpec((TB, L), lambda i: (i, 0)),          # batch tile
                  pl.BlockSpec((R_TOTAL, LANES), lambda i: (0, 0))],  # packed params (resident)
        out_specs=pl.BlockSpec((TB, LANES), lambda i: (i, 0)),
        compiler_params=pltpu.CompilerParams(
            dimension_semantics=("parallel",)),
        cost_estimate=pl.CostEstimate(flops=flops, transcendentals=0,
                                      bytes_accessed=bytes_accessed),
    )(x, packed)
    return out[:b, :NUM_CLASSES]


# ---- deterministic parameter init (PyTorch default U(-1/sqrt(fan_in), ..)) --
def init_torch_params(key):
    ks = jax.random.split(key, 10)

    def u(k, shape, fan_in):
        bound = 1.0 / np.sqrt(fan_in)
        return jax.random.uniform(k, shape, jnp.float32, -bound, bound)

    w1_t = u(ks[0], (C1, 1, 3), 1 * 3)            # (out, in, k)
    b1_t = u(ks[1], (C1,), 1 * 3)
    w2_t = u(ks[2], (C2, C1, 3), C1 * 3)
    b2_t = u(ks[3], (C2,), C1 * 3)
    fc1w_t = u(ks[4], (H1, FC_IN), FC_IN)         # (out, in)
    fc1b_t = u(ks[5], (H1,), FC_IN)
    fc2w_t = u(ks[6], (H2, H1), H1)
    fc2b_t = u(ks[7], (H2,), H1)
    fc3w_t = u(ks[8], (NUM_CLASSES, H2), H2)
    fc3b_t = u(ks[9], (NUM_CLASSES,), H2)
    return (w1_t, b1_t, w2_t, b2_t, fc1w_t, fc1b_t,
            fc2w_t, fc2b_t, fc3w_t, fc3b_t)


def pack_params(tp):
    """Pack all torch-layout params into one zero-padded (R_TOTAL, 128) buffer."""
    (w1_t, b1_t, w2_t, b2_t, fc1w_t, fc1b_t,
     fc2w_t, fc2b_t, fc3w_t, fc3b_t) = (np.asarray(p, np.float32) for p in tp)

    buf = np.zeros((R_TOTAL, LANES), np.float32)
    buf[R_W1:R_W1 + 3, :C1] = w1_t[:, 0, :].T                       # (3, C1)
    buf[R_B1, :C1] = b1_t
    # conv2: w2cat[c, k*C2 + o] = w2_t[o, c, k]
    buf[R_W2:R_W2 + C1, :3 * C2] = np.transpose(w2_t, (1, 2, 0)).reshape(C1, 3 * C2)
    buf[R_B2, :C2] = b2_t
    # fc1: torch flat index = c*P2 + t ; kernel flat index = t*C2 + c
    perm = np.array([c * P2 + t for t in range(P2) for c in range(C2)], np.int32)
    buf[R_FC1W:R_FC1W + FC_IN, :H1] = fc1w_t.T[perm, :]
    buf[R_FC1B, :H1] = fc1b_t
    buf[R_FC2W:R_FC2W + H1, :H2] = fc2w_t.T
    buf[R_FC2B, :H2] = fc2b_t
    buf[R_FC3W:R_FC3W + H2, :NUM_CLASSES] = fc3w_t.T
    buf[R_FC3B, :NUM_CLASSES] = fc3b_t
    return jnp.asarray(buf)


# ---- pure-JAX reference (torch semantics, NCW layout) -----------------------
def reference(x, tp):
    (w1_t, b1_t, w2_t, b2_t, fc1w_t, fc1b_t, fc2w_t, fc2b_t, fc3w_t, fc3b_t) = tp
    B = x.shape[0]
    xc = x[:, None, :]                                           # (B, 1, L)
    h = jax.lax.conv_general_dilated(
        xc, w1_t, (1,), 'VALID',
        dimension_numbers=('NCH', 'OIH', 'NCH')) + b1_t[None, :, None]
    h = jnp.maximum(h, 0.0)
    h = jnp.max(h[:, :, :2 * P1].reshape(B, C1, P1, 2), axis=-1)
    h = jax.lax.conv_general_dilated(
        h, w2_t, (1,), 'VALID',
        dimension_numbers=('NCH', 'OIH', 'NCH')) + b2_t[None, :, None]
    h = jnp.maximum(h, 0.0)
    h = jnp.max(h[:, :, :2 * P2].reshape(B, C2, P2, 2), axis=-1)
    f = h.reshape(B, -1)
    z1 = jnp.maximum(f @ fc1w_t.T + fc1b_t, 0.0)
    z2 = jnp.maximum(z1 @ fc2w_t.T + fc2b_t, 0.0)
    return z2 @ fc3w_t.T + fc3b_t


if __name__ == "__main__":
    key = jax.random.PRNGKey(0)
    pkey, xkey = jax.random.split(key)
    torch_params = init_torch_params(pkey)
    packed = pack_params(torch_params)
    x = jax.random.normal(xkey, (BATCH, NUM_FEATURES), dtype=jnp.float32)

    out = net_forward(x, packed)
    out = jax.block_until_ready(out)
    assert out.shape == (BATCH, NUM_CLASSES)

    ref = reference(x, torch_params)
    np.testing.assert_allclose(np.asarray(out), np.asarray(ref),
                               rtol=1e-4, atol=1e-4)
    print("KERNEL_OK")
</pallas_src>

<mosaic_0001>
module attributes {stable_mosaic.version = 11 : i64} {
  func.func @net_kernel(%arg0: i32, %arg1: memref<8x32xf32, #tpu.memory_space<vmem>>, %arg2: memref<408x128xf32, #tpu.memory_space<vmem>>, %arg3: memref<8x128xf32, #tpu.memory_space<vmem>>) attributes {dimension_semantics = [#tpu.dimension_semantics<parallel>], iteration_bounds = array<i64: 1>, scalar_prefetch = 0 : i64, scratch_operands = 0 : i64, tpu.core_type = #tpu.core_type<tc>, window_params = [{transform_indices = @transform_0, window_bounds = array<i64: 8, 32>}, {pipeline_mode = #tpu.pipeline_mode<synchronous>, transform_indices = @transform_1, window_bounds = array<i64: 408, 128>}, {transform_indices = @transform_2, window_bounds = array<i64: 8, 128>}]} {
    %c0 = arith.constant 0 : index
    %c0_0 = arith.constant 0 : index
    %0 = vector.load %arg1[%c0, %c0_0] : memref<8x32xf32, #tpu.memory_space<vmem>>, vector<8x32xf32>
    %c0_1 = arith.constant 0 : index
    %c0_2 = arith.constant 0 : index
    %1 = vector.load %arg2[%c0_1, %c0_2] : memref<408x128xf32, #tpu.memory_space<vmem>>, vector<3x6xf32>
    %c8 = arith.constant 8 : index
    %c0_3 = arith.constant 0 : index
    %2 = vector.load %arg2[%c8, %c0_3] : memref<408x128xf32, #tpu.memory_space<vmem>>, vector<1x6xf32>
    %3 = vector.shape_cast %2 : vector<1x6xf32> to vector<1x1x6xf32>
    %4 = vector.shape_cast %3 : vector<1x1x6xf32> to vector<1x1x6xf32>
    %5 = vector.broadcast %4 : vector<1x1x6xf32> to vector<8x30x6xf32>
    %6 = vector.extract_strided_slice %0 {offsets = [0, 0], sizes = [8, 30], strides = [1, 1]} : vector<8x32xf32> to vector<8x30xf32>
    %7 = vector.shape_cast %6 : vector<8x30xf32> to vector<8x30x1xf32>
    %8 = vector.extract_strided_slice %1 {offsets = [0, 0], sizes = [1, 6], strides = [1, 1]} : vector<3x6xf32> to vector<1x6xf32>
    %9 = vector.shape_cast %8 : vector<1x6xf32> to vector<6xf32>
    %10 = vector.shape_cast %9 : vector<6xf32> to vector<1x1x6xf32>
    %11 = vector.broadcast %7 : vector<8x30x1xf32> to vector<8x30x6xf32>
    %12 = vector.broadcast %10 : vector<1x1x6xf32> to vector<8x30x6xf32>
    %13 = arith.mulf %11, %12 : vector<8x30x6xf32>
    %14 = arith.addf %5, %13 : vector<8x30x6xf32>
    %15 = vector.extract_strided_slice %0 {offsets = [0, 1], sizes = [8, 30], strides = [1, 1]} : vector<8x32xf32> to vector<8x30xf32>
    %16 = vector.shape_cast %15 : vector<8x30xf32> to vector<8x30x1xf32>
    %17 = vector.extract_strided_slice %1 {offsets = [1, 0], sizes = [1, 6], strides = [1, 1]} : vector<3x6xf32> to vector<1x6xf32>
    %18 = vector.shape_cast %17 : vector<1x6xf32> to vector<6xf32>
    %19 = vector.shape_cast %18 : vector<6xf32> to vector<1x1x6xf32>
    %20 = vector.broadcast %16 : vector<8x30x1xf32> to vector<8x30x6xf32>
    %21 = vector.broadcast %19 : vector<1x1x6xf32> to vector<8x30x6xf32>
    %22 = arith.mulf %20, %21 : vector<8x30x6xf32>
    %23 = arith.addf %14, %22 : vector<8x30x6xf32>
    %24 = vector.extract_strided_slice %0 {offsets = [0, 2], sizes = [8, 30], strides = [1, 1]} : vector<8x32xf32> to vector<8x30xf32>
    %25 = vector.shape_cast %24 : vector<8x30xf32> to vector<8x30x1xf32>
    %26 = vector.extract_strided_slice %1 {offsets = [2, 0], sizes = [1, 6], strides = [1, 1]} : vector<3x6xf32> to vector<1x6xf32>
    %27 = vector.shape_cast %26 : vector<1x6xf32> to vector<6xf32>
    %28 = vector.shape_cast %27 : vector<6xf32> to vector<1x1x6xf32>
    %29 = vector.broadcast %25 : vector<8x30x1xf32> to vector<8x30x6xf32>
    %30 = vector.broadcast %28 : vector<1x1x6xf32> to vector<8x30x6xf32>
    %31 = arith.mulf %29, %30 : vector<8x30x6xf32>
    %32 = arith.addf %23, %31 : vector<8x30x6xf32>
    %cst = arith.constant 0.000000e+00 : f32
    %33 = vector.broadcast %cst : f32 to vector<8x30x6xf32>
    %34 = arith.maximumf %32, %33 : vector<8x30x6xf32>
    %35 = vector.shape_cast %34 : vector<8x30x6xf32> to vector<8x15x2x6xf32>
    %cst_4 = arith.constant dense<0xFF800000> : vector<8x15x6xf32>
    %36 = vector.multi_reduction <maximumf>, %35, %cst_4 [2] : vector<8x15x2x6xf32> to vector<8x15x6xf32>
    %c16 = arith.constant 16 : index
    %c0_5 = arith.constant 0 : index
    %37 = vector.load %arg2[%c16, %c0_5] : memref<408x128xf32, #tpu.memory_space<vmem>>, vector<6x48xf32>
    %c24 = arith.constant 24 : index
    %c0_6 = arith.constant 0 : index
    %38 = vector.load %arg2[%c24, %c0_6] : memref<408x128xf32, #tpu.memory_space<vmem>>, vector<1x16xf32>
    %39 = vector.shape_cast %36 : vector<8x15x6xf32> to vector<120x6xf32>
    %cst_7 = arith.constant dense<0.000000e+00> : vector<120x48xf32>
    %40 = tpu.matmul %39, %37, %cst_7 {dimension_numbers = #tpu.dot_dimension_numbers<[1], [0], [0], [1], [0, 0, 1, 1], [], []>} : vector<120x6xf32>, vector<6x48xf32>, vector<120x48xf32> -> vector<120x48xf32>
    %41 = vector.shape_cast %40 : vector<120x48xf32> to vector<8x15x48xf32>
    %42 = vector.extract_strided_slice %41 {offsets = [0, 0, 0], sizes = [8, 13, 16], strides = [1, 1, 1]} : vector<8x15x48xf32> to vector<8x13x16xf32>
    %43 = vector.extract_strided_slice %41 {offsets = [0, 1, 16], sizes = [8, 13, 16], strides = [1, 1, 1]} : vector<8x15x48xf32> to vector<8x13x16xf32>
    %44 = arith.addf %42, %43 : vector<8x13x16xf32>
    %45 = vector.extract_strided_slice %41 {offsets = [0, 2, 32], sizes = [8, 13, 16], strides = [1, 1, 1]} : vector<8x15x48xf32> to vector<8x13x16xf32>
    %46 = arith.addf %44, %45 : vector<8x13x16xf32>
    %47 = vector.shape_cast %38 : vector<1x16xf32> to vector<1x1x16xf32>
    %48 = vector.broadcast %47 : vector<1x1x16xf32> to vector<8x13x16xf32>
    %49 = arith.addf %46, %48 : vector<8x13x16xf32>
    %cst_8 = arith.constant 0.000000e+00 : f32
    %50 = vector.broadcast %cst_8 : f32 to vector<8x13x16xf32>
    %51 = arith.maximumf %49, %50 : vector<8x13x16xf32>
    %52 = vector.extract_strided_slice %51 {offsets = [0, 0, 0], sizes = [8, 12, 16], strides = [1, 1, 1]} : vector<8x13x16xf32> to vector<8x12x16xf32>
    %53 = vector.shape_cast %52 : vector<8x12x16xf32> to vector<8x6x2x16xf32>
    %cst_9 = arith.constant dense<0xFF800000> : vector<8x6x16xf32>
    %54 = vector.multi_reduction <maximumf>, %53, %cst_9 [2] : vector<8x6x2x16xf32> to vector<8x6x16xf32>
    %55 = vector.shape_cast %54 : vector<8x6x16xf32> to vector<8x96xf32>
    %c32 = arith.constant 32 : index
    %c0_10 = arith.constant 0 : index
    %56 = vector.load %arg2[%c32, %c0_10] : memref<408x128xf32, #tpu.memory_space<vmem>>, vector<96x128xf32>
    %c128 = arith.constant 128 : index
    %c0_11 = arith.constant 0 : index
    %57 = vector.load %arg2[%c128, %c0_11] : memref<408x128xf32, #tpu.memory_space<vmem>>, vector<1x128xf32>
    %cst_12 = arith.constant dense<0.000000e+00> : vector<8x128xf32>
    %58 = tpu.matmul %55, %56, %cst_12 {dimension_numbers = #tpu.dot_dimension_numbers<[1], [0], [0], [1], [0, 0, 1, 1], [], []>} : vector<8x96xf32>, vector<96x128xf32>, vector<8x128xf32> -> vector<8x128xf32>
    %59 = vector.broadcast %57 : vector<1x128xf32> to vector<8x128xf32>
    %60 = arith.addf %58, %59 : vector<8x128xf32>
    %cst_13 = arith.constant 0.000000e+00 : f32
    %61 = vector.broadcast %cst_13 : f32 to vector<8x128xf32>
    %62 = arith.maximumf %60, %61 : vector<8x128xf32>
    %c136 = arith.constant 136 : index
    %c0_14 = arith.constant 0 : index
    %63 = vector.load %arg2[%c136, %c0_14] : memref<408x128xf32, #tpu.memory_space<vmem>>, vector<128x128xf32>
    %c264 = arith.constant 264 : index
    %c0_15 = arith.constant 0 : index
    %64 = vector.load %arg2[%c264, %c0_15] : memref<408x128xf32, #tpu.memory_space<vmem>>, vector<1x128xf32>
    %cst_16 = arith.constant dense<0.000000e+00> : vector<8x128xf32>
    %65 = tpu.matmul %62, %63, %cst_16 {dimension_numbers = #tpu.dot_dimension_numbers<[1], [0], [0], [1], [0, 0, 1, 1], [], []>} : vector<8x128xf32>, vector<128x128xf32>, vector<8x128xf32> -> vector<8x128xf32>
    %66 = vector.broadcast %64 : vector<1x128xf32> to vector<8x128xf32>
    %67 = arith.addf %65, %66 : vector<8x128xf32>
    %cst_17 = arith.constant 0.000000e+00 : f32
    %68 = vector.broadcast %cst_17 : f32 to vector<8x128xf32>
    %69 = arith.maximumf %67, %68 : vector<8x128xf32>
    %c272 = arith.constant 272 : index
    %c0_18 = arith.constant 0 : index
    %70 = vector.load %arg2[%c272, %c0_18] : memref<408x128xf32, #tpu.memory_space<vmem>>, vector<128x128xf32>
    %c400 = arith.constant 400 : index
    %c0_19 = arith.constant 0 : index
    %71 = vector.load %arg2[%c400, %c0_19] : memref<408x128xf32, #tpu.memory_space<vmem>>, vector<1x128xf32>
    %cst_20 = arith.constant dense<0.000000e+00> : vector<8x128xf32>
    %72 = tpu.matmul %69, %70, %cst_20 {dimension_numbers = #tpu.dot_dimension_numbers<[1], [0], [0], [1], [0, 0, 1, 1], [], []>} : vector<8x128xf32>, vector<128x128xf32>, vector<8x128xf32> -> vector<8x128xf32>
    %73 = vector.broadcast %71 : vector<1x128xf32> to vector<8x128xf32>
    %74 = arith.addf %72, %73 : vector<8x128xf32>
    %c0_21 = arith.constant 0 : index
    %c0_22 = arith.constant 0 : index
    %75 = vector.load %arg3[%c0_21, %c0_22] : memref<8x128xf32, #tpu.memory_space<vmem>>, vector<8x128xf32>
    tpu.vector_store %arg3[%c0_21, %c0_22], %74 {strides = array<i32>} : memref<8x128xf32, #tpu.memory_space<vmem>>, vector<8x128xf32>,
    return
  }
  func.func @transform_0(%arg0: i32) -> (i32, i32) {
    %c0_i32 = arith.constant 0 : i32
    %c0_i32_0 = arith.constant 0 : i32
    return %arg0, %c0_i32 : i32, i32
  }
  func.func @transform_1(%arg0: i32) -> (i32, i32) {
    %c0_i32 = arith.constant 0 : i32
    %c0_i32_0 = arith.constant 0 : i32
    %c0_i32_1 = arith.constant 0 : i32
    return %c0_i32, %c0_i32_0 : i32, i32
  }
  func.func @transform_2(%arg0: i32) -> (i32, i32) {
    %c0_i32 = arith.constant 0 : i32
    %c0_i32_0 = arith.constant 0 : i32
    return %arg0, %c0_i32 : i32, i32
  }
}

</mosaic_0001>

<bundles_post_ra>
// kernel: net_forward.1
= control target key start
LH: loop header
LB: loop body
LE: loop exit
PB: predicated region body
PF: predicated region fallthrough
CT: control target
= control target key end

     0   :  { %7 = vsyncpa [#allocation3], 0  ;;  %s6541_s9 = smov [#allocation2]   ;;  %s9666_s0 = inlined_call_operand.vmem [shape: f32[8,32], index: 0, kind: input, shape index: {}]   ;;  %s9667_s1 = inlined_call_operand.hbm [shape: f32[408,128], index: 1, kind: input, shape index: {}]   ;;  %s9668_s2 = inlined_call_operand.vmem [shape: f32[8,128], index: 2, kind: output, shape index: {}]  }
   0x1   :  { %s15_s10 = sshll.u32 %s6541_s9, 4  ;;  %s6517_s13 = scalar_lea.hbm %s9667_s1, 6528  ;;  %s16_s10 = int_to_ptr.vmem [resolvable:$true] %s15_s10 }
   0x2   :  { %p6518_p0 = scmp.ne.s32.totalorder %s9667_s1, %s6517_s13  ;;  %p6521_p1 = scmp.lt.u32.totalorder %s6517_s13, %s9667_s1 }
   0x4   :  { %p6523_p2 = pnand %p6521_p1, %p6518_p0 }
   0x6   :  { %6526 = shalt.err (!%p6523_p2)
}
   0x7   :  { %s6527_s18 = scalar_lea.vmem %s16_s10, 6528  ;;  %p6532_p4 = scmp.lt.s32.totalorder %s16_s10, %s16_s10 }
   0x8   :  { %p6528_p3 = scmp.ne.s32.totalorder %s16_s10, %s6527_s18  ;;  %p6533_p5 = scmp.lt.s32.totalorder %s6527_s18, %s6527_s18 }
   0xa   :  { %p6534_p6 = por %p6533_p5, %p6532_p4 }
   0xc   :  { %p6535_p7 = pnand %p6534_p6, %p6528_p3 }
   0xe   :  { %6538 = shalt.err (!%p6535_p7)
}
   0xf   :  { %s6542_s19 = smov 128   ;;  %s6543_s20 = smov 8  }
  0x10   :  { %21 = dma.hbm_to_vmem [thread:$0]  %s9667_s1, 6528, %s16_s10, [#allocation3], %s6542_s19, %s6542_s19, %s6543_s20  }
  0x11   :  { %6539 = dma.done.wait [#allocation3], 6528  }
  0x12   :  { %6540 = vsyncadd [#allocation3], 4294960768  ;;  %v32_v0 = vlaneseq  ;;  %v6590_v3 = vld [vmem:[%s9666_s0] sm:$0xff]  ;;  %v9669_v9 = vmov 0.0   ;;  %v2205_v10 = vld [vmem:[#allocation2 + $0x10] sm:$0x3f] }
  0x13   :  { %6289 = vmatprep.subr.mxu0 %v9669_v9  ;;  %vm2470_vm0 = vcmask 1045504   ;;  %vm6545_vm1 = vmmov 0   ;;  %v26_v16 = vld [vmem:[#allocation2] sm:$0x7]  ;;  %v6546_v22 = vmov 1983009808  }
  0x14   :  { %v6584_v1 = vshrl.u32 %v32_v0, 7  ;;  %6290 = vmatpush3.msk.msra.mxu0 %vm2470_vm0, %v2205_v10  ;;  %6291 = vmatprep.mubr.msk.f32.mxu0 %vm6545_vm1, %v9669_v9  ;;  %v710_v23 = vunpack.c.l.s4 %v6546_v22  ;;  %v6627_v25 = vld [vmem:[#allocation2 + $0x8] ss:$0 sm:$0xff]  ;;  %v6547_v31 = vmov 1966171168   ;;  %vm1364_vm2 = vcmask 41984  }
  0x15   :  { %6360 = vmatprep.mubr.msk.f32.mxu1 %vm6545_vm1, %v9669_v9  ;;  %v2631_v32 = vunpack.c.l.s4 %v6547_v31  ;;  %vm2327_vm3 = vcmask 1041409   ;;  %vm2329_vm4 = vcmask 1042434   ;;  %vm2331_vm5 = vcmask 1043459   ;;  %s6548_s0 = smov 112   ;;  %s6549_s1 = smov 96  }
  0x16   :  { %9790 = vst [vmem:[#allocation5_spill] sm:$0xff] %v6584_v1  ;;  %v34_v2 = vsub.s32 0, %v6584_v1  ;;  %v53_v5 = vsub.s32 1, %v6584_v1  ;;  %v72_v7 = vsub.s32 2, %v6584_v1  ;;  %v91_v11 = vsub.s32 3, %v6584_v1  ;;  %s6552_s25 = smov 32  }
  0x17   :  { %v110_v13 = vsub.s32 4, %v6584_v1  ;;  %v129_v15 = vsub.s32 5, %v6584_v1  ;;  %v711_v30 = vunpack.c.0.s8 %v710_v23  ;;  %v2632_v40 = vunpack.c.0.s8 %v2631_v32  ;;  %s6553_s26 = smov 16   ;;  %s6554_s27 = smov 64  }
  0x18   :  { %v35_v4 = vrot.slane %v6590_v3, %v34_v2  ;;  %v54_v6 = vrot.slane %v6590_v3, %v53_v5  ;;  %v73_v8 = vrot.slane %v6590_v3, %v72_v7  ;;  %v92_v12 = vrot.slane %v6590_v3, %v91_v11  ;;  %s6555_s28 = smov 48   ;;  %s6556_s29 = smov 80  }
  0x19   :  { %v111_v14 = vrot.slane %v6590_v3, %v110_v13  ;;  %v6614_v17 = vrot.slane %v6590_v3, %v129_v15  ;;  %v6618_v18 = vrot.slane %v26_v16, %v34_v2  ;;  %v6622_v21 = vrot.slane %v26_v16, %v53_v5 }
  0x1a   :  { %41 = vbcast.lane.b32.xlu1 %v35_v4, 264  ;;  %37 = vbcast.lane.b32.xlu0 %v35_v4, 256  ;;  %v6631_v28 = vrot.slane %v26_v16, %v72_v7  ;;  %v6640_v39 = vsub.s32 %v711_v30, %v6584_v1  ;;  %v148_v46 = vsub.s32 6, %v6584_v1  ;;  %v167_v47 = vsub.s32 7, %v6584_v1 }
  0x1b   :  { %v6652_v52 = vsub.s32 %v2632_v40, %v6584_v1  ;;  %vm2333_vm6 = vcmask 1044484   ;;  %vm2335_vm7 = vcmask 1045509   ;;  %vm2337_vm8 = vcmask 1046534  }
  0x1c   :  { %9791 = vst [vmem:[#allocation6_spill] sm:$0xff] %v6640_v39  ;;  %v6657_v59 = vrot.slane %v6590_v3, %v148_v46  ;;  %v6660_v60 = vrot.slane %v6590_v3, %v167_v47  ;;  %vm2339_vm9 = vcmask 1047559   ;;  %vm2439_vm10 = vcmask 48128  }
  0x1d   :  { %9792 = vst [vmem:[#allocation7_spill] sm:$0xff] %v6652_v52  ;;  %vm5342_vm11 = vcmask 123904   ;;  %vm5913_vm12 = vcmask 130048   ;;  %vm5915_vm13 = vcmask 261120   ;;  %vm5917_vm14 = vcmask 392192  }
  0x1e   :  { %45 = vbcast.lane.b32.xlu1 %v35_v4, 272  ;;  %254 = vbcast.lane.b32.xlu0 %v35_v4, 257  ;;  %vm5919_vm15 = vcmask 523264   ;;  %vm5921_vm0 = vcmask 654336  }
  0x22   :  { %258 = vbcast.lane.b32.xlu1 %v35_v4, 265  ;;  %450 = vbcast.lane.b32.xlu0 %v35_v4, 258 }
  0x26   :  { %56 = vbcast.lane.b32.xlu1 %v54_v6, 256  ;;  %262 = vbcast.lane.b32.xlu0 %v35_v4, 273 }
  0x2a   :  { %454 = vbcast.lane.b32.xlu1 %v35_v4, 266  ;;  %49 = vbcast.lane.b32.xlu0 %v35_v4, 280 }
  0x2e   :  { %270 = vbcast.lane.b32.xlu1 %v54_v6, 257  ;;  %458 = vbcast.lane.b32.xlu0 %v35_v4, 274 }
  0x32   :  { %60 = vbcast.lane.b32.xlu1 %v54_v6, 264  ;;  %266 = vbcast.lane.b32.xlu0 %v35_v4, 281 }
  0x36   :  { %466 = vbcast.lane.b32.xlu1 %v54_v6, 258  ;;  %64 = vbcast.lane.b32.xlu0 %v54_v6, 272 }
  0x3a   :  { %274 = vbcast.lane.b32.xlu1 %v54_v6, 265  ;;  %462 = vbcast.lane.b32.xlu0 %v35_v4, 282 }
  0x3e   :  { %75 = vbcast.lane.b32.xlu1 %v73_v8, 256  ;;  %278 = vbcast.lane.b32.xlu0 %v54_v6, 273 }
  0x42   :  { %470 = vbcast.lane.b32.xlu1 %v54_v6, 266  ;;  %68 = vbcast.lane.b32.xlu0 %v54_v6, 280 }
  0x46   :  { %286 = vbcast.lane.b32.xlu1 %v73_v8, 257  ;;  %474 = vbcast.lane.b32.xlu0 %v54_v6, 274 }
  0x4a   :  { %79 = vbcast.lane.b32.xlu1 %v73_v8, 264  ;;  %282 = vbcast.lane.b32.xlu0 %v54_v6, 281 }
  0x4e   :  { %482 = vbcast.lane.b32.xlu1 %v73_v8, 258  ;;  %83 = vbcast.lane.b32.xlu0 %v73_v8, 272 }
  0x52   :  { %290 = vbcast.lane.b32.xlu1 %v73_v8, 265  ;;  %478 = vbcast.lane.b32.xlu0 %v54_v6, 282 }
  0x56   :  { %87 = vbcast.lane.b32.xlu1 %v73_v8, 280  ;;  %294 = vbcast.lane.b32.xlu0 %v73_v8, 273 }
  0x5a   :  { %486 = vbcast.lane.b32.xlu1 %v73_v8, 266  ;;  %94 = vbcast.lane.b32.xlu0 %v92_v12, 256 }
  0x5e   :  { %298 = vbcast.lane.b32.xlu1 %v73_v8, 281  ;;  %490 = vbcast.lane.b32.xlu0 %v73_v8, 274 }
  0x62   :  { %98 = vbcast.lane.b32.xlu1 %v92_v12, 264  ;;  %302 = vbcast.lane.b32.xlu0 %v92_v12, 257 }
  0x66   :  { %494 = vbcast.lane.b32.xlu1 %v73_v8, 282  ;;  %102 = vbcast.lane.b32.xlu0 %v92_v12, 272 }
  0x6a   :  { %498 = vbcast.lane.b32.xlu0 %v92_v12, 258  ;;  %306 = vbcast.lane.b32.xlu1 %v92_v12, 265 }
  0x6e   :  { %310 = vbcast.lane.b32.xlu0 %v92_v12, 273  ;;  %106 = vbcast.lane.b32.xlu1 %v92_v12, 280 }
  0x72   :  { %502 = vbcast.lane.b32.xlu0 %v92_v12, 266  ;;  %506 = vbcast.lane.b32.xlu1 %v92_v12, 274 }
  0x76   :  { %314 = vbcast.lane.b32.xlu0 %v92_v12, 281  ;;  %113 = vbcast.lane.b32.xlu1 %v111_v14, 256 }
  0x7a   :  { %117 = vbcast.lane.b32.xlu0 %v111_v14, 264  ;;  %510 = vbcast.lane.b32.xlu1 %v92_v12, 282 }
  0x7e   :  { %318 = vbcast.lane.b32.xlu0 %v111_v14, 257  ;;  %322 = vbcast.lane.b32.xlu1 %v111_v14, 265 }
  0x82   :  { %121 = vbcast.lane.b32.xlu0 %v111_v14, 272  ;;  %125 = vbcast.lane.b32.xlu1 %v111_v14, 280 }
  0x86   :  { %514 = vbcast.lane.b32.xlu0 %v111_v14, 258  ;;  %518 = vbcast.lane.b32.xlu1 %v111_v14, 266 }
  0x8a   :  { %326 = vbcast.lane.b32.xlu0 %v111_v14, 273  ;;  %330 = vbcast.lane.b32.xlu1 %v111_v14, 281 }
  0x8c   :  { %v42_v19 = vpop.permute.xlu1 %41  ;;  %v38_v20 = vpop.permute.xlu0 %37 }
  0x8d   :  { %v188_v24 = vmul.f32 %v6618_v18, %v38_v20  ;;  %v189_v38 = vmul.f32 %v6618_v18, %v42_v19 }
  0x8e   :  { %132 = vbcast.lane.b32.xlu0 %v6614_v17, 256  ;;  %136 = vbcast.lane.b32.xlu1 %v6614_v17, 264 }
  0x8f   :  { %v220_v33 = vadd.f32 %v6627_v25, %v188_v24  ;;  %v221_v49 = vadd.f32 %v6627_v25, %v189_v38 }
  0x90   :  { %v46_v26 = vpop.permute.xlu1 %45  ;;  %v255_v27 = vpop.permute.xlu0 %254 }
  0x91   :  { %v384_v29 = vmul.f32 %v6622_v21, %v255_v27  ;;  %v190_v42 = vmul.f32 %v6618_v18, %v46_v26 }
  0x92   :  { %522 = vbcast.lane.b32.xlu0 %v111_v14, 274  ;;  %526 = vbcast.lane.b32.xlu1 %v111_v14, 282 }
  0x93   :  { %v416_v36 = vadd.f32 %v384_v29, %v220_v33  ;;  %v222_v55 = vadd.f32 %v6627_v25, %v190_v42 }
  0x94   :  { %v259_v34 = vpop.permute.xlu1 %258  ;;  %v451_v35 = vpop.permute.xlu0 %450 }
  0x95   :  { %v580_v37 = vmul.f32 %v6631_v28, %v451_v35  ;;  %v385_v43 = vmul.f32 %v6622_v21, %v259_v34 }
  0x96   :  { %338 = vbcast.lane.b32.xlu1 %v6614_v17, 265  ;;  %334 = vbcast.lane.b32.xlu0 %v6614_v17, 257 }
  0x97   :  { %v612_v41 = vadd.f32 %v580_v37, %v416_v36  ;;  %v417_v56 = vadd.f32 %v385_v43, %v221_v49 }
  0x98   :  { %v57_v44 = vpop.permute.xlu1 %56  ;;  %v263_v45 = vpop.permute.xlu0 %262 }
  0x99   :  { %v644_v48 = vmax.f32 %v612_v41, 0.0  ;;  %v192_v50 = vmul.f32 %v6618_v18, %v57_v44  ;;  %v386_v51 = vmul.f32 %v6622_v21, %v263_v45 }
  0x9a   :  { %530 = vbcast.lane.b32.xlu1 %v6614_v17, 258  ;;  %140 = vbcast.lane.b32.xlu0 %v6614_v17, 272 }
  0x9b   :  { %v708_v53 = vcombine.high %v644_v48, %v644_v48  ;;  %v715_v54 = vrot.slane %v644_v48, %v6640_v39  ;;  %v224_v4 = vadd.f32 %v6627_v25, %v192_v50  ;;  %v418_v5 = vadd.f32 %v386_v51, %v222_v55 }
  0x9c   :  { %v455_v57 = vpop.permute.xlu1 %454  ;;  %v50_v58 = vpop.permute.xlu0 %49 }
  0x9d   :  { %v722_v61 = vrot.slane %v708_v53, %v6640_v39  ;;  %v723_v62 = vcombine.high %v715_v54, %v715_v54  ;;  %v1365_v63 = vsel %vm1364_vm2, %v715_v54, -inf  ;;  %v581_v0 = vmul.f32 %v6631_v28, %v455_v57 }
  0x9e   :  { %v1366_v2 = vrot.slane %v1365_v63, 4  ;;  %v191_v6 = vmul.f32 %v6618_v18, %v50_v58  ;;  %144 = vbcast.lane.b32.xlu1 %v6614_v17, 280  ;;  %534 = vbcast.lane.b32.xlu0 %v6614_v17, 266 }
  0x9f   :  { %v724_v7 = vcombine.high %v722_v61, %v722_v61  ;;  %v1372_v3 = vsel %vm1364_vm2, %v723_v62, -inf  ;;  %v1379_v8 = vsel %vm1364_vm2, %v722_v61, -inf  ;;  %v613_v10 = vadd.f32 %v581_v0, %v417_v56 }
  0xa0   :  { %v1367_v11 = vmax.f32 %v1365_v63, %v1366_v2  ;;  %v1373_v12 = vrot.slane %v1372_v3, 4  ;;  %v1380_v13 = vrot.slane %v1379_v8, 4  ;;  %v6672_v14 = vadd.f32 %v6627_v25, %v191_v6  ;;  %v271_v15 = vpop.permute.xlu1 %270  ;;  %v459_v16 = vpop.permute.xlu0 %458 }
  0xa1   :  { %v1386_v19 = vsel %vm1364_vm2, %v724_v7, -inf  ;;  %v645_v20 = vmax.f32 %v613_v10, 0.0  ;;  %v388_v22 = vmul.f32 %v6622_v21, %v271_v15  ;;  %v582_v23 = vmul.f32 %v6631_v28, %v459_v16 }
  0xa2   :  { %v1368_v24 = vrot.slane %v1367_v11, 2  ;;  %v1374_v26 = vmax.f32 %v1372_v3, %v1373_v12  ;;  %v1381_v27 = vmax.f32 %v1379_v8, %v1380_v13  ;;  %v1387_v29 = vrot.slane %v1386_v19, 4  ;;  %151 = vbcast.lane.b32.xlu1 %v6657_v59, 256  ;;  %342 = vbcast.lane.b32.xlu0 %v6614_v17, 273 }
  0xa3   :  { %v725_v30 = vcombine.high %v645_v20, %v645_v20  ;;  %v732_v31 = vrot.slane %v645_v20, %v6640_v39  ;;  %v6680_v32 = vadd.f32 %v388_v22, %v224_v4  ;;  %v614_v33 = vadd.f32 %v582_v23, %v418_v5 }
  0xa4   :  { %v1369_v34 = vmax.f32 %v1367_v11, %v1368_v24  ;;  %v1375_v35 = vrot.slane %v1374_v26, 2  ;;  %v1382_v36 = vrot.slane %v1381_v27, 2  ;;  %v1388_v37 = vmax.f32 %v1386_v19, %v1387_v29  ;;  %v61_v38 = vpop.permute.xlu1 %60  ;;  %v267_v40 = vpop.permute.xlu0 %266 }
  0xa5   :  { %v739_v41 = vrot.slane %v725_v30, %v6640_v39  ;;  %v740_v42 = vcombine.high %v732_v31, %v732_v31  ;;  %v1393_v43 = vsel %vm1364_vm2, %v732_v31, -inf  ;;  %v646_v44 = vmax.f32 %v614_v33, 0.0 }
  0xa6   :  { %v1370_v45 = vrot.slane %v1369_v34, 1  ;;  %v1376_v46 = vmax.f32 %v1374_v26, %v1375_v35  ;;  %v1383_v47 = vmax.f32 %v1381_v27, %v1382_v36  ;;  %v1389_v48 = vrot.slane %v1388_v37, 2  ;;  %346 = vbcast.lane.b32.xlu1 %v6614_v17, 281  ;;  %155 = vbcast.lane.b32.xlu0 %v6657_v59, 264 }
  0xa7   :  { %v741_v49 = vcombine.high %v739_v41, %v739_v41  ;;  %v1394_v50 = vrot.slane %v1393_v43, 4  ;;  %v1400_v51 = vsel %vm1364_vm2, %v740_v42, -inf  ;;  %v1407_v53 = vsel %vm1364_vm2, %v739_v41, -inf }
  0xa8   :  { %v6688_v54 = vmax.f32 %v1369_v34, %v1370_v45  ;;  %v1377_v55 = vrot.slane %v1376_v46, 1  ;;  %v1384_v56 = vrot.slane %v1383_v47, 1  ;;  %v6690_v57 = vmax.f32 %v1388_v37, %v1389_v48  ;;  %v467_v58 = vpop.permute.xlu1 %466  ;;  %v65_v61 = vpop.permute.xlu0 %64 }
  0xa9   :  { %v1395_v62 = vmax.f32 %v1393_v43, %v1394_v50  ;;  %v1401_v63 = vrot.slane %v1400_v51, 4  ;;  %v1408_v0 = vrot.slane %v1407_v53, 4  ;;  %v6693_v2 = vsel %vm1364_vm2, %v741_v49, -inf }
  0xaa   :  { %v6695_v4 = vmax.f32 %v1376_v46, %v1377_v55  ;;  %v6697_v5 = vmax.f32 %v1383_v47, %v1384_v56  ;;  %v1391_v6 = vrot.slane %v6690_v57, 1  ;;  %v1415_v7 = vrot.slane %v6693_v2, 4  ;;  %350 = vbcast.lane.b32.xlu1 %v6657_v59, 257  ;;  %538 = vbcast.lane.b32.xlu0 %v6614_v17, 274 }
  0xab   :  { %v1396_v3 = vrot.slane %v1395_v62, 2  ;;  %v1402_v8 = vmax.f32 %v1400_v51, %v1401_v63  ;;  %v6703_v10 = vmax.f32 %v1407_v53, %v1408_v0  ;;  %v742_v11 = vcombine.high %v646_v44, %v646_v44 }
  0xac   :  { %v749_v12 = vrot.slane %v646_v44, %v6640_v39  ;;  %v193_v13 = vmul.f32 %v6618_v18, %v61_v38  ;;  %v387_v15 = vmul.f32 %v6622_v21, %v267_v40  ;;  %v584_v16 = vmul.f32 %v6631_v28, %v467_v58  ;;  %v275_v30 = vpop.permute.xlu1 %274  ;;  %v463_v31 = vpop.permute.xlu0 %462 }
  0xad   :  { %v1397_v19 = vmax.f32 %v1395_v62, %v1396_v3  ;;  %v1403_v20 = vrot.slane %v1402_v8, 2  ;;  %v1410_v22 = vrot.slane %v6703_v10, 2  ;;  %v756_v23 = vrot.slane %v742_v11, %v6640_v39 }
  0xae   :  { %v757_v24 = vcombine.high %v749_v12, %v749_v12  ;;  %v1421_v26 = vsel %vm1364_vm2, %v749_v12, -inf  ;;  %v225_v27 = vadd.f32 %v6627_v25, %v193_v13  ;;  %v419_v29 = vadd.f32 %v387_v15, %v6672_v14  ;;  %542 = vbcast.lane.b32.xlu1 %v6614_v17, 282  ;;  %354 = vbcast.lane.b32.xlu0 %v6657_v59, 265 }
  0xaf   :  { %v1398_v33 = vrot.slane %v1397_v19, 1  ;;  %v6716_v34 = vmax.f32 %v1402_v8, %v1403_v20  ;;  %v758_v35 = vcombine.high %v756_v23, %v756_v23  ;;  %v1422_v36 = vrot.slane %v1421_v26, 4 }
  0xb0   :  { %v1428_v37 = vsel %vm1364_vm2, %v757_v24, -inf  ;;  %v1435_v38 = vsel %vm1364_vm2, %v756_v23, -inf  ;;  %v616_v40 = vadd.f32 %v584_v16, %v6680_v32  ;;  %v194_v41 = vmul.f32 %v6618_v18, %v65_v61  ;;  %v76_v58 = vpop.permute.xlu1 %75  ;;  %v279_v61 = vpop.permute.xlu0 %278 }
  0xb1   :  { %v6722_v14 = vmax.f32 %v1397_v19, %v1398_v33  ;;  %v1423_v42 = vmax.f32 %v1421_v26, %v1422_v36  ;;  %v1429_v43 = vrot.slane %v1428_v37, 4  ;;  %v1436_v17 = vrot.slane %v1435_v38, 4 }
  0xb2   :  { %v1442_v44 = vsel %vm1364_vm2, %v758_v35, -inf  ;;  %v648_v45 = vmax.f32 %v616_v40, 0.0  ;;  %v6726_v46 = vadd.f32 %v6627_v25, %v194_v41  ;;  %v389_v47 = vmul.f32 %v6622_v21, %v275_v30  ;;  %546 = vbcast.lane.b32.xlu1 %v6657_v59, 258  ;;  %159 = vbcast.lane.b32.xlu0 %v6657_v59, 272 }
  0xb3   :  { %v1424_v32 = vrot.slane %v1423_v42, 2  ;;  %v1430_v48 = vmax.f32 %v1428_v37, %v1429_v43  ;;  %v1437_v49 = vmax.f32 %v1435_v38, %v1436_v17  ;;  %v1443_v50 = vrot.slane %v1442_v44, 4 }
  0xb4   :  { %v775_v51 = vcombine.high %v648_v45, %v648_v45  ;;  %v782_v53 = vrot.slane %v648_v45, %v6640_v39  ;;  %v421_v55 = vadd.f32 %v389_v47, %v225_v27  ;;  %v583_v56 = vmul.f32 %v6631_v28, %v463_v31  ;;  %v471_v40 = vpop.permute.xlu1 %470  ;;  %v69_v41 = vpop.permute.xlu0 %68 }
  0xb5   :  { %v1425_v62 = vmax.f32 %v1423_v42, %v1424_v32  ;;  %v1431_v63 = vrot.slane %v1430_v48, 2  ;;  %v1438_v0 = vrot.slane %v1437_v49, 2  ;;  %v1444_v3 = vmax.f32 %v1442_v44, %v1443_v50 }
  0xb6   :  { %v789_v8 = vrot.slane %v775_v51, %v6640_v39  ;;  %v790_v11 = vcombine.high %v782_v53, %v782_v53  ;;  %v1470_v12 = vsel %vm1364_vm2, %v782_v53, -inf  ;;  %v615_v13 = vadd.f32 %v583_v56, %v419_v29  ;;  %163 = vbcast.lane.b32.xlu1 %v6657_v59, 280  ;;  %550 = vbcast.lane.b32.xlu0 %v6657_v59, 266 }
  0xb7   :  { %v1426_v15 = vrot.slane %v1425_v62, 1  ;;  %v1432_v16 = vmax.f32 %v1430_v48, %v1431_v63  ;;  %v1439_v19 = vmax.f32 %v1437_v49, %v1438_v0  ;;  %v1445_v20 = vrot.slane %v1444_v3, 2 }
  0xb8   :  { %v791_v23 = vcombine.high %v789_v8, %v789_v8  ;;  %v1471_v24 = vrot.slane %v1470_v12, 4  ;;  %v1477_v26 = vsel %vm1364_vm2, %v790_v11, -inf  ;;  %v1484_v27 = vsel %vm1364_vm2, %v789_v8, -inf }
  0xb9   :  { %v6739_v30 = vmax.f32 %v1425_v62, %v1426_v15  ;;  %v1433_v31 = vrot.slane %v1432_v16, 1  ;;  %v1440_v33 = vrot.slane %v1439_v19, 1  ;;  %v6741_v35 = vmax.f32 %v1444_v3, %v1445_v20 }
  0xba   :  { %v6743_v29 = vmax.f32 %v1470_v12, %v1471_v24  ;;  %v1478_v36 = vrot.slane %v1477_v26, 4  ;;  %v1485_v37 = vrot.slane %v1484_v27, 4  ;;  %v1491_v38 = vsel %vm1364_vm2, %v791_v23, -inf  ;;  %170 = vbcast.lane.b32.xlu1 %v6660_v60, 256  ;;  %358 = vbcast.lane.b32.xlu0 %v6657_v59, 273 }
  0xbb   :  { %v6748_v42 = vmax.f32 %v1432_v16, %v1433_v31  ;;  %v6750_v43 = vmax.f32 %v1439_v19, %v1440_v33  ;;  %v1447_v17 = vrot.slane %v6741_v35, 1  ;;  %v1492_v44 = vrot.slane %v1491_v38, 4  ;;  %v6767_v16 = vpop.permute.xlu0 %474 }
  0xbc   :  { %v1473_v45 = vrot.slane %v6743_v29, 2  ;;  %v1479_v47 = vmax.f32 %v1477_v26, %v1478_v36  ;;  %v1486_v32 = vmax.f32 %v1484_v27, %v1485_v37  ;;  %v647_v48 = vmax.f32 %v615_v13, 0.0  ;;  %v6771_v26 = vpop.permute.xlu1 %286 }
  0xbd   :  { %v1493_v49 = vmax.f32 %v1491_v38, %v1492_v44  ;;  %v196_v50 = vmul.f32 %v6618_v18, %v76_v58  ;;  %v390_v51 = vmul.f32 %v6622_v21, %v279_v61  ;;  %v585_v53 = vmul.f32 %v6631_v28, %v471_v40 }
  0xbe   :  { %v1480_v56 = vrot.slane %v1479_v47, 2  ;;  %v1487_v62 = vrot.slane %v1486_v32, 2  ;;  %v759_v63 = vcombine.high %v647_v48, %v647_v48  ;;  %v766_v0 = vrot.slane %v647_v48, %v6640_v39  ;;  %362 = vbcast.lane.b32.xlu1 %v6657_v59, 281  ;;  %174 = vbcast.lane.b32.xlu0 %v6660_v60, 264 }
  0xbf   :  { %v1494_v3 = vrot.slane %v1493_v49, 2  ;;  %v6761_v8 = vadd.f32 %v6627_v25, %v196_v50  ;;  %v6764_v11 = vadd.f32 %v390_v51, %v6726_v46  ;;  %v617_v58 = vadd.f32 %v585_v53, %v421_v55 }
  0xc0   :  { %v1481_v61 = vmax.f32 %v1479_v47, %v1480_v56  ;;  %v1488_v12 = vmax.f32 %v1486_v32, %v1487_v62  ;;  %v773_v13 = vrot.slane %v759_v63, %v6640_v39  ;;  %v774_v15 = vcombine.high %v766_v0, %v766_v0  ;;  %v283_v63 = vpop.permute.xlu0 %282 }
  0xc1   :  { %v1495_v19 = vmax.f32 %v1493_v49, %v1494_v3  ;;  %v1449_v20 = vsel %vm1364_vm2, %v766_v0, -inf  ;;  %v649_v23 = vmax.f32 %v617_v58, 0.0  ;;  %v195_v24 = vmul.f32 %v6618_v18, %v69_v41 }
  0xc2   :  { %v1482_v27 = vrot.slane %v1481_v61, 1  ;;  %v1489_v31 = vrot.slane %v1488_v12, 1  ;;  %v1450_v46 = vrot.slane %v1449_v20, 4  ;;  %v1456_v55 = vsel %vm1364_vm2, %v774_v15, -inf  ;;  %366 = vbcast.lane.b32.xlu1 %v6660_v60, 257  ;;  %554 = vbcast.lane.b32.xlu0 %v6657_v59, 274 }
  0xc3   :  { %v1496_v33 = vrot.slane %v1495_v19, 1  ;;  %v1457_v36 = vrot.slane %v1456_v55, 4  ;;  %v1463_v37 = vsel %vm1364_vm2, %v773_v13, -inf  ;;  %v792_v38 = vcombine.high %v649_v23, %v649_v23 }
  0xc4   :  { %v6777_v40 = vmax.f32 %v1481_v61, %v1482_v27  ;;  %v6779_v41 = vmax.f32 %v1488_v12, %v1489_v31  ;;  %v1451_v44 = vmax.f32 %v1449_v20, %v1450_v46  ;;  %v1464_v47 = vrot.slane %v1463_v37, 4  ;;  %v80_v12 = vpop.permute.xlu1 %79 }
  0xc5   :  { %v6781_v32 = vmax.f32 %v1495_v19, %v1496_v33  ;;  %v1458_v48 = vmax.f32 %v1456_v55, %v1457_v36  ;;  %v799_v49 = vrot.slane %v649_v23, %v6640_v39  ;;  %v806_v50 = vrot.slane %v792_v38, %v6640_v39 }
  0xc6   :  { %v1452_v51 = vrot.slane %v1451_v44, 2  ;;  %v6785_v53 = vmax.f32 %v1463_v37, %v1464_v47  ;;  %v6788_v56 = vadd.f32 %v6627_v25, %v195_v24  ;;  %v1392_v62 = vmax.f32 %v6690_v57, %v1391_v6  ;;  %558 = vbcast.lane.b32.xlu1 %v6657_v59, 282  ;;  %370 = vbcast.lane.b32.xlu0 %v6660_v60, 265 }
  0xc7   :  { %v1459_v0 = vrot.slane %v1458_v48, 2  ;;  %v807_v3 = vcombine.high %v799_v49, %v799_v49  ;;  %v808_v58 = vcombine.high %v806_v50, %v806_v50  ;;  %v1498_v61 = vsel %vm1364_vm2, %v799_v49, -inf  ;;  %v84_v49 = vpop.permute.xlu0 %83 }
  0xc8   :  { %v1453_v13 = vmax.f32 %v1451_v44, %v1452_v51  ;;  %v1466_v15 = vrot.slane %v6785_v53, 2  ;;  %v1499_v19 = vrot.slane %v1498_v61, 4  ;;  %v1512_v20 = vsel %vm1364_vm2, %v806_v50, -inf }
  0xc9   :  { %v6798_v57 = vmax.f32 %v1458_v48, %v1459_v0  ;;  %v1505_v59 = vsel %vm1364_vm2, %v807_v3, -inf  ;;  %v1513_v6 = vrot.slane %v1512_v20, 4  ;;  %v1519_v23 = vsel %vm1364_vm2, %v808_v58, -inf  ;;  %v483_v58 = vpop.permute.xlu1 %482 }
  0xca   :  { %v1454_v24 = vrot.slane %v1453_v13, 1  ;;  %v1500_v27 = vmax.f32 %v1498_v61, %v1499_v19  ;;  %v1506_v31 = vrot.slane %v1505_v59, 4  ;;  %v1520_v46 = vrot.slane %v1519_v23, 4  ;;  %562 = vbcast.lane.b32.xlu1 %v6660_v60, 258  ;;  %178 = vbcast.lane.b32.xlu0 %v6660_v60, 272 }
  0xcb   :  { %v1514_v55 = vmax.f32 %v1512_v20, %v1513_v6  ;;  %v1405_v33 = vrot.slane %v6716_v34, 1  ;;  %v1411_v36 = vmax.f32 %v6703_v10, %v1410_v22  ;;  %v1416_v37 = vmax.f32 %v6693_v2, %v1415_v7 }
  0xcc   :  { %v6811_v38 = vmax.f32 %v1453_v13, %v1454_v24  ;;  %v1501_v44 = vrot.slane %v1500_v27, 2  ;;  %v1507_v47 = vmax.f32 %v1505_v59, %v1506_v31  ;;  %v6813_v48 = vmax.f32 %v1519_v23, %v1520_v46 }
  0xcd   :  { %v1515_v50 = vrot.slane %v1514_v55, 2  ;;  %v1406_v51 = vmax.f32 %v6716_v34, %v1405_v33  ;;  %v1412_v0 = vrot.slane %v1411_v36, 1  ;;  %v1417_v3 = vrot.slane %v1416_v37, 2 }
  0xce   :  { %v1502_v61 = vmax.f32 %v1500_v27, %v1501_v44  ;;  %v1508_v10 = vrot.slane %v1507_v47, 2  ;;  %v2328_v2 = vsel %vm2327_vm3, %v6695_v4, %v6688_v54  ;;  %v392_v7 = vmul.f32 %v6622_v21, %v6771_v26  ;;  %566 = vbcast.lane.b32.xlu0 %v6660_v60, 266  ;;  %374 = vbcast.lane.b32.xlu1 %v6660_v60, 273 }
  0xcf   :  { %v6823_v22 = vmax.f32 %v1514_v55, %v1515_v50  ;;  %v1413_v13 = vmax.f32 %v1411_v36, %v1412_v0  ;;  %v1418_v34 = vmax.f32 %v1416_v37, %v1417_v3  ;;  %v2330_v19 = vsel %vm2329_vm4, %v6697_v5, %v2328_v2  ;;  %v291_v55 = vpop.permute.xlu1 %290 }
  0xd0   :  { %v1503_v20 = vrot.slane %v1502_v61, 1  ;;  %v6827_v59 = vmax.f32 %v1507_v47, %v1508_v10  ;;  %v2332_v6 = vsel %vm2331_vm5, %v1392_v62, %v2330_v19  ;;  %v424_v54 = vadd.f32 %v392_v7, %v6761_v8  ;;  %v479_v62 = vpop.permute.xlu0 %478 }
  0xd1   :  { %v1419_v4 = vrot.slane %v1418_v34, 1  ;;  %v2334_v26 = vsel %vm2333_vm6, %v6722_v14, %v2332_v6  ;;  %v586_v23 = vmul.f32 %v6631_v28, %v6767_v16  ;;  %v197_v24 = vmul.f32 %v6618_v18, %v80_v12 }
  0xd2   :  { %v6836_v27 = vmax.f32 %v1502_v61, %v1503_v20  ;;  %v1510_v5 = vrot.slane %v6827_v59, 1  ;;  %v2336_v31 = vsel %vm2335_vm7, %v1406_v51, %v2334_v26  ;;  %v391_v46 = vmul.f32 %v6622_v21, %v283_v63  ;;  %182 = vbcast.lane.b32.xlu0 %v6660_v60, 280  ;;  %570 = vbcast.lane.b32.xlu1 %v6660_v60, 274 }
  0xd3   :  { %v1420_v8 = vmax.f32 %v1418_v34, %v1419_v4  ;;  %v2338_v14 = vsel %vm2337_vm8, %v1413_v13, %v2336_v31  ;;  %v618_v16 = vadd.f32 %v586_v23, %v6764_v11  ;;  %v229_v12 = vadd.f32 %v6627_v25, %v197_v24 }
  0xd4   :  { %v423_v33 = vadd.f32 %v391_v46, %v6788_v56  ;;  %v588_v36 = vmul.f32 %v6631_v28, %v483_v58  ;;  %v198_v37 = vmul.f32 %v6618_v18, %v84_v49  ;;  %v393_v63 = vmul.f32 %v6622_v21, %v291_v55 }
  0xd5   :  { %v2340_v44 = vsel %vm2339_vm9, %v1420_v8, %v2338_v14  ;;  %v650_v47 = vmax.f32 %v618_v16, 0.0  ;;  %v587_v50 = vmul.f32 %v6631_v28, %v479_v62  ;;  %v6855_v11 = vmax.f32 %v6741_v35, %v1447_v17 }
  0xd6   :  { %6292 = vmatmul.mubr.msk.f32.vlgmr.msra.gmra.mrb[0].mxu0 %vm2439_vm10, %v2340_v44  ;;  %v620_v51 = vadd.f32 %v588_v36, %v424_v54  ;;  %v6859_v56 = vadd.f32 %v6627_v25, %v198_v37  ;;  %v6861_v0 = vadd.f32 %v393_v63, %v229_v12  ;;  %v1461_v49 = vrot.slane %v6798_v57, 1  ;;  %378 = vbcast.lane.b32.xlu0 %v6660_v60, 281 }
  0xd7   :  { %v809_v3 = vcombine.high %v650_v47, %v650_v47  ;;  %v816_v58 = vrot.slane %v650_v47, %v6640_v39  ;;  %v619_v61 = vadd.f32 %v587_v50, %v423_v33  ;;  %6294 = vmatprep.mubr.msk.f32.mxu0 %vm6545_vm1, %v9669_v9  ;;  %v6871_v35 = vmax.f32 %v6785_v53, %v1466_v15 }
  0xd8   :  { %v652_v17 = vmax.f32 %v620_v51, 0.0  ;;  %v6874_v10 = vmax.f32 %v6798_v57, %v1461_v49  ;;  %v6879_v2 = vmax.f32 %v6743_v29, %v1473_v45  ;;  %v6884_v7 = vsel %vm2327_vm3, %v6748_v42, %v6739_v30  ;;  %574 = vbcast.lane.b32.xlu1 %v6660_v60, 282 }
  0xd9   :  { %v823_v13 = vrot.slane %v809_v3, %v6640_v39  ;;  %v824_v53 = vcombine.high %v816_v58, %v816_v58  ;;  %v1526_v15 = vsel %vm1364_vm2, %v816_v58, -inf  ;;  %v651_v34 = vmax.f32 %v619_v61, 0.0 }
  0xda   :  { %v1527_v57 = vrot.slane %v1526_v15, 4  ;;  %v842_v19 = vcombine.high %v652_v17, %v652_v17  ;;  %v849_v20 = vrot.slane %v652_v17, %v6640_v39  ;;  %v1468_v29 = vrot.slane %v6871_v35, 1 }
  0xdb   :  { %v825_v45 = vcombine.high %v823_v13, %v823_v13  ;;  %v1533_v6 = vsel %vm1364_vm2, %v824_v53, -inf  ;;  %v1540_v30 = vsel %vm1364_vm2, %v823_v13, -inf  ;;  %v826_v42 = vcombine.high %v651_v34, %v651_v34  ;;  %v88_v53 = vpop.permute.xlu1 %87 }
  0xdc   :  { %v6893_v54 = vmax.f32 %v1526_v15, %v1527_v57  ;;  %v1534_v60 = vrot.slane %v1533_v6, 4  ;;  %v1541_v4 = vrot.slane %v1540_v30, 4  ;;  %v856_v26 = vrot.slane %v842_v19, %v6640_v39 }
  0xdd   :  { %v1547_v23 = vsel %vm1364_vm2, %v825_v45, -inf  ;;  %v857_v24 = vcombine.high %v849_v20, %v849_v20  ;;  %v1575_v31 = vsel %vm1364_vm2, %v849_v20, -inf  ;;  %v833_v46 = vrot.slane %v651_v34, %v6640_v39  ;;  %v295_v20 = vpop.permute.xlu0 %294 }
  0xde   :  { %v1529_v62 = vrot.slane %v6893_v54, 2  ;;  %v1535_v8 = vmax.f32 %v1533_v6, %v1534_v60  ;;  %v1542_v14 = vmax.f32 %v1540_v30, %v1541_v4  ;;  %v1548_v16 = vrot.slane %v1547_v23, 4 }
  0xdf   :  { %v858_v12 = vcombine.high %v856_v26, %v856_v26  ;;  %v1576_v55 = vrot.slane %v1575_v31, 4  ;;  %v1582_v33 = vsel %vm1364_vm2, %v857_v24, -inf  ;;  %v1589_v36 = vsel %vm1364_vm2, %v856_v26, -inf }
  0xe0   :  { %v1536_v37 = vrot.slane %v1535_v8, 2  ;;  %v1543_v63 = vrot.slane %v1542_v14, 2  ;;  %v1549_v44 = vmax.f32 %v1547_v23, %v1548_v16  ;;  %v1583_v47 = vrot.slane %v1582_v33, 4 }
  0xe1   :  { %v1577_v50 = vmax.f32 %v1575_v31, %v1576_v55  ;;  %v1590_v51 = vrot.slane %v1589_v36, 4  ;;  %v1596_v49 = vsel %vm1364_vm2, %v858_v12, -inf  ;;  %v840_v3 = vrot.slane %v826_v42, %v6640_v39 }
  0xe2   :  { %v1537_v58 = vmax.f32 %v1535_v8, %v1536_v37  ;;  %v1544_v61 = vmax.f32 %v1542_v14, %v1543_v63  ;;  %v1550_v17 = vrot.slane %v1549_v44, 2  ;;  %v6904_v13 = vmax.f32 %v1582_v33, %v1583_v47 }
  0xe3   :  { %v1578_v15 = vrot.slane %v1577_v50, 2  ;;  %v1591_v34 = vmax.f32 %v1589_v36, %v1590_v51  ;;  %v1597_v57 = vrot.slane %v1596_v49, 4  ;;  %v841_v19 = vcombine.high %v833_v46, %v833_v46 }
  0xe4   :  { %v1538_v45 = vrot.slane %v1537_v58, 1  ;;  %v1545_v6 = vrot.slane %v1544_v61, 1  ;;  %v1551_v30 = vmax.f32 %v1549_v44, %v1550_v17  ;;  %v1554_v60 = vsel %vm1364_vm2, %v833_v46, -inf  ;;  %v487_v44 = vpop.permute.xlu1 %486 }
  0xe5   :  { %v6907_v4 = vmax.f32 %v1577_v50, %v1578_v15  ;;  %v1592_v26 = vrot.slane %v1591_v34, 2  ;;  %v1598_v42 = vmax.f32 %v1596_v49, %v1597_v57  ;;  %v1555_v23 = vrot.slane %v1554_v60, 4 }
  0xe6   :  { %v6909_v24 = vmax.f32 %v1537_v58, %v1538_v45  ;;  %v6911_v31 = vmax.f32 %v1544_v61, %v1545_v6  ;;  %v1552_v8 = vrot.slane %v1551_v30, 1  ;;  %v1561_v14 = vsel %vm1364_vm2, %v841_v19, -inf  ;;  %v95_v58 = vpop.permute.xlu0 %94 }
  0xe7   :  { %v1593_v16 = vmax.f32 %v1591_v34, %v1592_v26  ;;  %v1599_v12 = vrot.slane %v1598_v42, 2  ;;  %v1556_v55 = vmax.f32 %v1554_v60, %v1555_v23  ;;  %v1562_v33 = vrot.slane %v1561_v14, 4 }
  0xe8   :  { %v6914_v36 = vmax.f32 %v1551_v30, %v1552_v8  ;;  %v1568_v46 = vsel %vm1364_vm2, %v840_v3, -inf  ;;  %v1469_v37 = vmax.f32 %v6871_v35, %v1468_v29  ;;  %v1475_v63 = vrot.slane %v6879_v2, 1  ;;  %v299_v23 = vpop.permute.xlu1 %298 }
  0xe9   :  { %v1594_v47 = vrot.slane %v1593_v16, 1  ;;  %v1600_v50 = vmax.f32 %v1598_v42, %v1599_v12  ;;  %v1557_v51 = vrot.slane %v1556_v55, 2  ;;  %v1563_v49 = vmax.f32 %v1561_v14, %v1562_v33 }
  0xea   :  { %v1569_v61 = vrot.slane %v1568_v46, 4  ;;  %v1476_v17 = vmax.f32 %v6879_v2, %v1475_v63  ;;  %v2342_v15 = vsel %vm2329_vm4, %v6750_v43, %v6884_v7  ;;  %v199_v34 = vmul.f32 %v6618_v18, %v88_v53  ;;  %v491_v12 = vpop.permute.xlu0 %490 }
  0xeb   :  { %v6924_v3 = vmax.f32 %v1593_v16, %v1594_v47  ;;  %v1601_v35 = vrot.slane %v1600_v50, 1  ;;  %v1558_v29 = vmax.f32 %v1556_v55, %v1557_v51  ;;  %v1564_v57 = vrot.slane %v1563_v49, 2 }
  0xec   :  { %v1570_v19 = vmax.f32 %v1568_v46, %v1569_v61  ;;  %v2343_v45 = vsel %vm2331_vm5, %v6855_v11, %v2342_v15  ;;  %v231_v6 = vadd.f32 %v6627_v25, %v199_v34  ;;  %v394_v30 = vmul.f32 %v6622_v21, %v295_v20 }
  0xed   :  { %v6930_v2 = vmax.f32 %v1600_v50, %v1601_v35  ;;  %v1559_v60 = vrot.slane %v1558_v29, 1  ;;  %v6932_v26 = vmax.f32 %v1563_v49, %v1564_v57  ;;  %v2344_v43 = vsel %vm2333_vm6, %v6811_v38, %v2343_v45 }
  0xee   :  { %v1571_v7 = vrot.slane %v1570_v19, 2  ;;  %v2345_v53 = vsel %vm2335_vm7, %v6874_v10, %v2344_v43  ;;  %v426_v42 = vadd.f32 %v394_v30, %v6859_v56  ;;  %v589_v11 = vmul.f32 %v6631_v28, %v487_v44 }
  0xef   :  { %v6940_v8 = vmax.f32 %v1558_v29, %v1559_v60  ;;  %v1566_v20 = vrot.slane %v6932_v26, 1  ;;  %v2346_v14 = vsel %vm2337_vm8, %v1469_v37, %v2345_v53  ;;  %v200_v16 = vmul.f32 %v6618_v18, %v95_v58 }
  0xf0   :  { %v6945_v55 = vmax.f32 %v1570_v19, %v1571_v7  ;;  %v2347_v38 = vsel %vm2339_vm9, %v1476_v17, %v2346_v14  ;;  %v621_v10 = vadd.f32 %v589_v11, %v6861_v0  ;;  %v395_v56 = vmul.f32 %v6622_v21, %v299_v23 }
  0xf1   :  { %6295 = vmatmul.mubr.msk.f32.gmra.mrb[2].mxu0 %vm2439_vm10, %v2347_v38  ;;  %v6952_v33 = vadd.f32 %v6627_v25, %v200_v16  ;;  %v1511_v46 = vmax.f32 %v6827_v59, %v1510_v5  ;;  %v1517_v37 = vrot.slane %v6823_v22, 1  ;;  %v1522_v63 = vrot.slane %v6813_v48, 2 }
  0xf2   :  { %v653_v44 = vmax.f32 %v621_v10, 0.0  ;;  %6297 = vmatprep.mubr.msk.f32.mxu0 %vm6545_vm1, %v9669_v9  ;;  %v6961_v0 = vadd.f32 %v395_v56, %v231_v6  ;;  %v1530_v47 = vmax.f32 %v6893_v54, %v1529_v62  ;;  %v2348_v50 = vsel %vm2327_vm3, %v6779_v41, %v6777_v40  ;;  %v99_v62 = vpop.permute.xlu1 %98 }
  0xf3   :  { %v1518_v59 = vmax.f32 %v6823_v22, %v1517_v37  ;;  %v1523_v5 = vmax.f32 %v6813_v48, %v1522_v63  ;;  %v2349_v51 = vsel %vm2329_vm4, %v6781_v32, %v2348_v50  ;;  %v590_v49 = vmul.f32 %v6631_v28, %v491_v12  ;;  %v303_v48 = vpop.permute.xlu0 %302 }
  0xf4   :  { %v859_v58 = vcombine.high %v653_v44, %v653_v44  ;;  %v866_v61 = vrot.slane %v653_v44, %v6640_v39  ;;  %v1531_v17 = vrot.slane %v1530_v47, 1  ;;  %v2350_v54 = vsel %vm2331_vm5, %v6836_v27, %v2349_v51 }
  0xf5   :  { %v1524_v15 = vrot.slane %v1523_v5, 1  ;;  %v2351_v40 = vsel %vm2333_vm6, %v1511_v46, %v2350_v54  ;;  %v622_v41 = vadd.f32 %v590_v49, %v426_v42  ;;  %v201_v22 = vmul.f32 %v6618_v18, %v99_v62 }
  0xf6   :  { %v873_v34 = vrot.slane %v859_v58, %v6640_v39  ;;  %v874_v32 = vcombine.high %v866_v61, %v866_v61  ;;  %v1603_v35 = vsel %vm1364_vm2, %v866_v61, -inf  ;;  %v1532_v29 = vmax.f32 %v1530_v47, %v1531_v17 }
  0xf7   :  { %v1604_v57 = vrot.slane %v1603_v35, 4  ;;  %v1525_v19 = vmax.f32 %v1523_v5, %v1524_v15  ;;  %v2352_v45 = vsel %vm2335_vm7, %v1518_v59, %v2351_v40  ;;  %v654_v6 = vmax.f32 %v622_v41, 0.0  ;;  %v103_v37 = vpop.permute.xlu0 %102  ;;  %v495_v41 = vpop.permute.xlu1 %494 }
  0xf8   :  { %v875_v27 = vcombine.high %v873_v34, %v873_v34  ;;  %v1610_v30 = vsel %vm1364_vm2, %v874_v32, -inf  ;;  %v1617_v60 = vsel %vm1364_vm2, %v873_v34, -inf  ;;  %v233_v43 = vadd.f32 %v6627_v25, %v201_v22 }
  0xf9   :  { %v1605_v7 = vmax.f32 %v1603_v35, %v1604_v57  ;;  %v1611_v53 = vrot.slane %v1610_v30, 4  ;;  %v1618_v42 = vrot.slane %v1617_v60, 4  ;;  %v2353_v11 = vsel %vm2337_vm8, %v1525_v19, %v2352_v45 }
  0xfa   :  { %v1624_v23 = vsel %vm1364_vm2, %v875_v27, -inf  ;;  %v2354_v14 = vsel %vm2339_vm9, %v1532_v29, %v2353_v11  ;;  %v876_v16 = vcombine.high %v654_v6, %v654_v6  ;;  %v883_v12 = vrot.slane %v654_v6, %v6640_v39 }
  0xfb   :  { %v1606_v38 = vrot.slane %v1605_v7, 2  ;;  %v1612_v10 = vmax.f32 %v1610_v30, %v1611_v53  ;;  %v1619_v56 = vmax.f32 %v1617_v60, %v1618_v42  ;;  %v1625_v46 = vrot.slane %v1624_v23, 4  ;;  %6298 = vmatmul.mubr.msk.f32.gmra.mrb[4].mxu0 %vm2439_vm10, %v2354_v14  ;;  %v499_v45 = vpop.permute.xlu0 %498 }
  0xfc   :  { %v890_v25 = vrot.slane %v876_v16, %v6640_v39  ;;  %v891_v63 = vcombine.high %v883_v12, %v883_v12  ;;  %v1631_v44 = vsel %vm1364_vm2, %v883_v12, -inf  ;;  %v396_v47 = vmul.f32 %v6622_v21, %v303_v48  ;;  %6300 = vmatprep.mubr.msk.f32.mxu0 %vm6545_vm1, %v9669_v9 }
  0xfd   :  { %v1607_v50 = vmax.f32 %v1605_v7, %v1606_v38  ;;  %v1613_v59 = vrot.slane %v1612_v10, 2  ;;  %v1620_v5 = vrot.slane %v1619_v56, 2  ;;  %v6995_v51 = vmax.f32 %v1624_v23, %v1625_v46  ;;  %v307_v23 = vpop.permute.xlu1 %306  ;;  %v7018_v46 = vld [vmem:[#allocation2 + $0x8] ss:$0 sm:$0xff] }
  0xfe   :  { %v892_v49 = vcombine.high %v890_v25, %v890_v25  ;;  %v1632_v58 = vrot.slane %v1631_v44, 4  ;;  %v1638_v61 = vsel %vm1364_vm2, %v891_v63, -inf  ;;  %v1645_v17 = vsel %vm1364_vm2, %v890_v25, -inf }
  0xff   :  { %v1608_v54 = vrot.slane %v1607_v50, 1  ;;  %v1614_v62 = vmax.f32 %v1612_v10, %v1613_v59  ;;  %v6999_v15 = vmax.f32 %v1619_v56, %v1620_v5  ;;  %v1627_v40 = vrot.slane %v6995_v51, 2 }
 0x100   :  { %v1633_v22 = vmax.f32 %v1631_v44, %v1632_v58  ;;  %v1639_v48 = vrot.slane %v1638_v61, 4  ;;  %v1646_v34 = vrot.slane %v1645_v17, 4  ;;  %v1652_v32 = vsel %vm1364_vm2, %v892_v49, -inf }
 0x101   :  { %v7003_v35 = vmax.f32 %v1607_v50, %v1608_v54  ;;  %v1615_v29 = vrot.slane %v1614_v62, 1  ;;  %v1622_v57 = vrot.slane %v6999_v15, 1  ;;  %v1653_v19 = vrot.slane %v1652_v32, 4 }
 0x102   :  { %v1634_v6 = vrot.slane %v1633_v22, 2  ;;  %v7006_v27 = vmax.f32 %v1638_v61, %v1639_v48  ;;  %v1647_v30 = vmax.f32 %v1645_v17, %v1646_v34  ;;  %v428_v60 = vadd.f32 %v396_v47, %v6952_v33  ;;  %v311_v34 = vpop.permute.xlu0 %310 }
 0x103   :  { %v7009_v7 = vmax.f32 %v1614_v62, %v1615_v29  ;;  %v1654_v53 = vmax.f32 %v1652_v32, %v1653_v19  ;;  %v591_v42 = vmul.f32 %v6631_v28, %v495_v41  ;;  %v202_v11 = vmul.f32 %v6618_v18, %v103_v37 }
 0x104   :  { %v7013_v14 = vmax.f32 %v1633_v22, %v1634_v6  ;;  %v1648_v16 = vrot.slane %v1647_v30, 2  ;;  %v592_v12 = vmul.f32 %v6631_v28, %v499_v45  ;;  %v397_v38 = vmul.f32 %v6622_v21, %v307_v23 }
 0x105   :  { %v1655_v10 = vrot.slane %v1654_v53, 2  ;;  %v623_v56 = vadd.f32 %v591_v42, %v6961_v0  ;;  %v7021_v33 = vadd.f32 %v7018_v46, %v202_v11  ;;  %v7026_v37 = vmax.f32 %v6932_v26, %v1566_v20 }
 0x106   :  { %v1649_v25 = vmax.f32 %v1647_v30, %v1648_v16  ;;  %v624_v63 = vadd.f32 %v592_v12, %v428_v60  ;;  %v7028_v44 = vadd.f32 %v397_v38, %v233_v43  ;;  %v1573_v47 = vrot.slane %v6945_v55, 1 }
 0x107   :  { %v1656_v50 = vmax.f32 %v1654_v53, %v1655_v10  ;;  %v655_v59 = vmax.f32 %v623_v56, 0.0  ;;  %v1580_v0 = vrot.slane %v6907_v4, 1  ;;  %v1585_v5 = vrot.slane %v6904_v13, 2  ;;  %v107_v56 = vpop.permute.xlu1 %106 }
 0x108   :  { %v1650_v49 = vrot.slane %v1649_v25, 1  ;;  %v656_v58 = vmax.f32 %v624_v63, 0.0  ;;  %v1574_v61 = vmax.f32 %v6945_v55, %v1573_v47  ;;  %v2355_v26 = vsel %vm2327_vm3, %v6911_v31, %v6909_v24 }
 0x109   :  { %v1657_v20 = vrot.slane %v1656_v50, 1  ;;  %v893_v17 = vcombine.high %v655_v59, %v655_v59  ;;  %v900_v43 = vrot.slane %v655_v59, %v6640_v39  ;;  %v1581_v54 = vmax.f32 %v6907_v4, %v1580_v0  ;;  %v503_v59 = vpop.permute.xlu0 %502 }
 0x10a   :  { %v7039_v62 = vmax.f32 %v1649_v25, %v1650_v49  ;;  %v909_v41 = vcombine.high %v656_v58, %v656_v58  ;;  %v916_v22 = vrot.slane %v656_v58, %v6640_v39  ;;  %v1586_v48 = vmax.f32 %v6904_v13, %v1585_v5 }
 0x10b   :  { %v7043_v32 = vmax.f32 %v1656_v50, %v1657_v20  ;;  %v907_v55 = vrot.slane %v893_v17, %v6640_v39  ;;  %v908_v29 = vcombine.high %v900_v43, %v900_v43  ;;  %v1659_v24 = vsel %vm1364_vm2, %v900_v43, -inf }
 0x10c   :  { %v1660_v31 = vrot.slane %v1659_v24, 4  ;;  %v923_v19 = vrot.slane %v909_v41, %v6640_v39  ;;  %v924_v45 = vcombine.high %v916_v22, %v916_v22  ;;  %v1680_v4 = vsel %vm1364_vm2, %v916_v22, -inf }
 0x10d   :  { %v1666_v6 = vsel %vm1364_vm2, %v908_v29, -inf  ;;  %v1673_v30 = vsel %vm1364_vm2, %v907_v55, -inf  ;;  %v1681_v60 = vrot.slane %v1680_v4, 4  ;;  %v1587_v13 = vrot.slane %v1586_v48, 1 }
 0x10e   :  { %v1661_v53 = vmax.f32 %v1659_v24, %v1660_v31  ;;  %v1667_v42 = vrot.slane %v1666_v6, 4  ;;  %v1674_v11 = vrot.slane %v1673_v30, 4  ;;  %v925_v23 = vcombine.high %v923_v19, %v923_v19 }
 0x10f   :  { %v1682_v16 = vmax.f32 %v1680_v4, %v1681_v60  ;;  %v1687_v12 = vsel %vm1364_vm2, %v924_v45, -inf  ;;  %v1694_v38 = vsel %vm1364_vm2, %v923_v19, -inf  ;;  %v1588_v10 = vmax.f32 %v1586_v48, %v1587_v13 }
 0x110   :  { %v1662_v25 = vrot.slane %v1661_v53, 2  ;;  %v1668_v63 = vmax.f32 %v1666_v6, %v1667_v42  ;;  %v1675_v47 = vmax.f32 %v1673_v30, %v1674_v11  ;;  %v1688_v50 = vrot.slane %v1687_v12, 4  ;;  %v507_v30 = vpop.permute.xlu1 %506  ;;  %v315_v42 = vpop.permute.xlu0 %314 }
 0x111   :  { %v1683_v0 = vrot.slane %v1682_v16, 2  ;;  %v1695_v5 = vrot.slane %v1694_v38, 4  ;;  %v1701_v49 = vsel %vm1364_vm2, %v925_v23, -inf  ;;  %v2356_v58 = vsel %vm2329_vm4, %v6914_v36, %v2355_v26 }
 0x112   :  { %v1663_v20 = vmax.f32 %v1661_v53, %v1662_v25  ;;  %v1669_v17 = vrot.slane %v1668_v63, 2  ;;  %v1676_v43 = vrot.slane %v1675_v47, 2  ;;  %v7056_v41 = vmax.f32 %v1687_v12, %v1688_v50 }
 0x113   :  { %v7058_v22 = vmax.f32 %v1682_v16, %v1683_v0  ;;  %v7060_v48 = vmax.f32 %v1694_v38, %v1695_v5  ;;  %v1702_v55 = vrot.slane %v1701_v49, 4  ;;  %v2357_v29 = vsel %vm2331_vm5, %v6940_v8, %v2356_v58 }
 0x114   :  { %v1664_v24 = vrot.slane %v1663_v20, 1  ;;  %v1670_v31 = vmax.f32 %v1668_v63, %v1669_v17  ;;  %v7064_v19 = vmax.f32 %v1675_v47, %v1676_v43  ;;  %v1690_v45 = vrot.slane %v7056_v41, 2 }
 0x115   :  { %v1685_v36 = vrot.slane %v7058_v22, 1  ;;  %v1703_v26 = vmax.f32 %v1701_v49, %v1702_v55  ;;  %v2358_v4 = vsel %vm2333_vm6, %v7026_v37, %v2357_v29  ;;  %v398_v6 = vmul.f32 %v6622_v21, %v311_v34 }
 0x116   :  { %v7071_v60 = vmax.f32 %v1663_v20, %v1664_v24  ;;  %v1671_v13 = vrot.slane %v1670_v31, 1  ;;  %v1678_v8 = vrot.slane %v7064_v19, 1  ;;  %v2359_v53 = vsel %vm2335_vm7, %v1574_v61, %v2358_v4  ;;  %v118_v20 = vpop.permute.xlu0 %117  ;;  %v114_v24 = vpop.permute.xlu1 %113 }
 0x117   :  { %v1704_v11 = vrot.slane %v1703_v26, 2  ;;  %v2360_v23 = vsel %vm2337_vm8, %v1581_v54, %v2359_v53  ;;  %v430_v16 = vadd.f32 %v398_v6, %v7021_v33  ;;  %v203_v12 = vmul.f32 %v6618_v18, %v107_v56 }
 0x118   :  { %v7078_v38 = vmax.f32 %v1670_v31, %v1671_v13  ;;  %v2361_v37 = vsel %vm2339_vm9, %v1588_v10, %v2360_v23  ;;  %v593_v34 = vmul.f32 %v6631_v28, %v503_v59  ;;  %v594_v25 = vmul.f32 %v6631_v28, %v507_v30 }
 0x119   :  { %v1705_v63 = vmax.f32 %v1703_v26, %v1704_v11  ;;  %6301 = vmatmul.mubr.msk.f32.gmra.mrb[6].mxu0 %vm2439_vm10, %v2361_v37  ;;  %v235_v61 = vadd.f32 %v7018_v46, %v203_v12  ;;  %v399_v47 = vmul.f32 %v6622_v21, %v315_v42  ;;  %v7089_v33 = vmax.f32 %v6999_v15, %v1622_v57 }
 0x11a   :  { %v625_v54 = vadd.f32 %v593_v34, %v7028_v44  ;;  %v626_v56 = vadd.f32 %v594_v25, %v430_v16  ;;  %6303 = vmatprep.mubr.msk.f32.mxu0 %vm6545_vm1, %v9669_v9  ;;  %v1628_v10 = vmax.f32 %v6995_v51, %v1627_v40  ;;  %v1636_v50 = vrot.slane %v7013_v14, 1  ;;  %v319_v37 = vpop.permute.xlu0 %318 }
 0x11b   :  { %v1706_v59 = vrot.slane %v1705_v63, 1  ;;  %v7098_v0 = vadd.f32 %v399_v47, %v235_v61  ;;  %v1641_v5 = vrot.slane %v7006_v27, 2  ;;  %v2362_v15 = vsel %vm2327_vm3, %v6930_v2, %v6924_v3 }
 0x11c   :  { %v657_v57 = vmax.f32 %v625_v54, 0.0  ;;  %v658_v44 = vmax.f32 %v626_v56, 0.0  ;;  %v1629_v49 = vrot.slane %v1628_v10, 1  ;;  %v7105_v58 = vmax.f32 %v7013_v14, %v1636_v50  ;;  %v511_v50 = vpop.permute.xlu1 %510 }
 0x11d   :  { %v7107_v17 = vmax.f32 %v1705_v63, %v1706_v59  ;;  %v1642_v51 = vmax.f32 %v7006_v27, %v1641_v5  ;;  %v2363_v40 = vsel %vm2329_vm4, %v7003_v35, %v2362_v15  ;;  %v205_v43 = vmul.f32 %v6618_v18, %v118_v20 }
 0x11e   :  { %v926_v55 = vcombine.high %v657_v57, %v657_v57  ;;  %v933_v29 = vrot.slane %v657_v57, %v6640_v39  ;;  %v943_v3 = vcombine.high %v658_v44, %v658_v44  ;;  %v950_v2 = vrot.slane %v658_v44, %v6640_v39 }
 0x11f   :  { %v1630_v31 = vmax.f32 %v1628_v10, %v1629_v49  ;;  %v1643_v14 = vrot.slane %v1642_v51, 1  ;;  %v2364_v26 = vsel %vm2331_vm5, %v7009_v7, %v2363_v40  ;;  %v7118_v4 = vadd.f32 %v7018_v46, %v205_v43 }
 0x120   :  { %v940_v27 = vrot.slane %v926_v55, %v6640_v39  ;;  %v941_v35 = vcombine.high %v933_v29, %v933_v29  ;;  %v1708_v6 = vsel %vm1364_vm2, %v933_v29, -inf  ;;  %v957_v30 = vrot.slane %v943_v3, %v6640_v39 }
 0x121   :  { %v1709_v13 = vrot.slane %v1708_v6, 4  ;;  %v958_v53 = vcombine.high %v950_v2, %v950_v2  ;;  %v1736_v42 = vsel %vm1364_vm2, %v950_v2, -inf  ;;  %v1644_v11 = vmax.f32 %v1642_v51, %v1643_v14 }
 0x122   :  { %v942_v23 = vcombine.high %v940_v27, %v940_v27  ;;  %v1715_v16 = vsel %vm1364_vm2, %v941_v35, -inf  ;;  %v1722_v7 = vsel %vm1364_vm2, %v940_v27, -inf  ;;  %v959_v12 = vcombine.high %v957_v30, %v957_v30  ;;  %v122_v35 = vpop.permute.xlu0 %121 }
 0x123   :  { %v1710_v34 = vmax.f32 %v1708_v6, %v1709_v13  ;;  %v1716_v25 = vrot.slane %v1715_v16, 4  ;;  %v1723_v63 = vrot.slane %v1722_v7, 4  ;;  %v1737_v61 = vrot.slane %v1736_v42, 4  ;;  %v323_v6 = vpop.permute.xlu1 %322 }
 0x124   :  { %v1729_v47 = vsel %vm1364_vm2, %v942_v23, -inf  ;;  %v1743_v54 = vsel %vm1364_vm2, %v958_v53, -inf  ;;  %v1750_v56 = vsel %vm1364_vm2, %v957_v30, -inf  ;;  %v1757_v10 = vsel %vm1364_vm2, %v959_v12, -inf }
 0x125   :  { %v1711_v59 = vrot.slane %v1710_v34, 2  ;;  %v1717_v5 = vmax.f32 %v1715_v16, %v1716_v25  ;;  %v1724_v15 = vmax.f32 %v1722_v7, %v1723_v63  ;;  %v1730_v57 = vrot.slane %v1729_v47, 4 }
 0x126   :  { %v1738_v44 = vmax.f32 %v1736_v42, %v1737_v61  ;;  %v1744_v49 = vrot.slane %v1743_v54, 4  ;;  %v1751_v20 = vrot.slane %v1750_v56, 4  ;;  %v1758_v51 = vrot.slane %v1757_v10, 4 }
 0x127   :  { %v1712_v40 = vmax.f32 %v1710_v34, %v1711_v59  ;;  %v1718_v43 = vrot.slane %v1717_v5, 2  ;;  %v1725_v55 = vrot.slane %v1724_v15, 2  ;;  %v1731_v29 = vmax.f32 %v1729_v47, %v1730_v57 }
 0x128   :  { %v1739_v3 = vrot.slane %v1738_v44, 2  ;;  %v7130_v2 = vmax.f32 %v1743_v54, %v1744_v49  ;;  %v7132_v14 = vmax.f32 %v1750_v56, %v1751_v20  ;;  %v1759_v27 = vmax.f32 %v1757_v10, %v1758_v51  ;;  %v515_v20 = vpop.permute.xlu0 %514 }
 0x129   :  { %v1713_v30 = vrot.slane %v1712_v40, 1  ;;  %v1719_v13 = vmax.f32 %v1717_v5, %v1718_v43  ;;  %v1726_v53 = vmax.f32 %v1724_v15, %v1725_v55  ;;  %v1732_v23 = vrot.slane %v1731_v29, 2 }
 0x12a   :  { %v7134_v42 = vmax.f32 %v1738_v44, %v1739_v3  ;;  %v1746_v16 = vrot.slane %v7130_v2, 2  ;;  %v1760_v7 = vrot.slane %v1759_v27, 2  ;;  %v2365_v12 = vsel %vm2333_vm6, %v7089_v33, %v2364_v26 }
 0x12b   :  { %v7139_v34 = vmax.f32 %v1712_v40, %v1713_v30  ;;  %v1720_v25 = vrot.slane %v1719_v13, 1  ;;  %v1727_v63 = vrot.slane %v1726_v53, 1  ;;  %v7141_v61 = vmax.f32 %v1731_v29, %v1732_v23 }
 0x12c   :  { %v1741_v47 = vrot.slane %v7134_v42, 1  ;;  %v1761_v54 = vmax.f32 %v1759_v27, %v1760_v7  ;;  %v2366_v56 = vsel %vm2335_vm7, %v1630_v31, %v2365_v12  ;;  %v204_v10 = vmul.f32 %v6618_v18, %v114_v24  ;;  %v126_v31 = vpop.permute.xlu1 %125 }
 0x12d   :  { %v7146_v59 = vmax.f32 %v1719_v13, %v1720_v25  ;;  %v7148_v5 = vmax.f32 %v1726_v53, %v1727_v63  ;;  %v2367_v33 = vsel %vm2337_vm8, %v7105_v58, %v2366_v56  ;;  %v400_v26 = vmul.f32 %v6622_v21, %v319_v37 }
 0x12e   :  { %v1762_v15 = vrot.slane %v1761_v54, 1  ;;  %v2368_v57 = vsel %vm2339_vm9, %v1644_v11, %v2367_v33  ;;  %v236_v44 = vadd.f32 %v7018_v46, %v204_v10  ;;  %v595_v49 = vmul.f32 %v6631_v28, %v511_v50 }
 0x12f   :  { %6304 = vmatmul.mubr.msk.f32.gmra.mrb[8].mxu0 %vm2439_vm10, %v2368_v57  ;;  %v206_v24 = vmul.f32 %v6618_v18, %v122_v35  ;;  %v1679_v51 = vmax.f32 %v7064_v19, %v1678_v8  ;;  %v1686_v58 = vmax.f32 %v7058_v22, %v1685_v36  ;;  %v1691_v11 = vmax.f32 %v7056_v41, %v1690_v45 }
 0x130   :  { %v7167_v37 = vmax.f32 %v1761_v54, %v1762_v15  ;;  %v432_v50 = vadd.f32 %v400_v26, %v236_v44  ;;  %v627_v40 = vadd.f32 %v595_v49, %v7098_v0  ;;  %6306 = vmatprep.mubr.msk.f32.mxu0 %vm6545_vm1, %v9669_v9  ;;  %v1697_v43 = vrot.slane %v7060_v48, 2  ;;  %v7189_v53 = vpop.permute.xlu1 %518 }
 0x131   :  { %v7174_v19 = vadd.f32 %v7018_v46, %v206_v24  ;;  %v1692_v8 = vrot.slane %v1691_v11, 1  ;;  %v2369_v22 = vsel %vm2327_vm3, %v7043_v32, %v7039_v62  ;;  %v596_v41 = vmul.f32 %v6631_v28, %v515_v20 }
 0x132   :  { %v659_v45 = vmax.f32 %v627_v40, 0.0  ;;  %v1698_v36 = vmax.f32 %v7060_v48, %v1697_v43  ;;  %v2370_v0 = vsel %vm2329_vm4, %v7071_v60, %v2369_v22  ;;  %v401_v55 = vmul.f32 %v6622_v21, %v323_v6 }
 0x133   :  { %v1693_v29 = vmax.f32 %v1691_v11, %v1692_v8  ;;  %v2371_v3 = vsel %vm2331_vm5, %v7078_v38, %v2370_v0  ;;  %v628_v27 = vadd.f32 %v596_v41, %v432_v50  ;;  %v207_v35 = vmul.f32 %v6618_v18, %v126_v31  ;;  %v327_v31 = vpop.permute.xlu0 %326 }
 0x134   :  { %v960_v30 = vcombine.high %v659_v45, %v659_v45  ;;  %v967_v62 = vrot.slane %v659_v45, %v6640_v39  ;;  %v1699_v32 = vrot.slane %v1698_v36, 1  ;;  %v2372_v13 = vsel %vm2333_vm6, %v1679_v51, %v2371_v3  ;;  %v331_v50 = vpop.permute.xlu1 %330 }
 0x135   :  { %v2373_v48 = vsel %vm2335_vm7, %v1686_v58, %v2372_v13  ;;  %v660_v60 = vmax.f32 %v628_v27, 0.0  ;;  %v7193_v6 = vadd.f32 %v401_v55, %v7118_v4  ;;  %v7196_v23 = vadd.f32 %v7018_v46, %v207_v35 }
 0x136   :  { %v974_v38 = vrot.slane %v960_v30, %v6640_v39  ;;  %v975_v7 = vcombine.high %v967_v62, %v967_v62  ;;  %v1764_v12 = vsel %vm1364_vm2, %v967_v62, -inf  ;;  %v1700_v25 = vmax.f32 %v1698_v36, %v1699_v32 }
 0x137   :  { %v1765_v63 = vrot.slane %v1764_v12, 4  ;;  %v2374_v54 = vsel %vm2337_vm8, %v1693_v29, %v2373_v48  ;;  %v976_v56 = vcombine.high %v660_v60, %v660_v60  ;;  %v983_v10 = vrot.slane %v660_v60, %v6640_v39  ;;  %v133_v48 = vpop.permute.xlu0 %132 }
 0x138   :  { %v1771_v33 = vsel %vm1364_vm2, %v975_v7, -inf  ;;  %v1778_v4 = vsel %vm1364_vm2, %v974_v38, -inf  ;;  %v2375_v26 = vsel %vm2339_vm9, %v1700_v25, %v2374_v54  ;;  %v1734_v15 = vrot.slane %v7141_v61, 1  ;;  %v137_v25 = vpop.permute.xlu1 %136 }
 0x139   :  { %v1766_v57 = vmax.f32 %v1764_v12, %v1765_v63  ;;  %v1772_v44 = vrot.slane %v1771_v33, 4  ;;  %v1779_v49 = vrot.slane %v1778_v4, 4  ;;  %6307 = vmatmul.mubr.msk.f32.gmra.mrb[10].mxu0 %vm2439_vm10, %v2375_v26  ;;  %v990_v20 = vrot.slane %v976_v56, %v6640_v39 }
 0x13a   :  { %v991_v24 = vcombine.high %v983_v10, %v983_v10  ;;  %v1785_v51 = vsel %vm1364_vm2, %v983_v10, -inf  ;;  %6309 = vmatprep.mubr.msk.f32.mxu0 %vm6545_vm1, %v9669_v9  ;;  %v1735_v58 = vmax.f32 %v7141_v61, %v1734_v15  ;;  %v1742_v11 = vmax.f32 %v7134_v42, %v1741_v47 }
 0x13b   :  { %v1767_v40 = vrot.slane %v1766_v57, 2  ;;  %v1773_v43 = vmax.f32 %v1771_v33, %v1772_v44  ;;  %v1780_v8 = vmax.f32 %v1778_v4, %v1779_v49  ;;  %v992_v22 = vcombine.high %v990_v20, %v990_v20 }
 0x13c   :  { %v1786_v41 = vrot.slane %v1785_v51, 4  ;;  %v1792_v45 = vsel %vm1364_vm2, %v991_v24, -inf  ;;  %v1799_v36 = vsel %vm1364_vm2, %v990_v20, -inf  ;;  %v1747_v0 = vmax.f32 %v7130_v2, %v1746_v16 }
 0x13d   :  { %v1768_v55 = vmax.f32 %v1766_v57, %v1767_v40  ;;  %v1774_v61 = vrot.slane %v1773_v43, 2  ;;  %v1781_v29 = vrot.slane %v1780_v8, 2  ;;  %v1793_v3 = vrot.slane %v1792_v45, 4 }
 0x13e   :  { %v1787_v27 = vmax.f32 %v1785_v51, %v1786_v41  ;;  %v1800_v42 = vrot.slane %v1799_v36, 4  ;;  %v1806_v47 = vsel %vm1364_vm2, %v992_v22, -inf  ;;  %v1748_v35 = vrot.slane %v1747_v0, 1 }
 0x13f   :  { %v1769_v30 = vrot.slane %v1768_v55, 1  ;;  %v1775_v62 = vmax.f32 %v1773_v43, %v1774_v61  ;;  %v1782_v32 = vmax.f32 %v1780_v8, %v1781_v29  ;;  %v1794_v13 = vmax.f32 %v1792_v45, %v1793_v3  ;;  %v523_v8 = vpop.permute.xlu0 %522 }
 0x140   :  { %v1788_v60 = vrot.slane %v1787_v27, 2  ;;  %v1801_v38 = vmax.f32 %v1799_v36, %v1800_v42  ;;  %v1807_v7 = vrot.slane %v1806_v47, 4  ;;  %v1749_v12 = vmax.f32 %v1747_v0, %v1748_v35 }
 0x141   :  { %v1770_v2 = vmax.f32 %v1768_v55, %v1769_v30  ;;  %v1776_v16 = vrot.slane %v1775_v62, 1  ;;  %v1783_v63 = vrot.slane %v1782_v32, 1  ;;  %v1795_v54 = vrot.slane %v1794_v13, 2 }
 0x142   :  { %v1789_v56 = vmax.f32 %v1787_v27, %v1788_v60  ;;  %v1802_v10 = vrot.slane %v1801_v38, 2  ;;  %v1753_v33 = vrot.slane %v7132_v14, 2  ;;  %v2376_v4 = vsel %vm2327_vm3, %v7139_v34, %v7107_v17 }
 0x143   :  { %v7225_v26 = vmax.f32 %v1775_v62, %v1776_v16  ;;  %v7227_v15 = vmax.f32 %v1782_v32, %v1783_v63  ;;  %v1796_v57 = vmax.f32 %v1794_v13, %v1795_v54  ;;  %v2377_v44 = vsel %vm2329_vm4, %v7146_v59, %v2376_v4 }
 0x144   :  { %v1790_v49 = vrot.slane %v1789_v56, 1  ;;  %v1754_v20 = vmax.f32 %v7132_v14, %v1753_v33  ;;  %v2378_v24 = vsel %vm2331_vm5, %v7148_v5, %v2377_v44  ;;  %v402_v51 = vmul.f32 %v6622_v21, %v327_v31  ;;  %v527_v5 = vpop.permute.xlu1 %526 }
 0x145   :  { %v2379_v40 = vsel %vm2333_vm6, %v1735_v58, %v2378_v24  ;;  %v597_v17 = vmul.f32 %v6631_v28, %v7189_v53  ;;  %v208_v34 = vmul.f32 %v6618_v18, %v133_v48  ;;  %v403_v43 = vmul.f32 %v6622_v21, %v331_v50 }
 0x146   :  { %v7240_v22 = vmax.f32 %v1789_v56, %v1790_v49  ;;  %v1755_v59 = vrot.slane %v1754_v20, 1  ;;  %v2380_v14 = vsel %vm2335_vm7, %v1742_v11, %v2379_v40  ;;  %v434_v41 = vadd.f32 %v402_v51, %v7174_v19 }
 0x147   :  { %v2381_v31 = vsel %vm2337_vm8, %v1749_v12, %v2380_v14  ;;  %v629_v58 = vadd.f32 %v597_v17, %v7193_v6  ;;  %v7247_v45 = vadd.f32 %v7018_v46, %v208_v34  ;;  %v435_v53 = vadd.f32 %v403_v43, %v7196_v23  ;;  %v335_v17 = vpop.permute.xlu0 %334 }
 0x148   :  { %v1756_v36 = vmax.f32 %v1754_v20, %v1755_v59  ;;  %v598_v50 = vmul.f32 %v6631_v28, %v523_v8  ;;  %v209_v0 = vmul.f32 %v6618_v18, %v137_v25  ;;  %v599_v55 = vmul.f32 %v6631_v28, %v527_v5  ;;  %v7270_v60 = vpop.permute.xlu1 %338 }
 0x149   :  { %v661_v11 = vmax.f32 %v629_v58, 0.0  ;;  %v1797_v61 = vrot.slane %v1796_v57, 1  ;;  %v1803_v19 = vmax.f32 %v1801_v38, %v1802_v10  ;;  %v7253_v29 = vmax.f32 %v1806_v47, %v1807_v7 }
 0x14a   :  { %v2382_v3 = vsel %vm2339_vm9, %v1756_v36, %v2381_v31  ;;  %v630_v6 = vadd.f32 %v598_v50, %v434_v41  ;;  %v7257_v27 = vadd.f32 %v7018_v46, %v209_v0  ;;  %v631_v42 = vadd.f32 %v599_v55, %v435_v53 }
 0x14b   :  { %6310 = vmatmul.mubr.msk.f32.gmra.mrb[12].mxu0 %vm2439_vm10, %v2382_v3  ;;  %v993_v23 = vcombine.high %v661_v11, %v661_v11  ;;  %v1000_v35 = vrot.slane %v661_v11, %v6640_v39  ;;  %v7261_v30 = vmax.f32 %v1796_v57, %v1797_v61  ;;  %v1804_v62 = vrot.slane %v1803_v19, 1 }
 0x14c   :  { %v662_v32 = vmax.f32 %v630_v6, 0.0  ;;  %v663_v13 = vmax.f32 %v631_v42, 0.0  ;;  %6312 = vmatprep.mubr.msk.f32.mxu0 %vm6545_vm1, %v9669_v9  ;;  %v1809_v47 = vrot.slane %v7253_v29, 2  ;;  %v7268_v48 = vsel %vm2327_vm3, %v1770_v2, %v7167_v37  ;;  %v7284_v14 = vpop.permute.xlu1 %530 }
 0x14d   :  { %v1007_v38 = vrot.slane %v993_v23, %v6640_v39  ;;  %v1008_v7 = vcombine.high %v1000_v35, %v1000_v35  ;;  %v1813_v12 = vsel %vm1364_vm2, %v1000_v35, -inf  ;;  %v7274_v25 = vmax.f32 %v1803_v19, %v1804_v62 }
 0x14e   :  { %v1814_v16 = vrot.slane %v1813_v12, 4  ;;  %v1010_v63 = vcombine.high %v662_v32, %v662_v32  ;;  %v1017_v54 = vrot.slane %v662_v32, %v6640_v39  ;;  %v1027_v56 = vcombine.high %v663_v13, %v663_v13 }
 0x14f   :  { %v1009_v10 = vcombine.high %v1007_v38, %v1007_v38  ;;  %v1820_v33 = vsel %vm1364_vm2, %v1008_v7, -inf  ;;  %v1827_v37 = vsel %vm1364_vm2, %v1007_v38, -inf  ;;  %v1034_v2 = vrot.slane %v663_v13, %v6640_v39  ;;  %v141_v38 = vpop.permute.xlu0 %140 }
 0x150   :  { %v1815_v4 = vmax.f32 %v1813_v12, %v1814_v16  ;;  %v1821_v57 = vrot.slane %v1820_v33, 4  ;;  %v1828_v44 = vrot.slane %v1827_v37, 4  ;;  %v1024_v49 = vrot.slane %v1010_v63, %v6640_v39 }
 0x151   :  { %v1834_v20 = vsel %vm1364_vm2, %v1009_v10, -inf  ;;  %v1025_v24 = vcombine.high %v1017_v54, %v1017_v54  ;;  %v1841_v51 = vsel %vm1364_vm2, %v1017_v54, -inf  ;;  %v1041_v40 = vrot.slane %v1027_v56, %v6640_v39  ;;  %v145_v54 = vpop.permute.xlu1 %144 }
 0x152   :  { %v1816_v34 = vrot.slane %v1815_v4, 2  ;;  %v1822_v43 = vmax.f32 %v1820_v33, %v1821_v57  ;;  %v1829_v8 = vmax.f32 %v1827_v37, %v1828_v44  ;;  %v1835_v59 = vrot.slane %v1834_v20, 4 }
 0x153   :  { %v1026_v41 = vcombine.high %v1024_v49, %v1024_v49  ;;  %v1842_v5 = vrot.slane %v1841_v51, 4  ;;  %v1848_v31 = vsel %vm1364_vm2, %v1025_v24, -inf  ;;  %v1855_v58 = vsel %vm1364_vm2, %v1024_v49, -inf }
 0x154   :  { %v1817_v53 = vmax.f32 %v1815_v4, %v1816_v34  ;;  %v1823_v36 = vrot.slane %v1822_v43, 2  ;;  %v1830_v50 = vrot.slane %v1829_v8, 2  ;;  %v1836_v0 = vmax.f32 %v1834_v20, %v1835_v59 }
 0x155   :  { %v1843_v55 = vmax.f32 %v1841_v51, %v1842_v5  ;;  %v1849_v11 = vrot.slane %v1848_v31, 4  ;;  %v1856_v61 = vrot.slane %v1855_v58, 4  ;;  %v7289_v19 = vsel %vm1364_vm2, %v1026_v41, -inf }
 0x156   :  { %v1818_v3 = vrot.slane %v1817_v53, 1  ;;  %v1824_v6 = vmax.f32 %v1822_v43, %v1823_v36  ;;  %v1831_v42 = vmax.f32 %v1829_v8, %v1830_v50  ;;  %v1837_v23 = vrot.slane %v1836_v0, 2 }
 0x157   :  { %v1844_v35 = vrot.slane %v1843_v55, 2  ;;  %v1850_v62 = vmax.f32 %v1848_v31, %v1849_v11  ;;  %v7291_v32 = vmax.f32 %v1855_v58, %v1856_v61  ;;  %v1863_v13 = vrot.slane %v7289_v19, 4 }
 0x158   :  { %v7294_v7 = vmax.f32 %v1817_v53, %v1818_v3  ;;  %v1825_v12 = vrot.slane %v1824_v6, 1  ;;  %v1832_v16 = vrot.slane %v1831_v42, 1  ;;  %v7296_v63 = vmax.f32 %v1836_v0, %v1837_v23  ;;  %v535_v53 = vpop.permute.xlu0 %534 }
 0x159   :  { %v1845_v56 = vmax.f32 %v1843_v55, %v1844_v35  ;;  %v1851_v10 = vrot.slane %v1850_v62, 2  ;;  %v1858_v33 = vrot.slane %v7291_v32, 2  ;;  %v1042_v37 = vcombine.high %v1034_v2, %v1034_v2 }
 0x15a   :  { %v7299_v4 = vmax.f32 %v1824_v6, %v1825_v12  ;;  %v7301_v57 = vmax.f32 %v1831_v42, %v1832_v16  ;;  %v1839_v44 = vrot.slane %v7296_v63, 1  ;;  %v1869_v49 = vsel %vm1364_vm2, %v1034_v2, -inf }
 0x15b   :  { %v1846_v20 = vrot.slane %v1845_v56, 1  ;;  %v7305_v24 = vmax.f32 %v1850_v62, %v1851_v10  ;;  %v1870_v51 = vrot.slane %v1869_v49, 4  ;;  %v1876_v34 = vsel %vm1364_vm2, %v1042_v37, -inf }
 0x15c   :  { %v1877_v43 = vrot.slane %v1876_v34, 4  ;;  %v1883_v8 = vsel %vm1364_vm2, %v1041_v40, -inf  ;;  %v1810_v59 = vmax.f32 %v7253_v29, %v1809_v47  ;;  %v2384_v41 = vsel %vm2329_vm4, %v7225_v26, %v7268_v48  ;;  %v152_v47 = vpop.permute.xlu1 %151  ;;  %v343_v16 = vpop.permute.xlu0 %342 }
 0x15d   :  { %v7315_v5 = vmax.f32 %v1845_v56, %v1846_v20  ;;  %v1871_v2 = vmax.f32 %v1869_v49, %v1870_v51  ;;  %v1884_v31 = vrot.slane %v1883_v8, 4  ;;  %v2385_v58 = vsel %vm2331_vm5, %v7227_v15, %v2384_v41 }
 0x15e   :  { %v1878_v36 = vmax.f32 %v1876_v34, %v1877_v43  ;;  %v1811_v50 = vrot.slane %v1810_v59, 1  ;;  %v2386_v40 = vsel %vm2333_vm6, %v7240_v22, %v2385_v58  ;;  %v405_v29 = vmul.f32 %v6622_v21, %v7270_v60 }
 0x15f   :  { %v1872_v0 = vrot.slane %v1871_v2, 2  ;;  %v1885_v55 = vmax.f32 %v1883_v8, %v1884_v31  ;;  %v2387_v26 = vsel %vm2335_vm7, %v7261_v30, %v2386_v40  ;;  %v404_v48 = vmul.f32 %v6622_v21, %v335_v17 }
 0x160   :  { %v1879_v11 = vrot.slane %v1878_v36, 2  ;;  %v1812_v61 = vmax.f32 %v1810_v59, %v1811_v50  ;;  %v2388_v15 = vsel %vm2337_vm8, %v7274_v25, %v2387_v26  ;;  %v437_v3 = vadd.f32 %v405_v29, %v7257_v27 }
 0x161   :  { %v1873_v6 = vmax.f32 %v1871_v2, %v1872_v0  ;;  %v1886_v22 = vrot.slane %v1885_v55, 2  ;;  %v436_v42 = vadd.f32 %v404_v48, %v7247_v45  ;;  %v600_v60 = vmul.f32 %v6631_v28, %v7284_v14 }
 0x162   :  { %v1880_v23 = vmax.f32 %v1878_v36, %v1879_v11  ;;  %v2389_v35 = vsel %vm2339_vm9, %v1812_v61, %v2388_v15  ;;  %v210_v30 = vmul.f32 %v6618_v18, %v141_v38  ;;  %v211_v17 = vmul.f32 %v6618_v18, %v145_v54  ;;  %v347_v38 = vpop.permute.xlu1 %346 }
 0x163   :  { %v1874_v62 = vrot.slane %v1873_v6, 1  ;;  %v1887_v12 = vmax.f32 %v1885_v55, %v1886_v22  ;;  %6313 = vmatmul.mubr.msk.f32.gmra.mrb[14].mxu0 %vm2439_vm10, %v2389_v35  ;;  %v632_v25 = vadd.f32 %v600_v60, %v436_v42  ;;  %v601_v27 = vmul.f32 %v6631_v28, %v535_v53  ;;  %v156_v55 = vpop.permute.xlu0 %155 }
 0x164   :  { %v1881_v56 = vrot.slane %v1880_v23, 1  ;;  %v242_v45 = vadd.f32 %v7018_v46, %v210_v30  ;;  %v243_v14 = vadd.f32 %v7018_v46, %v211_v17  ;;  %v212_v10 = vmul.f32 %v6618_v18, %v152_v47  ;;  %6315 = vmatprep.mubr.msk.f32.mxu0 %vm6545_vm1, %v9669_v9 }
 0x165   :  { %v7342_v54 = vmax.f32 %v1873_v6, %v1874_v62  ;;  %v1888_v37 = vrot.slane %v1887_v12, 1  ;;  %v664_v49 = vmax.f32 %v632_v25, 0.0  ;;  %v633_v20 = vadd.f32 %v601_v27, %v437_v3 }
 0x166   :  { %v7344_v51 = vmax.f32 %v1880_v23, %v1881_v56  ;;  %v7347_v34 = vadd.f32 %v7018_v46, %v212_v10  ;;  %v406_v43 = vmul.f32 %v6622_v21, %v343_v16  ;;  %v407_v8 = vmul.f32 %v6622_v21, %v347_v38 }
 0x167   :  { %v7351_v59 = vmax.f32 %v1887_v12, %v1888_v37  ;;  %v1043_v41 = vcombine.high %v664_v49, %v664_v49  ;;  %v1050_v2 = vrot.slane %v664_v49, %v6640_v39  ;;  %v665_v31 = vmax.f32 %v633_v20, 0.0 }
 0x168   :  { %v7354_v58 = vadd.f32 %v406_v43, %v242_v45  ;;  %v7356_v53 = vadd.f32 %v407_v8, %v243_v14  ;;  %v7359_v36 = vmax.f32 %v7296_v63, %v1839_v44  ;;  %v1853_v50 = vrot.slane %v7305_v24, 1  ;;  %v351_v44 = vpop.permute.xlu1 %350  ;;  %v539_v45 = vpop.permute.xlu0 %538 }
 0x169   :  { %v1057_v40 = vrot.slane %v1043_v41, %v6640_v39  ;;  %v1058_v29 = vcombine.high %v1050_v2, %v1050_v2  ;;  %v1890_v47 = vsel %vm1364_vm2, %v1050_v2, -inf  ;;  %v1060_v0 = vcombine.high %v665_v31, %v665_v31 }
 0x16a   :  { %v1891_v26 = vrot.slane %v1890_v47, 4  ;;  %v1067_v48 = vrot.slane %v665_v31, %v6640_v39  ;;  %v7366_v11 = vmax.f32 %v7305_v24, %v1853_v50  ;;  %v1859_v63 = vmax.f32 %v7291_v32, %v1858_v33 }
 0x16b   :  { %v1059_v61 = vcombine.high %v1057_v40, %v1057_v40  ;;  %v1897_v15 = vsel %vm1364_vm2, %v1058_v29, -inf  ;;  %v1904_v3 = vsel %vm1364_vm2, %v1057_v40, -inf  ;;  %v1074_v6 = vrot.slane %v1060_v0, %v6640_v39 }
 0x16c   :  { %v1892_v22 = vmax.f32 %v1890_v47, %v1891_v26  ;;  %v1898_v42 = vrot.slane %v1897_v15, 4  ;;  %v1905_v60 = vrot.slane %v1904_v3, 4  ;;  %v1075_v23 = vcombine.high %v1067_v48, %v1067_v48  ;;  %v543_v49 = vpop.permute.xlu1 %542 }
 0x16d   :  { %v1911_v35 = vsel %vm1364_vm2, %v1059_v61, -inf  ;;  %v1076_v24 = vcombine.high %v1074_v6, %v1074_v6  ;;  %v1918_v30 = vsel %vm1364_vm2, %v1067_v48, -inf  ;;  %v1932_v17 = vsel %vm1364_vm2, %v1074_v6, -inf }
 0x16e   :  { %v1893_v32 = vrot.slane %v1892_v22, 2  ;;  %v1899_v33 = vmax.f32 %v1897_v15, %v1898_v42  ;;  %v1906_v62 = vmax.f32 %v1904_v3, %v1905_v60  ;;  %v1912_v12 = vrot.slane %v1911_v35, 4 }
 0x16f   :  { %v1919_v25 = vrot.slane %v1918_v30, 4  ;;  %v1925_v27 = vsel %vm1364_vm2, %v1075_v23, -inf  ;;  %v1933_v16 = vrot.slane %v1932_v17, 4  ;;  %v1939_v56 = vsel %vm1364_vm2, %v1076_v24, -inf  ;;  %v355_v23 = vpop.permute.xlu0 %354 }
 0x170   :  { %v1894_v14 = vmax.f32 %v1892_v22, %v1893_v32  ;;  %v1900_v10 = vrot.slane %v1899_v33, 2  ;;  %v1907_v38 = vrot.slane %v1906_v62, 2  ;;  %v7379_v37 = vmax.f32 %v1911_v35, %v1912_v12 }
 0x171   :  { %v7381_v20 = vmax.f32 %v1918_v30, %v1919_v25  ;;  %v1926_v43 = vrot.slane %v1925_v27, 4  ;;  %v1934_v8 = vmax.f32 %v1932_v17, %v1933_v16  ;;  %v1940_v41 = vrot.slane %v1939_v56, 4  ;;  %v547_v17 = vpop.permute.xlu1 %546 }
 0x172   :  { %v1895_v2 = vrot.slane %v1894_v14, 1  ;;  %v1901_v31 = vmax.f32 %v1899_v33, %v1900_v10  ;;  %v7383_v50 = vmax.f32 %v1906_v62, %v1907_v38  ;;  %v1860_v40 = vrot.slane %v1859_v63, 1 }
 0x173   :  { %v1921_v29 = vrot.slane %v7381_v20, 2  ;;  %v1927_v47 = vmax.f32 %v1925_v27, %v1926_v43  ;;  %v1935_v0 = vrot.slane %v1934_v8, 2  ;;  %v1941_v26 = vmax.f32 %v1939_v56, %v1940_v41  ;;  %v160_v10 = vpop.permute.xlu0 %159 }
 0x174   :  { %v7386_v48 = vmax.f32 %v1894_v14, %v1895_v2  ;;  %v1902_v61 = vrot.slane %v1901_v31, 1  ;;  %v1861_v15 = vmax.f32 %v1859_v63, %v1860_v40  ;;  %v1864_v3 = vmax.f32 %v7289_v19, %v1863_v13 }
 0x175   :  { %v1928_v6 = vrot.slane %v1927_v47, 2  ;;  %v1936_v22 = vmax.f32 %v1934_v8, %v1935_v0  ;;  %v1942_v42 = vrot.slane %v1941_v26, 2  ;;  %v2390_v60 = vsel %vm2327_vm3, %v7299_v4, %v7294_v7  ;;  %v164_v41 = vpop.permute.xlu1 %163 }
 0x176   :  { %v1865_v35 = vrot.slane %v1864_v3, 2  ;;  %v2391_v24 = vsel %vm2329_vm4, %v7301_v57, %v2390_v60  ;;  %v213_v30 = vmul.f32 %v6618_v18, %v156_v55  ;;  %v408_v63 = vmul.f32 %v6622_v21, %v351_v44 }
 0x177   :  { %v1929_v32 = vmax.f32 %v1927_v47, %v1928_v6  ;;  %v1937_v33 = vrot.slane %v1936_v22, 1  ;;  %v1943_v19 = vmax.f32 %v1941_v26, %v1942_v42  ;;  %v2392_v13 = vsel %vm2331_vm5, %v7359_v36, %v2391_v24 }
 0x178   :  { %v1866_v62 = vmax.f32 %v1864_v3, %v1865_v35  ;;  %v2393_v7 = vsel %vm2333_vm6, %v7315_v5, %v2392_v13  ;;  %v245_v4 = vadd.f32 %v7018_v46, %v213_v30  ;;  %v440_v12 = vadd.f32 %v408_v63, %v7347_v34 }
 0x179   :  { %v1930_v57 = vrot.slane %v1929_v32, 1  ;;  %v7404_v25 = vmax.f32 %v1936_v22, %v1937_v33  ;;  %v1944_v55 = vrot.slane %v1943_v19, 1  ;;  %v2394_v44 = vsel %vm2335_vm7, %v7366_v11, %v2393_v7 }
 0x17a   :  { %v1867_v27 = vrot.slane %v1866_v62, 1  ;;  %v2395_v16 = vsel %vm2337_vm8, %v1861_v15, %v2394_v44  ;;  %v602_v36 = vmul.f32 %v6631_v28, %v539_v45  ;;  %v603_v56 = vmul.f32 %v6631_v28, %v543_v49  ;;  %v7426_v15 = vld [vmem:[#allocation2 + $0x8] ss:$0 sm:$0xff] }
 0x17b   :  { %v7411_v14 = vmax.f32 %v1929_v32, %v1930_v57  ;;  %v7413_v5 = vmax.f32 %v1943_v19, %v1944_v55  ;;  %v409_v46 = vmul.f32 %v6622_v21, %v355_v23  ;;  %v604_v34 = vmul.f32 %v6631_v28, %v547_v17  ;;  %v7455_v57 = vpop.permute.xlu0 %550  ;;  %v7457_v55 = vpop.permute.xlu1 %170 }
 0x17c   :  { %v1868_v38 = vmax.f32 %v1866_v62, %v1867_v27  ;;  %v634_v43 = vadd.f32 %v602_v36, %v7354_v58  ;;  %v635_v11 = vadd.f32 %v603_v56, %v7356_v53  ;;  %v214_v8 = vmul.f32 %v6618_v18, %v160_v10 }
 0x17d   :  { %v7420_v45 = vadd.f32 %v409_v46, %v245_v4  ;;  %v636_v49 = vadd.f32 %v604_v34, %v440_v12  ;;  %v215_v2 = vmul.f32 %v6618_v18, %v164_v41  ;;  %v7423_v40 = vmax.f32 %v1901_v31, %v1902_v61 }
 0x17e   :  { %v2396_v47 = vsel %vm2339_vm9, %v1868_v38, %v2395_v16  ;;  %v666_v0 = vmax.f32 %v634_v43, 0.0  ;;  %v667_v26 = vmax.f32 %v635_v11, 0.0  ;;  %v7429_v58 = vadd.f32 %v7426_v15, %v214_v8 }
 0x17f   :  { %6316 = vmatmul.mubr.msk.f32.gmra.mrb[16].mxu0 %vm2439_vm10, %v2396_v47  ;;  %v668_v53 = vmax.f32 %v636_v49, 0.0  ;;  %v7433_v3 = vadd.f32 %v7426_v15, %v215_v2  ;;  %v1909_v6 = vrot.slane %v7383_v50, 1  ;;  %v1914_v31 = vrot.slane %v7379_v37, 2 }
 0x180   :  { %v1077_v61 = vcombine.high %v666_v0, %v666_v0  ;;  %v1084_v22 = vrot.slane %v666_v0, %v6640_v39  ;;  %v1094_v42 = vcombine.high %v667_v26, %v667_v26  ;;  %v1101_v60 = vrot.slane %v667_v26, %v6640_v39  ;;  %6318 = vmatprep.mubr.msk.f32.mxu0 %vm6545_vm1, %v9669_v9 }
 0x181   :  { %v1110_v23 = vcombine.high %v668_v53, %v668_v53  ;;  %v1117_v35 = vrot.slane %v668_v53, %v6640_v39  ;;  %v7443_v24 = vmax.f32 %v7383_v50, %v1909_v6  ;;  %v7446_v30 = vmax.f32 %v7379_v37, %v1914_v31 }
 0x182   :  { %v1091_v63 = vrot.slane %v1077_v61, %v6640_v39  ;;  %v1092_v17 = vcombine.high %v1084_v22, %v1084_v22  ;;  %v1946_v32 = vsel %vm1364_vm2, %v1084_v22, -inf  ;;  %v1108_v33 = vrot.slane %v1094_v42, %v6640_v39 }
 0x183   :  { %v1947_v19 = vrot.slane %v1946_v32, 4  ;;  %v1109_v13 = vcombine.high %v1101_v60, %v1101_v60  ;;  %v1974_v62 = vsel %vm1364_vm2, %v1101_v60, -inf  ;;  %v1124_v7 = vrot.slane %v1110_v23, %v6640_v39  ;;  %v359_v60 = vpop.permute.xlu0 %358  ;;  %v363_v23 = vpop.permute.xlu1 %362 }
 0x184   :  { %v1093_v4 = vcombine.high %v1091_v63, %v1091_v63  ;;  %v1953_v50 = vsel %vm1364_vm2, %v1092_v17, -inf  ;;  %v1960_v12 = vsel %vm1364_vm2, %v1091_v63, -inf  ;;  %v1975_v37 = vrot.slane %v1974_v62, 4 }
 0x185   :  { %v1948_v44 = vmax.f32 %v1946_v32, %v1947_v19  ;;  %v1954_v27 = vrot.slane %v1953_v50, 4  ;;  %v1961_v16 = vrot.slane %v1960_v12, 4  ;;  %v1981_v36 = vsel %vm1364_vm2, %v1109_v13, -inf }
 0x186   :  { %v1967_v56 = vsel %vm1364_vm2, %v1093_v4, -inf  ;;  %v7461_v46 = vmax.f32 %v1974_v62, %v1975_v37  ;;  %v1982_v34 = vrot.slane %v1981_v36, 4  ;;  %v1988_v10 = vsel %vm1364_vm2, %v1108_v33, -inf }
 0x187   :  { %v1949_v38 = vrot.slane %v1948_v44, 2  ;;  %v1955_v43 = vmax.f32 %v1953_v50, %v1954_v27  ;;  %v1962_v11 = vmax.f32 %v1960_v12, %v1961_v16  ;;  %v1968_v8 = vrot.slane %v1967_v56, 4 }
 0x188   :  { %v1977_v41 = vrot.slane %v7461_v46, 2  ;;  %v1983_v49 = vmax.f32 %v1981_v36, %v1982_v34  ;;  %v1989_v2 = vrot.slane %v1988_v10, 4  ;;  %v1125_v47 = vcombine.high %v1117_v35, %v1117_v35 }
 0x189   :  { %v1950_v0 = vmax.f32 %v1948_v44, %v1949_v38  ;;  %v1956_v26 = vrot.slane %v1955_v43, 2  ;;  %v1963_v53 = vrot.slane %v1962_v11, 2  ;;  %v7465_v6 = vmax.f32 %v1967_v56, %v1968_v8 }
 0x18a   :  { %v1984_v31 = vrot.slane %v1983_v49, 2  ;;  %v1990_v61 = vmax.f32 %v1988_v10, %v1989_v2  ;;  %v1126_v22 = vcombine.high %v1124_v7, %v1124_v7  ;;  %v1995_v42 = vsel %vm1364_vm2, %v1117_v35, -inf  ;;  %v367_v2 = vpop.permute.xlu1 %366 }
 0x18b   :  { %v1951_v63 = vrot.slane %v1950_v0, 1  ;;  %v7468_v17 = vmax.f32 %v1955_v43, %v1956_v26  ;;  %v7470_v32 = vmax.f32 %v1962_v11, %v1963_v53  ;;  %v1996_v33 = vrot.slane %v1995_v42, 4 }
 0x18c   :  { %v1985_v19 = vmax.f32 %v1983_v49, %v1984_v31  ;;  %v1991_v13 = vrot.slane %v1990_v61, 2  ;;  %v2002_v62 = vsel %vm1364_vm2, %v1125_v47, -inf  ;;  %v2009_v4 = vsel %vm1364_vm2, %v1124_v7, -inf  ;;  %v175_v49 = vpop.permute.xlu0 %174 }
 0x18d   :  { %v7474_v50 = vmax.f32 %v1950_v0, %v1951_v63  ;;  %v1958_v12 = vrot.slane %v7468_v17, 1  ;;  %v1997_v37 = vmax.f32 %v1995_v42, %v1996_v33  ;;  %v2003_v35 = vrot.slane %v2002_v62, 4 }
 0x18e   :  { %v1986_v44 = vrot.slane %v1985_v19, 1  ;;  %v1992_v27 = vmax.f32 %v1990_v61, %v1991_v13  ;;  %v2010_v16 = vrot.slane %v2009_v4, 4  ;;  %v2016_v36 = vsel %vm1364_vm2, %v1126_v22, -inf }
 0x18f   :  { %v1998_v56 = vrot.slane %v1997_v37, 2  ;;  %v2004_v34 = vmax.f32 %v2002_v62, %v2003_v35  ;;  %v2017_v10 = vrot.slane %v2016_v36, 4  ;;  %v1916_v38 = vrot.slane %v7446_v30, 1 }
 0x190   :  { %v7479_v43 = vmax.f32 %v1985_v19, %v1986_v44  ;;  %v1993_v11 = vrot.slane %v1992_v27, 1  ;;  %v2011_v7 = vmax.f32 %v2009_v4, %v2010_v16  ;;  %v1922_v8 = vmax.f32 %v7381_v20, %v1921_v29 }
 0x191   :  { %v1999_v47 = vmax.f32 %v1997_v37, %v1998_v56  ;;  %v2005_v0 = vrot.slane %v2004_v34, 2  ;;  %v7484_v26 = vmax.f32 %v2016_v36, %v2017_v10  ;;  %v1917_v53 = vmax.f32 %v7446_v30, %v1916_v38 }
 0x192   :  { %v7487_v31 = vmax.f32 %v1992_v27, %v1993_v11  ;;  %v2012_v61 = vrot.slane %v2011_v7, 2  ;;  %v1923_v22 = vrot.slane %v1922_v8, 1  ;;  %v2397_v42 = vsel %vm2327_vm3, %v7344_v51, %v7342_v54  ;;  %v555_v27 = vpop.permute.xlu0 %554 }
 0x193   :  { %v2000_v63 = vrot.slane %v1999_v47, 1  ;;  %v2006_v33 = vmax.f32 %v2004_v34, %v2005_v0  ;;  %v2019_v20 = vrot.slane %v7484_v26, 2  ;;  %v2398_v29 = vsel %vm2329_vm4, %v7351_v59, %v2397_v42 }
 0x194   :  { %v7495_v19 = vmax.f32 %v2011_v7, %v2012_v61  ;;  %v1924_v13 = vmax.f32 %v1922_v8, %v1923_v22  ;;  %v2399_v30 = vsel %vm2331_vm5, %v7386_v48, %v2398_v29  ;;  %v605_v62 = vmul.f32 %v6631_v28, %v7455_v57  ;;  %v559_v57 = vpop.permute.xlu1 %558 }
 0x195   :  { %v7501_v4 = vmax.f32 %v1999_v47, %v2000_v63  ;;  %v2007_v37 = vrot.slane %v2006_v33, 1  ;;  %v2400_v54 = vsel %vm2333_vm6, %v7423_v40, %v2399_v30  ;;  %v216_v51 = vmul.f32 %v6618_v18, %v7457_v55 }
 0x196   :  { %v2014_v59 = vrot.slane %v7495_v19, 1  ;;  %v2401_v35 = vsel %vm2335_vm7, %v7443_v24, %v2400_v54  ;;  %v637_v44 = vadd.f32 %v605_v62, %v7420_v45  ;;  %v410_v48 = vmul.f32 %v6622_v21, %v359_v60 }
 0x197   :  { %v7512_v16 = vmax.f32 %v2006_v33, %v2007_v37  ;;  %v2402_v36 = vsel %vm2337_vm8, %v1917_v53, %v2401_v35  ;;  %v248_v40 = vadd.f32 %v7426_v15, %v216_v51  ;;  %v411_v56 = vmul.f32 %v6622_v21, %v363_v23 }
 0x198   :  { %v2403_v55 = vsel %vm2339_vm9, %v1924_v13, %v2402_v36  ;;  %v669_v34 = vmax.f32 %v637_v44, 0.0  ;;  %v442_v10 = vadd.f32 %v410_v48, %v7429_v58  ;;  %v217_v24 = vmul.f32 %v6618_v18, %v175_v49 }
 0x199   :  { %6319 = vmatmul.mubr.msk.f32.gmra.mrb[18].mxu0 %vm2439_vm10, %v2403_v55  ;;  %v443_v45 = vadd.f32 %v411_v56, %v7433_v3  ;;  %v412_v60 = vmul.f32 %v6622_v21, %v367_v2  ;;  %v606_v38 = vmul.f32 %v6631_v28, %v555_v27  ;;  %v607_v11 = vmul.f32 %v6631_v28, %v559_v57 }
 0x19a   :  { %v1127_v7 = vcombine.high %v669_v34, %v669_v34  ;;  %v1134_v23 = vrot.slane %v669_v34, %v6640_v39  ;;  %v7527_v8 = vadd.f32 %v7426_v15, %v217_v24  ;;  %6321 = vmatprep.mubr.msk.f32.mxu0 %vm6545_vm1, %v9669_v9  ;;  %v7532_v58 = vmax.f32 %v7468_v17, %v1958_v12 }
 0x19b   :  { %v7534_v49 = vadd.f32 %v412_v60, %v248_v40  ;;  %v638_v3 = vadd.f32 %v606_v38, %v442_v10  ;;  %v639_v2 = vadd.f32 %v607_v11, %v443_v45  ;;  %v1965_v47 = vrot.slane %v7470_v32, 1 }
 0x19c   :  { %v1141_v0 = vrot.slane %v1127_v7, %v6640_v39  ;;  %v1142_v53 = vcombine.high %v1134_v23, %v1134_v23  ;;  %v2023_v61 = vsel %vm1364_vm2, %v1134_v23, -inf  ;;  %v1970_v22 = vrot.slane %v7465_v6, 2 }
 0x19d   :  { %v2024_v42 = vrot.slane %v2023_v61, 4  ;;  %v670_v63 = vmax.f32 %v638_v3, 0.0  ;;  %v671_v33 = vmax.f32 %v639_v2, 0.0  ;;  %v7541_v29 = vmax.f32 %v7470_v32, %v1965_v47 }
 0x19e   :  { %v1143_v17 = vcombine.high %v1141_v0, %v1141_v0  ;;  %v2030_v12 = vsel %vm1364_vm2, %v1142_v53, -inf  ;;  %v2037_v13 = vsel %vm1364_vm2, %v1141_v0, -inf  ;;  %v7546_v30 = vmax.f32 %v7465_v6, %v1970_v22 }
 0x19f   :  { %v2025_v62 = vmax.f32 %v2023_v61, %v2024_v42  ;;  %v2031_v37 = vrot.slane %v2030_v12, 4  ;;  %v2038_v54 = vrot.slane %v2037_v13, 4  ;;  %v1144_v51 = vcombine.high %v670_v63, %v670_v63 }
 0x1a0   :  { %v2044_v35 = vsel %vm1364_vm2, %v1143_v17, -inf  ;;  %v1151_v44 = vrot.slane %v670_v63, %v6640_v39  ;;  %v1161_v48 = vcombine.high %v671_v33, %v671_v33  ;;  %v1168_v32 = vrot.slane %v671_v33, %v6640_v39  ;;  %v371_v63 = vpop.permute.xlu0 %370 }
 0x1a1   :  { %v2026_v27 = vrot.slane %v2025_v62, 2  ;;  %v7551_v57 = vmax.f32 %v2030_v12, %v2031_v37  ;;  %v2039_v36 = vmax.f32 %v2037_v13, %v2038_v54  ;;  %v2045_v40 = vrot.slane %v2044_v35, 4 }
 0x1a2   :  { %v1158_v56 = vrot.slane %v1144_v51, %v6640_v39  ;;  %v1159_v6 = vcombine.high %v1151_v44, %v1151_v44  ;;  %v2051_v55 = vsel %vm1364_vm2, %v1151_v44, -inf  ;;  %v1175_v34 = vrot.slane %v1161_v48, %v6640_v39 }
 0x1a3   :  { %v7556_v10 = vmax.f32 %v2025_v62, %v2026_v27  ;;  %v2040_v24 = vrot.slane %v2039_v36, 2  ;;  %v2046_v45 = vmax.f32 %v2044_v35, %v2045_v40  ;;  %v2052_v60 = vrot.slane %v2051_v55, 4 }
 0x1a4   :  { %v1160_v38 = vcombine.high %v1158_v56, %v1158_v56  ;;  %v2058_v11 = vsel %vm1364_vm2, %v1159_v6, -inf  ;;  %v2065_v7 = vsel %vm1364_vm2, %v1158_v56, -inf  ;;  %v1176_v23 = vcombine.high %v1168_v32, %v1168_v32 }
 0x1a5   :  { %v2041_v3 = vmax.f32 %v2039_v36, %v2040_v24  ;;  %v2047_v2 = vrot.slane %v2046_v45, 2  ;;  %v2053_v47 = vmax.f32 %v2051_v55, %v2052_v60  ;;  %v2059_v0 = vrot.slane %v2058_v11, 4 }
 0x1a6   :  { %v2066_v53 = vrot.slane %v2065_v7, 4  ;;  %v2072_v61 = vsel %vm1364_vm2, %v1160_v38, -inf  ;;  %v2079_v22 = vsel %vm1364_vm2, %v1168_v32, -inf  ;;  %v2086_v42 = vsel %vm1364_vm2, %v1176_v23, -inf }
 0x1a7   :  { %v2042_v33 = vrot.slane %v2041_v3, 1  ;;  %v2048_v17 = vmax.f32 %v2046_v45, %v2047_v2  ;;  %v2054_v12 = vrot.slane %v2053_v47, 2  ;;  %v2060_v13 = vmax.f32 %v2058_v11, %v2059_v0  ;;  %v179_v2 = vpop.permute.xlu0 %178 }
 0x1a8   :  { %v2067_v62 = vmax.f32 %v2065_v7, %v2066_v53  ;;  %v2073_v37 = vrot.slane %v2072_v61, 4  ;;  %v2080_v54 = vrot.slane %v2079_v22, 4  ;;  %v2087_v51 = vrot.slane %v2086_v42, 4 }
 0x1a9   :  { %v7563_v35 = vmax.f32 %v2041_v3, %v2042_v33  ;;  %v2049_v44 = vrot.slane %v2048_v17, 1  ;;  %v2055_v48 = vmax.f32 %v2053_v47, %v2054_v12  ;;  %v2061_v27 = vrot.slane %v2060_v13, 2  ;;  %v7565_v36 = vpop.f32.mrb[0].mxu0 }
 0x1aa   :  { %v2068_v40 = vrot.slane %v2067_v62, 2  ;;  %v7567_v32 = vmax.f32 %v2072_v61, %v2073_v37  ;;  %v2081_v56 = vmax.f32 %v2079_v22, %v2080_v54  ;;  %v7569_v6 = vmax.f32 %v2086_v42, %v2087_v51  ;;  %v6293_v55 = vpop.f32.mrb[1].mxu0  ;;  %v563_v22 = vpop.permute.xlu1 %562 }
 0x1ab   :  { %v7571_v24 = vmax.f32 %v2048_v17, %v2049_v44  ;;  %v2056_v45 = vrot.slane %v2055_v48, 1  ;;  %v2062_v60 = vmax.f32 %v2060_v13, %v2061_v27  ;;  %v2093_v38 = vsel %vm1364_vm2, %v1175_v34, -inf  ;;  %v567_v27 = vpop.permute.xlu0 %566 }
 0x1ac   :  { %v7574_v11 = vmax.f32 %v2067_v62, %v2068_v40  ;;  %v2075_v7 = vrot.slane %v7567_v32, 2  ;;  %v2082_v23 = vrot.slane %v2081_v56, 2  ;;  %v2094_v3 = vrot.slane %v2093_v38, 4 }
 0x1ad   :  { %v7577_v47 = vmax.f32 %v2055_v48, %v2056_v45  ;;  %v2063_v0 = vrot.slane %v2062_v60, 1  ;;  %v1972_v53 = vrot.slane %v7546_v30, 1  ;;  %v1978_v61 = vmax.f32 %v7461_v46, %v1977_v41 }
 0x1ae   :  { %v2070_v42 = vrot.slane %v7574_v11, 1  ;;  %v7584_v34 = vmax.f32 %v2081_v56, %v2082_v23  ;;  %v2095_v33 = vmax.f32 %v2093_v38, %v2094_v3  ;;  %v2404_v17 = vsel %vm2327_vm3, %v7404_v25, %v7411_v14 }
 0x1af   :  { %v7589_v12 = vmax.f32 %v2062_v60, %v2063_v0  ;;  %v1973_v13 = vmax.f32 %v7546_v30, %v1972_v53  ;;  %v1979_v62 = vrot.slane %v1978_v61, 1  ;;  %v2405_v37 = vsel %vm2329_vm4, %v7413_v5, %v2404_v17 }
 0x1b0   :  { %v2096_v54 = vrot.slane %v2095_v33, 2  ;;  %v2406_v46 = vsel %vm2331_vm5, %v7474_v50, %v2405_v37  ;;  %v413_v41 = vmul.f32 %v6622_v21, %v371_v63  ;;  %v608_v51 = vmul.f32 %v6631_v28, %v563_v22 }
 0x1b1   :  { %v1980_v44 = vmax.f32 %v1978_v61, %v1979_v62  ;;  %v2407_v25 = vsel %vm2333_vm6, %v7532_v58, %v2406_v46  ;;  %v218_v14 = vmul.f32 %v6618_v18, %v179_v2  ;;  %v2015_v30 = vmax.f32 %v7495_v19, %v2014_v59  ;;  %v375_v2 = vpop.permute.xlu1 %374 }
 0x1b2   :  { %v2097_v48 = vmax.f32 %v2095_v33, %v2096_v54  ;;  %v2408_v5 = vsel %vm2335_vm7, %v7541_v29, %v2407_v25  ;;  %v445_v50 = vadd.f32 %v413_v41, %v7527_v8  ;;  %v640_v63 = vadd.f32 %v608_v51, %v7534_v49 }
 0x1b3   :  { %v2409_v40 = vsel %vm2337_vm8, %v1973_v13, %v2408_v5  ;;  %v250_v56 = vadd.f32 %v7426_v15, %v218_v14  ;;  %v2020_v58 = vmax.f32 %v7484_v26, %v2019_v20  ;;  %v2028_v55 = vrot.slane %v7556_v10, 1 }
 0x1b4   :  { %v2098_v19 = vrot.slane %v2097_v48, 1  ;;  %v2410_v59 = vsel %vm2339_vm9, %v1980_v44, %v2409_v40  ;;  %v672_v45 = vmax.f32 %v640_v63, 0.0  ;;  %v2033_v29 = vrot.slane %v7551_v57, 2 }
 0x1b5   :  { %6322 = vmatmul.mubr.msk.f32.gmra.mrb[20].mxu0 %vm2439_vm10, %v2410_v59  ;;  %v2021_v8 = vrot.slane %v2020_v58, 1  ;;  %v2029_v49 = vmax.f32 %v7556_v10, %v2028_v55  ;;  %v2411_v60 = vsel %vm2327_vm3, %v7487_v31, %v7479_v43  ;;  %v609_v38 = vmul.f32 %v6631_v28, %v567_v27 }
 0x1b6   :  { %v7622_v26 = vmax.f32 %v2097_v48, %v2098_v19  ;;  %v1177_v20 = vcombine.high %v672_v45, %v672_v45  ;;  %v1184_v23 = vrot.slane %v672_v45, %v6640_v39  ;;  %6324 = vmatprep.mubr.msk.f32.mxu0 %vm6545_vm1, %v9669_v9  ;;  %v2034_v3 = vmax.f32 %v7551_v57, %v2033_v29 }
 0x1b7   :  { %v2022_v0 = vmax.f32 %v2020_v58, %v2021_v8  ;;  %v2412_v10 = vsel %vm2329_vm4, %v7501_v4, %v2411_v60  ;;  %v641_v53 = vadd.f32 %v609_v38, %v445_v50  ;;  %v414_v43 = vmul.f32 %v6622_v21, %v375_v2 }
 0x1b8   :  { %v1191_v31 = vrot.slane %v1177_v20, %v6640_v39  ;;  %v1192_v61 = vcombine.high %v1184_v23, %v1184_v23  ;;  %v2100_v22 = vsel %vm1364_vm2, %v1184_v23, -inf  ;;  %v2035_v33 = vrot.slane %v2034_v3, 1  ;;  %v183_v23 = vpop.permute.xlu0 %182 }
 0x1b9   :  { %v2101_v17 = vrot.slane %v2100_v22, 4  ;;  %v2413_v13 = vsel %vm2331_vm5, %v7512_v16, %v2412_v10  ;;  %v673_v62 = vmax.f32 %v641_v53, 0.0  ;;  %v446_v57 = vadd.f32 %v414_v43, %v250_v56 }
 0x1ba   :  { %v1193_v37 = vcombine.high %v1191_v31, %v1191_v31  ;;  %v2107_v54 = vsel %vm1364_vm2, %v1192_v61, -inf  ;;  %v2114_v4 = vsel %vm1364_vm2, %v1191_v31, -inf  ;;  %v2036_v46 = vmax.f32 %v2034_v3, %v2035_v33  ;;  %v571_v61 = vpop.permute.xlu1 %570 }
 0x1bb   :  { %v2102_v41 = vmax.f32 %v2100_v22, %v2101_v17  ;;  %v2108_v51 = vrot.slane %v2107_v54, 4  ;;  %v2115_v44 = vrot.slane %v2114_v4, 4  ;;  %v2414_v25 = vsel %vm2333_vm6, %v2015_v30, %v2413_v13 }
 0x1bc   :  { %v2121_v14 = vsel %vm1364_vm2, %v1193_v37, -inf  ;;  %v2415_v48 = vsel %vm2335_vm7, %v2022_v0, %v2414_v25  ;;  %v1194_v5 = vcombine.high %v673_v62, %v673_v62  ;;  %v1201_v16 = vrot.slane %v673_v62, %v6640_v39 }
 0x1bd   :  { %v2103_v50 = vrot.slane %v2102_v41, 2  ;;  %v2109_v63 = vmax.f32 %v2107_v54, %v2108_v51  ;;  %v2116_v27 = vmax.f32 %v2114_v4, %v2115_v44  ;;  %v2122_v40 = vrot.slane %v2121_v14, 4 }
 0x1be   :  { %v2416_v56 = vsel %vm2337_vm8, %v2029_v49, %v2415_v48  ;;  %v1208_v58 = vrot.slane %v1194_v5, %v6640_v39  ;;  %v1209_v55 = vcombine.high %v1201_v16, %v1201_v16  ;;  %v2128_v19 = vsel %vm1364_vm2, %v1201_v16, -inf }
 0x1bf   :  { %v2104_v59 = vmax.f32 %v2102_v41, %v2103_v50  ;;  %v2110_v30 = vrot.slane %v2109_v63, 2  ;;  %v2117_v45 = vrot.slane %v2116_v27, 2  ;;  %v2123_v29 = vmax.f32 %v2121_v14, %v2122_v40 }
 0x1c0   :  { %v2417_v8 = vsel %vm2339_vm9, %v2036_v46, %v2416_v56  ;;  %v1210_v60 = vcombine.high %v1208_v58, %v1208_v58  ;;  %v2129_v38 = vrot.slane %v2128_v19, 4  ;;  %v2135_v20 = vsel %vm1364_vm2, %v1209_v55, -inf }
 0x1c1   :  { %v2105_v3 = vrot.slane %v2104_v59, 1  ;;  %v2111_v2 = vmax.f32 %v2109_v63, %v2110_v30  ;;  %v2118_v0 = vmax.f32 %v2116_v27, %v2117_v45  ;;  %v2124_v49 = vrot.slane %v2123_v29, 2  ;;  %6325 = vmatmul.mubr.msk.f32.gmra.mrb[22].mxu0 %vm2439_vm10, %v2417_v8  ;;  %v379_v63 = vpop.permute.xlu0 %378 }
 0x1c2   :  { %v2130_v10 = vmax.f32 %v2128_v19, %v2129_v38  ;;  %v2136_v53 = vrot.slane %v2135_v20, 4  ;;  %v2142_v43 = vsel %vm1364_vm2, %v1208_v58, -inf  ;;  %v2149_v31 = vsel %vm1364_vm2, %v1210_v60, -inf  ;;  %6327 = vmatprep.mubr.msk.f32.mxu0 %vm6545_vm1, %v9669_v9 }
 0x1c3   :  { %v7651_v22 = vmax.f32 %v2104_v59, %v2105_v3  ;;  %v2112_v33 = vrot.slane %v2111_v2, 1  ;;  %v2119_v17 = vrot.slane %v2118_v0, 1  ;;  %v7653_v13 = vmax.f32 %v2123_v29, %v2124_v49 }
 0x1c4   :  { %v2131_v62 = vrot.slane %v2130_v10, 2  ;;  %v7655_v37 = vmax.f32 %v2135_v20, %v2136_v53  ;;  %v2143_v54 = vrot.slane %v2142_v43, 4  ;;  %v2150_v4 = vrot.slane %v2149_v31, 4  ;;  %v7657_v46 = vpop.f32.mrb[2].mxu0 }
 0x1c5   :  { %v7659_v41 = vmax.f32 %v2111_v2, %v2112_v33  ;;  %v7661_v51 = vmax.f32 %v2118_v0, %v2119_v17  ;;  %v219_v44 = vmul.f32 %v6618_v18, %v183_v23  ;;  %v610_v25 = vmul.f32 %v6631_v28, %v571_v61  ;;  %v6296_v14 = vpop.f32.mrb[3].mxu0 }
 0x1c6   :  { %v2132_v48 = vmax.f32 %v2130_v10, %v2131_v62  ;;  %v2138_v5 = vrot.slane %v7655_v37, 2  ;;  %v7666_v16 = vmax.f32 %v2142_v43, %v2143_v54  ;;  %v2151_v50 = vmax.f32 %v2149_v31, %v2150_v4 }
 0x1c7   :  { %v251_v27 = vadd.f32 %v7426_v15, %v219_v44  ;;  %v642_v40 = vadd.f32 %v610_v25, %v446_v57  ;;  %v2071_v56 = vmax.f32 %v7574_v11, %v2070_v42  ;;  %v2076_v18 = vmax.f32 %v7567_v32, %v2075_v7 }
 0x1c8   :  { %v2133_v58 = vrot.slane %v2132_v48, 1  ;;  %v2152_v55 = vrot.slane %v2151_v50, 2  ;;  %v2084_v19 = vrot.slane %v7584_v34, 1  ;;  %v2089_v59 = vrot.slane %v7569_v6, 2 }
 0x1c9   :  { %v674_v30 = vmax.f32 %v642_v40, 0.0  ;;  %v2077_v45 = vrot.slane %v2076_v18, 1  ;;  %v2418_v15 = vsel %vm2327_vm3, %v7571_v24, %v7563_v35  ;;  %v415_v57 = vmul.f32 %v6622_v21, %v379_v63  ;;  %v575_v24 = vpop.permute.xlu1 %574 }
 0x1ca   :  { %v2153_v29 = vmax.f32 %v2151_v50, %v2152_v55  ;;  %v2085_v11 = vmax.f32 %v7584_v34, %v2084_v19  ;;  %v2090_v42 = vmax.f32 %v7569_v6, %v2089_v59  ;;  %v2419_v32 = vsel %vm2329_vm4, %v7577_v47, %v2418_v15 }
 0x1cb   :  { %v1211_v7 = vcombine.high %v674_v30, %v674_v30  ;;  %v1218_v8 = vrot.slane %v674_v30, %v6640_v39  ;;  %v2078_v60 = vmax.f32 %v2076_v18, %v2077_v45  ;;  %v2420_v38 = vsel %vm2331_vm5, %v7589_v12, %v2419_v32 }
 0x1cc   :  { %v2154_v20 = vrot.slane %v2153_v29, 1  ;;  %v2091_v23 = vrot.slane %v2090_v42, 1  ;;  %v2421_v35 = vsel %vm2333_vm6, %v2071_v56, %v2420_v38  ;;  %v447_v21 = vadd.f32 %v415_v57, %v251_v27 }
 0x1cd   :  { %v1225_v34 = vrot.slane %v1211_v7, %v6640_v39  ;;  %v1226_v3 = vcombine.high %v1218_v8, %v1218_v8  ;;  %v2156_v6 = vsel %vm1364_vm2, %v1218_v8, -inf  ;;  %v2422_v47 = vsel %vm2335_vm7, %v2078_v60, %v2421_v35 }
 0x1ce   :  { %v7692_v2 = vmax.f32 %v2153_v29, %v2154_v20  ;;  %v2157_v0 = vrot.slane %v2156_v6, 4  ;;  %v2092_v49 = vmax.f32 %v2090_v42, %v2091_v23  ;;  %v2423_v10 = vsel %vm2337_vm8, %v2085_v11, %v2422_v47  ;;  %v7695_v12 = vpop.f32.mrb[4].mxu0 }
 0x1cf   :  { %v1227_v53 = vcombine.high %v1225_v34, %v1225_v34  ;;  %v2163_v43 = vsel %vm1364_vm2, %v1226_v3, -inf  ;;  %v2170_v31 = vsel %vm1364_vm2, %v1225_v34, -inf  ;;  %v611_v61 = vmul.f32 %v6631_v28, %v575_v24  ;;  %v6299_v33 = vpop.f32.mrb[5].mxu0 }
 0x1d0   :  { %v2158_v17 = vmax.f32 %v2156_v6, %v2157_v0  ;;  %v2164_v62 = vrot.slane %v2163_v43, 4  ;;  %v2171_v54 = vrot.slane %v2170_v31, 4  ;;  %v2424_v4 = vsel %vm2339_vm9, %v2092_v49, %v2423_v10 }
 0x1d1   :  { %v2177_v44 = vsel %vm1364_vm2, %v1227_v53, -inf  ;;  %6328 = vmatmul.mubr.msk.f32.gmra.mrb[24].mxu0 %vm2439_vm10, %v2424_v4  ;;  %v643_v25 = vadd.f32 %v611_v61, %v447_v21  ;;  %v2126_v14 = vrot.slane %v7653_v13, 1  ;;  %v2134_v50 = vmax.f32 %v2132_v48, %v2133_v58 }
 0x1d2   :  { %v2159_v63 = vrot.slane %v2158_v17, 2  ;;  %v2165_v27 = vmax.f32 %v2163_v43, %v2164_v62  ;;  %v2172_v40 = vmax.f32 %v2170_v31, %v2171_v54  ;;  %v2178_v56 = vrot.slane %v2177_v44, 4  ;;  %6330 = vmatprep.mubr.msk.f32.mxu0 %vm6545_vm1, %v9669_v9 }
 0x1d3   :  { %v675_v28 = vmax.f32 %v643_v25, 0.0  ;;  %v2127_v18 = vmax.f32 %v7653_v13, %v2126_v14  ;;  %v2139_v55 = vmax.f32 %v7655_v37, %v2138_v5  ;;  %v2145_v19 = vrot.slane %v7666_v16, 2 }
 0x1d4   :  { %v2160_v59 = vmax.f32 %v2158_v17, %v2159_v63  ;;  %v2166_v30 = vrot.slane %v2165_v27, 2  ;;  %v2173_v45 = vrot.slane %v2172_v40, 2  ;;  %v2179_v15 = vmax.f32 %v2177_v44, %v2178_v56 }
 0x1d5   :  { %v1228_v57 = vcombine.high %v675_v28, %v675_v28  ;;  %v1235_v48 = vrot.slane %v675_v28, %v6640_v39  ;;  %v2140_v58 = vrot.slane %v2139_v55, 1  ;;  %v2146_v29 = vmax.f32 %v7666_v16, %v2145_v19 }
 0x1d6   :  { %v2161_v11 = vrot.slane %v2160_v59, 1  ;;  %v2167_v42 = vmax.f32 %v2165_v27, %v2166_v30  ;;  %v2174_v32 = vmax.f32 %v2172_v40, %v2173_v45  ;;  %v2180_v7 = vrot.slane %v2179_v15, 2 }
 0x1d7   :  { %v1242_v13 = vrot.slane %v1228_v57, %v6640_v39  ;;  %v1243_v8 = vcombine.high %v1235_v48, %v1235_v48  ;;  %v2184_v37 = vsel %vm1364_vm2, %v1235_v48, -inf  ;;  %v2141_v5 = vmax.f32 %v2139_v55, %v2140_v58 }
 0x1d8   :  { %v2162_v60 = vmax.f32 %v2160_v59, %v2161_v11  ;;  %v2168_v38 = vrot.slane %v2167_v42, 1  ;;  %v2175_v20 = vrot.slane %v2174_v32, 1  ;;  %v2181_v23 = vmax.f32 %v2179_v15, %v2180_v7 }
 0x1d9   :  { %v2185_v35 = vrot.slane %v2184_v37, 4  ;;  %v2191_v21 = vsel %vm1364_vm2, %v1243_v8, -inf  ;;  %v2198_v24 = vsel %vm1364_vm2, %v1242_v13, -inf  ;;  %v2147_v16 = vrot.slane %v2146_v29, 1 }
 0x1da   :  { %v2169_v34 = vmax.f32 %v2167_v42, %v2168_v38  ;;  %v2176_v3 = vmax.f32 %v2174_v32, %v2175_v20  ;;  %v2192_v6 = vrot.slane %v2191_v21, 4  ;;  %v2199_v47 = vrot.slane %v2198_v24, 4 }
 0x1db   :  { %v2186_v0 = vmax.f32 %v2184_v37, %v2185_v35  ;;  %v2148_v49 = vmax.f32 %v2146_v29, %v2147_v16  ;;  %v2425_v10 = vsel %vm2327_vm3, %v7651_v22, %v7622_v26  ;;  %v2182_v53 = vrot.slane %v2181_v23, 1 }
 0x1dc   :  { %v2193_v43 = vmax.f32 %v2191_v21, %v2192_v6  ;;  %v2200_v31 = vmax.f32 %v2198_v24, %v2199_v47  ;;  %v2426_v61 = vsel %vm2329_vm4, %v7659_v41, %v2425_v10  ;;  %v2432_v33 = vsel %vm2327_vm3, %v2162_v60, %v7692_v2 }
 0x1dd   :  { %v2187_v17 = vrot.slane %v2186_v0, 2  ;;  %v2427_v62 = vsel %vm2331_vm5, %v7661_v51, %v2426_v61  ;;  %v2183_v54 = vmax.f32 %v2181_v23, %v2182_v53  ;;  %v2433_v4 = vsel %vm2329_vm4, %v2169_v34, %v2432_v33 }
 0x1de   :  { %v2194_v44 = vrot.slane %v2193_v43, 2  ;;  %v2428_v25 = vsel %vm2333_vm6, %v2127_v18, %v2427_v62  ;;  %v2201_v26 = vrot.slane %v2200_v31, 2  ;;  %v2434_v22 = vsel %vm2331_vm5, %v2176_v3, %v2433_v4 }
 0x1df   :  { %v2188_v14 = vmax.f32 %v2186_v0, %v2187_v17  ;;  %v2429_v63 = vsel %vm2335_vm7, %v2134_v50, %v2428_v25  ;;  %v2629_v41 = vcombine.high %v7565_v36, %v7565_v36  ;;  %v2636_v51 = vrot.slane %v7565_v36, %v6652_v52 }
 0x1e0   :  { %v2430_v2 = vsel %vm2337_vm8, %v2141_v5, %v2429_v63  ;;  %v2195_v27 = vmax.f32 %v2193_v43, %v2194_v44  ;;  %v2202_v40 = vmax.f32 %v2200_v31, %v2201_v26  ;;  %v2435_v18 = vsel %vm2333_vm6, %v2183_v54, %v2434_v22 }
 0x1e1   :  { %v2189_v56 = vrot.slane %v2188_v14, 1  ;;  %v2431_v28 = vsel %vm2339_vm9, %v2148_v49, %v2430_v2  ;;  %v2644_v50 = vcombine.high %v2636_v51, %v2636_v51  ;;  %v7737_v59 = vrot.slane %v2636_v51, %v6652_v52 }
 0x1e2   :  { %6331 = vmatmul.mubr.msk.f32.gmra.mrb[26].mxu0 %vm2439_vm10, %v2431_v28  ;;  %v2196_v55 = vrot.slane %v2195_v27, 1  ;;  %v2203_v19 = vrot.slane %v2202_v40, 1  ;;  %v2643_v45 = vrot.slane %v2629_v41, %v6652_v52  ;;  %v2685_v32 = vrot.slane %v7657_v46, %v6652_v52 }
 0x1e3   :  { %6333 = vmatprep.mubr.msk.f32.mxu0 %vm6545_vm1, %v9669_v9  ;;  %v2190_v30 = vmax.f32 %v2188_v14, %v2189_v56  ;;  %v7744_v57 = vcombine.high %v7737_v59, %v7737_v59  ;;  %v7747_v48 = vrot.slane %v2644_v50, %v6652_v52  ;;  %v2733_v23 = vrot.slane %v7695_v12, %v6652_v52 }
 0x1e4   :  { %v2197_v36 = vmax.f32 %v2195_v27, %v2196_v55  ;;  %v2204_v15 = vmax.f32 %v2202_v40, %v2203_v19  ;;  %v7758_v42 = vrot.slane %v2643_v45, %v6652_v52  ;;  %v7777_v37 = vrot.slane %v2685_v32, %v6652_v52 }
 0x1e5   :  { %v2436_v58 = vsel %vm2335_vm7, %v2190_v30, %v2435_v18  ;;  %3458 = vrot.lane.b32.xlu1 %v7744_v57, %s6548_s0  ;;  %3456 = vrot.lane.b32.xlu0 %v7747_v48, %s6548_s0  ;;  %v2645_v5 = vcombine.high %v2643_v45, %v2643_v45  ;;  %v7781_v60 = vcombine.high %v7747_v48, %v7747_v48  ;;  %vm5940_vm2 = vcmask 785408  }
 0x1e6   :  { %v2437_v29 = vsel %vm2337_vm8, %v2197_v36, %v2436_v58  ;;  %v7770_v7 = vcombine.high %v7758_v42, %v7758_v42  ;;  %v2693_v20 = vcombine.high %v2685_v32, %v2685_v32  ;;  %v7806_v21 = vcombine.high %v7777_v37, %v7777_v37 }
 0x1e7   :  { %v2438_v11 = vsel %vm2339_vm9, %v2204_v15, %v2437_v29  ;;  %v7788_v38 = vrot.slane %v2645_v5, %v6652_v52  ;;  %v2741_v16 = vcombine.high %v2733_v23, %v2733_v23  ;;  %v2726_v6 = vcombine.high %v7695_v12, %v7695_v12 }
 0x1e8   :  { %6334 = vmatmul.mubr.msk.f32.gmra.mrb[28].mxu0 %vm2439_vm10, %v2438_v11  ;;  %9793 = vst [vmem:[#allocation8_spill] sm:$0xff] %v7770_v7  ;;  %9795 = vst [vmem:[#allocation10_spill] sm:$0xff] %v7806_v21  ;;  %v7813_v24 = vrot.slane %v2693_v20, %v6652_v52  ;;  %v7822_v47 = vrot.slane %v2733_v23, %v6652_v52 }
 0x1e9   :  { %6430 = vmatprep.mubr.msk.f32.mxu0 %vm6545_vm1, %v9669_v9  ;;  %3840 = vrot.lane.b32.xlu0 %v7744_v57, %s6549_s1  ;;  %v7802_v35 = vcombine.high %v7788_v38, %v7788_v38  ;;  %v7825_v0 = vrot.slane %v2741_v16, %v6652_v52  ;;  %v2740_v49 = vrot.slane %v2726_v6, %v6652_v52 }
 0x1ea   :  { %3462 = vrot.lane.b32.xlu1 %v7758_v42, %s6548_s0  ;;  %v7834_v10 = vcombine.high %v7822_v47, %v7822_v47 }
 0x1eb   :  { %9794 = vst [vmem:[#allocation9_spill] sm:$0xff] %v7802_v35  ;;  %v7841_v12 = vrot.slane %v2740_v49, %v6652_v52  ;;  %v2742_v31 = vcombine.high %v2740_v49, %v2740_v49  ;;  %v7849_v61 = vcombine.high %v7825_v0, %v7825_v0 }
 0x1ec   :  { %v2555_v13 = vpop.f32.mrb[6].mxu0 }
 0x1ed   :  { %v6302_v8 = vpop.f32.mrb[7].mxu0  ;;  %3844 = vrot.lane.b32.xlu0 %v7758_v42, %s6549_s1  ;;  %v7857_v33 = vcombine.high %v7841_v12, %v7841_v12  ;;  %v7860_v17 = vrot.slane %v2742_v31, %v6652_v52  ;;  %v2775_v62 = vcombine.high %v2555_v13, %v2555_v13  ;;  %v2782_v54 = vrot.slane %v2555_v13, %v6652_v52 }
 0x1ee   :  { %3466 = vrot.lane.b32.xlu1 %v7770_v7, %s6548_s0 }
 0x1ef   :  { %9796 = vst [vmem:[#allocation11_spill] sm:$0xff] %v7857_v33  ;;  %9797 = vst [vmem:[#allocation12_spill] sm:$0xff] %v7860_v17  ;;  %v7872_v4 = vrot.slane %v2775_v62, %v6652_v52  ;;  %v2790_v44 = vcombine.high %v2782_v54, %v2782_v54  ;;  %v7875_v25 = vrot.slane %v2782_v54, %v6652_v52 }
 0x1f0   :  { %v7879_v26 = vcombine.high %v7860_v17, %v7860_v17 }
 0x1f1   :  { %3460 = vrot.lane.b32.xlu0 %v7781_v60, %s6548_s0  ;;  %9798 = vst [vmem:[#allocation13_spill] sm:$0xff] %v7872_v4  ;;  %v2791_v63 = vcombine.high %v7872_v4, %v7872_v4  ;;  %v7888_v41 = vrot.slane %v2790_v44, %v6652_v52 }
 0x1f2   :  { %3470 = vrot.lane.b32.xlu1 %v7777_v37, %s6548_s0  ;;  %9799 = vst [vmem:[#allocation14_spill] sm:$0xff] %v7879_v26 }
 0x1f3   :  { %9800 = vst [vmem:[#allocation15_spill] sm:$0xff] %v7888_v41  ;;  %v2819_v27 = vrot.slane %v2791_v63, %v6652_v52 }
 0x1f5   :  { %3464 = vrot.lane.b32.xlu0 %v7788_v38, %s6548_s0  ;;  %v7904_v18 = vcombine.high %v2819_v27, %v2819_v27 }
 0x1f6   :  { %3842 = vrot.lane.b32.xlu1 %v7781_v60, %s6549_s1 }
 0x1f7   :  { %9802 = vst [vmem:[#allocation17_spill] sm:$0xff] %v7904_v18 }
 0x1f9   :  { %3848 = vrot.lane.b32.xlu0 %v7770_v7, %s6549_s1 }
 0x1fa   :  { %3846 = vrot.lane.b32.xlu1 %v7788_v38, %s6549_s1 }
 0x1fd   :  { %3468 = vrot.lane.b32.xlu0 %v7802_v35, %s6548_s0 }
 0x1fe   :  { %3474 = vrot.lane.b32.xlu1 %v7806_v21, %s6548_s0 }
 0x201   :  { %3472 = vrot.lane.b32.xlu0 %v7813_v24, %s6548_s0 }
 0x202   :  { %3850 = vrot.lane.b32.xlu1 %v7802_v35, %s6549_s1  ;;  %v2560_v34 = vpop.f32.mrb[8].mxu0 }
 0x203   :  { %v6305_v3 = vpop.f32.mrb[9].mxu0  ;;  %v2831_v2 = vrot.slane %v2560_v34, %v6652_v52  ;;  %v2824_v40 = vcombine.high %v2560_v34, %v2560_v34 }
 0x205   :  { %3480 = vrot.lane.b32.xlu0 %v7822_v47, %s6548_s0  ;;  %v7897_v51 = vrot.slane %v2831_v2, %v6652_v52  ;;  %v2838_v56 = vrot.slane %v2824_v40, %v6652_v52  ;;  %v2839_v28 = vcombine.high %v2831_v2, %v2831_v2 }
 0x206   :  { %3482 = vrot.lane.b32.xlu1 %v7825_v0, %s6548_s0 }
 0x207   :  { %9801 = vst [vmem:[#allocation16_spill] sm:$0xff] %v7897_v51  ;;  %v7908_v55 = vcombine.high %v7897_v51, %v7897_v51  ;;  %v7915_v19 = vrot.slane %v2838_v56, %v6652_v52  ;;  %v7918_v50 = vrot.slane %v2839_v28, %v6652_v52  ;;  %v2840_v15 = vcombine.high %v2838_v56, %v2838_v56 }
 0x209   :  { %3484 = vrot.lane.b32.xlu0 %v7834_v10, %s6548_s0  ;;  %9803 = vst [vmem:[#allocation18_spill] sm:$0xff] %v7908_v55  ;;  %9804 = vst [vmem:[#allocation19_spill] sm:$0xff] %v7915_v19  ;;  %v7930_v30 = vcombine.high %v7915_v19, %v7915_v19  ;;  %v7943_v11 = vcombine.high %v7918_v50, %v7918_v50  ;;  %v7955_v8 = vrot.slane %v2840_v15, %v6652_v52 }
 0x20a   :  { %3866 = vrot.lane.b32.xlu1 %v7834_v10, %s6549_s1  ;;  %9805 = vst [vmem:[#allocation20_spill] sm:$0xff] %v7918_v50 }
 0x20b   :  { %9806 = vst [vmem:[#allocation21_spill] sm:$0xff] %v7930_v30  ;;  %9807 = vst [vmem:[#allocation22_spill] sm:$0xff] %v7943_v11  ;;  %v7965_v16 = vcombine.high %v7955_v8, %v7955_v8 }
 0x20c   :  { %v2565_v53 = vpop.f32.mrb[10].mxu0  ;;  %9809 = vst [vmem:[#allocation24_spill] sm:$0xff] %v7955_v8 }
 0x20d   :  { %v6308_v43 = vpop.f32.mrb[11].mxu0  ;;  %3488 = vrot.lane.b32.xlu0 %v7841_v12, %s6548_s0  ;;  %v2873_v58 = vcombine.high %v2565_v53, %v2565_v53  ;;  %v7939_v29 = vrot.slane %v2565_v53, %v6652_v52  ;;  %9810 = vst [vmem:[#allocation25_spill] sm:$0xff] %v7965_v16 }
 0x20e   :  { %3870 = vrot.lane.b32.xlu1 %v7841_v12, %s6549_s1 }
 0x20f   :  { %v2887_v32 = vrot.slane %v2873_v58, %v6652_v52  ;;  %v7952_v13 = vrot.slane %v7939_v29, %v6652_v52 }
 0x211   :  { %3864 = vrot.lane.b32.xlu0 %v7825_v0, %s6549_s1  ;;  %9808 = vst [vmem:[#allocation23_spill] sm:$0xff] %v7952_v13  ;;  %v2889_v5 = vcombine.high %v2887_v32, %v2887_v32  ;;  %v2903_v20 = vrot.slane %v2887_v32, %v6652_v52 }
 0x212   :  { %3486 = vrot.lane.b32.xlu1 %v7849_v61, %s6548_s0 }
 0x213   :  { %v7972_v34 = vrot.slane %v2889_v5, %v6652_v52  ;;  %v7974_v3 = vcombine.high %v2903_v20, %v2903_v20 }
 0x215   :  { %3492 = vrot.lane.b32.xlu0 %v7857_v33, %s6548_s0  ;;  %9811 = vst [vmem:[#allocation26_spill] sm:$0xff] %v7972_v34  ;;  %9812 = vst [vmem:[#allocation27_spill] sm:$0xff] %v7974_v3  ;;  %v7985_v43 = vcombine.high %v7972_v34, %v7972_v34 }
 0x216   :  { %3490 = vrot.lane.b32.xlu1 %v7860_v17, %s6548_s0 }
 0x217   :  { %9814 = vst [vmem:[#allocation29_spill] sm:$0xff] %v7985_v43 }
 0x219   :  { %3868 = vrot.lane.b32.xlu0 %v7849_v61, %s6549_s1 }
 0x21a   :  { %3874 = vrot.lane.b32.xlu1 %v7857_v33, %s6549_s1 }
 0x21d   :  { %3496 = vrot.lane.b32.xlu0 %v7875_v25, %s6548_s0 }
 0x21e   :  { %3494 = vrot.lane.b32.xlu1 %v7879_v26, %s6548_s0  ;;  %v2570_v22 = vpop.f32.mrb[12].mxu0 }
 0x21f   :  { %v6311_v14 = vpop.f32.mrb[13].mxu0  ;;  %v2929_v23 = vrot.slane %v2570_v22, %v6652_v52  ;;  %v2922_v49 = vcombine.high %v2570_v22, %v2570_v22 }
 0x221   :  { %3872 = vrot.lane.b32.xlu0 %v7860_v17, %s6549_s1  ;;  %v7977_v6 = vrot.slane %v2929_v23, %v6652_v52  ;;  %v2937_v53 = vcombine.high %v2929_v23, %v2929_v23  ;;  %v2936_v31 = vrot.slane %v2922_v49, %v6652_v52 }
 0x222   :  { %3498 = vrot.lane.b32.xlu1 %v7888_v41, %s6548_s0 }
 0x223   :  { %9813 = vst [vmem:[#allocation28_spill] sm:$0xff] %v7977_v6  ;;  %v7993_v62 = vrot.slane %v2937_v53, %v6652_v52  ;;  %v7997_v54 = vcombine.high %v7977_v6, %v7977_v6  ;;  %v8004_v44 = vrot.slane %v2936_v31, %v6652_v52  ;;  %v2938_v63 = vcombine.high %v2936_v31, %v2936_v31 }
 0x225   :  { %3888 = vrot.lane.b32.xlu0 %v7897_v51, %s6549_s1  ;;  %9815 = vst [vmem:[#allocation30_spill] sm:$0xff] %v7993_v62  ;;  %9816 = vst [vmem:[#allocation31_spill] sm:$0xff] %v7997_v54  ;;  %v8022_v56 = vcombine.high %v7993_v62, %v7993_v62  ;;  %v8035_v58 = vcombine.high %v8004_v44, %v8004_v44  ;;  %v8038_v32 = vrot.slane %v2938_v63, %v6652_v52 }
 0x226   :  { %3506 = vrot.lane.b32.xlu1 %v7897_v51, %s6548_s0  ;;  %9817 = vst [vmem:[#allocation32_spill] sm:$0xff] %v8004_v44 }
 0x227   :  { %9818 = vst [vmem:[#allocation33_spill] sm:$0xff] %v8022_v56  ;;  %9819 = vst [vmem:[#allocation34_spill] sm:$0xff] %v8035_v58  ;;  %v8053_v53 = vcombine.high %v8038_v32, %v8038_v32 }
 0x228   :  { %9820 = vst [vmem:[#allocation35_spill] sm:$0xff] %v8038_v32 }
 0x229   :  { %3504 = vrot.lane.b32.xlu0 %v7904_v18, %s6548_s0  ;;  %9822 = vst [vmem:[#allocation37_spill] sm:$0xff] %v8053_v53 }
 0x22a   :  { %3510 = vrot.lane.b32.xlu1 %v7908_v55, %s6548_s0 }
 0x22d   :  { %3508 = vrot.lane.b32.xlu0 %v7918_v50, %s6548_s0 }
 0x22e   :  { %3514 = vrot.lane.b32.xlu1 %v7915_v19, %s6548_s0 }
 0x231   :  { %3892 = vrot.lane.b32.xlu0 %v7908_v55, %s6549_s1 }
 0x232   :  { %3890 = vrot.lane.b32.xlu1 %v7918_v50, %s6549_s1 }
 0x235   :  { %3896 = vrot.lane.b32.xlu0 %v7915_v19, %s6549_s1 }
 0x236   :  { %3518 = vrot.lane.b32.xlu1 %v7930_v30, %s6548_s0  ;;  %v7936_v45 = vpop.f32.mrb[14].mxu0 }
 0x237   :  { %v6314_v36 = vpop.f32.mrb[15].mxu0  ;;  %v2971_v2 = vcombine.high %v7936_v45, %v7936_v45 }
 0x239   :  { %3512 = vrot.lane.b32.xlu0 %v7943_v11, %s6548_s0  ;;  %v2985_v28 = vrot.slane %v2971_v2, %v6652_v52 }
 0x23a   :  { %3894 = vrot.lane.b32.xlu1 %v7943_v11, %s6549_s1 }
 0x23b   :  { %v2987_v5 = vcombine.high %v2985_v28, %v2985_v28  ;;  %v8045_v20 = vrot.slane %v2985_v28, %v6652_v52 }
 0x23d   :  { %3516 = vrot.lane.b32.xlu0 %v7955_v8, %s6548_s0  ;;  %9821 = vst [vmem:[#allocation36_spill] sm:$0xff] %v8045_v20  ;;  %v8065_v2 = vrot.slane %v2987_v5, %v6652_v52  ;;  %v8069_v28 = vcombine.high %v8045_v20, %v8045_v20 }
 0x23e   :  { %3522 = vrot.lane.b32.xlu1 %v7952_v13, %s6548_s0 }
 0x23f   :  { %9824 = vst [vmem:[#allocation39_spill] sm:$0xff] %v8065_v2  ;;  %9825 = vst [vmem:[#allocation40_spill] sm:$0xff] %v8069_v28  ;;  %v8108_v33 = vcombine.high %v8065_v2, %v8065_v2 }
 0x241   :  { %3520 = vrot.lane.b32.xlu0 %v7965_v16, %s6548_s0  ;;  %9830 = vst [vmem:[#allocation45_spill] sm:$0xff] %v8108_v33 }
 0x242   :  { %3898 = vrot.lane.b32.xlu1 %v7955_v8, %s6549_s1 }
 0x245   :  { %3528 = vrot.lane.b32.xlu0 %v7974_v3, %s6548_s0 }
 0x246   :  { %3914 = vrot.lane.b32.xlu1 %v7977_v6, %s6549_s1 }
 0x249   :  { %3532 = vrot.lane.b32.xlu0 %v7977_v6, %s6548_s0 }
 0x24a   :  { %3530 = vrot.lane.b32.xlu1 %v7985_v43, %s6548_s0 }
 0x24d   :  { %3536 = vrot.lane.b32.xlu0 %v7997_v54, %s6548_s0 }
 0x24e   :  { %3534 = vrot.lane.b32.xlu1 %v7993_v62, %s6548_s0 }
 0x251   :  { %3540 = vrot.lane.b32.xlu0 %v8004_v44, %s6548_s0 }
 0x252   :  { %v2580_v22 = vpop.f32.mrb[16].mxu0  ;;  %3918 = vrot.lane.b32.xlu1 %v7997_v54, %s6549_s1 }
 0x253   :  { %v6317_v14 = vpop.f32.mrb[17].mxu0  ;;  %v3026_v31 = vrot.slane %v2580_v22, %v6652_v52  ;;  %v3019_v9 = vcombine.high %v2580_v22, %v2580_v22 }
 0x255   :  { %3912 = vrot.lane.b32.xlu0 %v7985_v43, %s6549_s1  ;;  %v8076_v1 = vrot.slane %v3026_v31, %v6652_v52  ;;  %v3033_v5 = vrot.slane %v3019_v9, %v6652_v52 }
 0x256   :  { %3922 = vrot.lane.b32.xlu1 %v8004_v44, %s6549_s1 }
 0x257   :  { %v8016_v27 = vpop.permute.xlu1 %3458  ;;  %v8018_v40 = vpop.permute.xlu0 %3456  ;;  %9826 = vst [vmem:[#allocation41_spill] sm:$0xff] %v8076_v1  ;;  %v8093_v22 = vcombine.high %v8076_v1, %v8076_v1  ;;  %v8102_v9 = vrot.slane %v3033_v5, %v6652_v52 }
 0x259   :  { %3916 = vrot.lane.b32.xlu0 %v7993_v62, %s6549_s1  ;;  %9827 = vst [vmem:[#allocation42_spill] sm:$0xff] %v8093_v22  ;;  %9828 = vst [vmem:[#allocation43_spill] sm:$0xff] %v8102_v9  ;;  %v8146_v34 = vcombine.high %v8102_v9, %v8102_v9 }
 0x25a   :  { %3538 = vrot.lane.b32.xlu1 %v8022_v56, %s6548_s0 }
 0x25b   :  { %v8031_v15 = vpop.permute.xlu0 %3840  ;;  %9835 = vst [vmem:[#allocation50_spill] sm:$0xff] %v8146_v34 }
 0x25c   :  { %v8029_v36 = vpop.permute.xlu1 %3462 }
 0x25d   :  { %3544 = vrot.lane.b32.xlu0 %v8035_v58, %s6548_s0 }
 0x25e   :  { %3542 = vrot.lane.b32.xlu1 %v8038_v32, %s6548_s0 }
 0x25f   :  { %v8049_v49 = vpop.permute.xlu0 %3844 }
 0x260   :  { %v8047_v23 = vpop.permute.xlu1 %3466 }
 0x261   :  { %3920 = vrot.lane.b32.xlu0 %v8022_v56, %s6549_s1 }
 0x262   :  { %3546 = vrot.lane.b32.xlu1 %v8053_v53, %s6548_s0 }
 0x263   :  { %v8060_v14 = vpop.permute.xlu0 %3460 }
 0x264   :  { %v8062_v63 = vpop.permute.xlu1 %3470 }
 0x265   :  { %9823 = vst [vmem:[#allocation38_spill] sm:$0xff] %v8062_v63  ;;  %3552 = vrot.lane.b32.xlu0 %v8065_v2, %s6548_s0 }
 0x266   :  { %3554 = vrot.lane.b32.xlu1 %v8069_v28, %s6548_s0 }
 0x267   :  { %v8078_v39 = vpop.permute.xlu0 %3464 }
 0x268   :  { %v8080_v44 = vpop.permute.xlu1 %3842 }
 0x269   :  { %3936 = vrot.lane.b32.xlu0 %v8069_v28, %s6549_s1  ;;  %v3034_v28 = vcombine.high %v3026_v31, %v3026_v31 }
 0x26a   :  { %3558 = vrot.lane.b32.xlu1 %v8076_v1, %s6548_s0 }
 0x26b   :  { %v8089_v19 = vpop.permute.xlu0 %3848 }
 0x26c   :  { %v8087_v56 = vpop.f32.mrb[18].mxu0  ;;  %v8095_v8 = vpop.permute.xlu1 %3846 }
 0x26d   :  { %v6320_v20 = vpop.f32.mrb[19].mxu0  ;;  %3940 = vrot.lane.b32.xlu0 %v8076_v1, %s6549_s1  ;;  %v3068_v2 = vcombine.high %v8087_v56, %v8087_v56 }
 0x26e   :  { %3562 = vrot.lane.b32.xlu1 %v8093_v22, %s6548_s0  ;;  %v8117_v20 = vrot.slane %v3034_v28, %v6652_v52  ;;  %v3035_v28 = vcombine.high %v3033_v5, %v3033_v5 }
 0x26f   :  { %v8104_v53 = vpop.permute.xlu0 %3468  ;;  %v3082_v3 = vrot.slane %v3068_v2, %v6652_v52 }
 0x270   :  { %9829 = vst [vmem:[#allocation44_spill] sm:$0xff] %v8104_v53  ;;  %v8110_v6 = vpop.permute.xlu1 %3474  ;;  %9832 = vst [vmem:[#allocation47_spill] sm:$0xff] %v8117_v20 }
 0x271   :  { %9831 = vst [vmem:[#allocation46_spill] sm:$0xff] %v8110_v6  ;;  %3556 = vrot.lane.b32.xlu0 %v8108_v33, %s6548_s0  ;;  %v3084_v5 = vcombine.high %v3082_v3, %v3082_v3  ;;  %v8166_v17 = vrot.slane %v3082_v3, %v6652_v52 }
 0x272   :  { %3566 = vrot.lane.b32.xlu1 %v8102_v9, %s6548_s0 }
 0x273   :  { %v8119_v31 = vpop.permute.xlu0 %3472  ;;  %9837 = vst [vmem:[#allocation52_spill] sm:$0xff] %v8166_v17  ;;  %v8183_v3 = vcombine.high %v8166_v17, %v8166_v17 }
 0x274   :  { %9833 = vst [vmem:[#allocation48_spill] sm:$0xff] %v8119_v31  ;;  %v8121_v1 = vpop.permute.xlu1 %3850 }
 0x275   :  { %3560 = vrot.lane.b32.xlu0 %v8117_v20, %s6548_s0  ;;  %9840 = vst [vmem:[#allocation55_spill] sm:$0xff] %v8183_v3 }
 0x276   :  { %3938 = vrot.lane.b32.xlu1 %v8108_v33, %s6549_s1  ;;  %v8142_v33 = vcombine.high %v8117_v20, %v8117_v20 }
 0x277   :  { %v8129_v54 = vpop.permute.xlu0 %3480 }
 0x278   :  { %v8131_v62 = vpop.permute.xlu1 %3482  ;;  %9834 = vst [vmem:[#allocation49_spill] sm:$0xff] %v8142_v33 }
 0x279   :  { %3944 = vrot.lane.b32.xlu0 %v8093_v22, %s6549_s1  ;;  %v8157_v22 = vrot.slane %v3035_v28, %v6652_v52 }
 0x27a   :  { %3942 = vrot.lane.b32.xlu1 %v8117_v20, %s6549_s1 }
 0x27b   :  { %v8138_v43 = vpop.permute.xlu0 %3484  ;;  %9836 = vst [vmem:[#allocation51_spill] sm:$0xff] %v8157_v22 }
 0x27c   :  { %v8148_v21 = vpop.permute.xlu1 %3866 }
 0x27d   :  { %3564 = vrot.lane.b32.xlu0 %v8142_v33, %s6548_s0 }
 0x27e   :  { %3570 = vrot.lane.b32.xlu1 %v8146_v34, %s6548_s0  ;;  %v8171_v34 = vrot.slane %v3084_v5, %v6652_v52 }
 0x27f   :  { %v8154_v2 = vpop.permute.xlu0 %3488 }
 0x280   :  { %v8159_v20 = vpop.permute.xlu1 %3870  ;;  %9838 = vst [vmem:[#allocation53_spill] sm:$0xff] %v8171_v34 }
 0x281   :  { %3568 = vrot.lane.b32.xlu0 %v8157_v22, %s6548_s0 }
 0x282   :  { %3946 = vrot.lane.b32.xlu1 %v8142_v33, %s6549_s1 }
 0x283   :  { %v8168_v31 = vpop.permute.xlu0 %3864 }
 0x284   :  { %v8173_v6 = vpop.permute.xlu1 %3486 }
 0x285   :  { %3576 = vrot.lane.b32.xlu0 %v8166_v17, %s6548_s0 }
 0x286   :  { %3578 = vrot.lane.b32.xlu1 %v8171_v34, %s6548_s0 }
 0x287   :  { %v8179_v53 = vpop.permute.xlu0 %3492 }
 0x288   :  { %v2590_v28 = vpop.f32.mrb[20].mxu0  ;;  %9839 = vst [vmem:[#allocation54_spill] sm:$0xff] %v8179_v53  ;;  %v8186_v5 = vpop.permute.xlu1 %3490 }
 0x289   :  { %v3123_v33 = vrot.slane %v2590_v28, %v6652_v52  ;;  %v6323_v7 = vpop.f32.mrb[21].mxu0  ;;  %3580 = vrot.lane.b32.xlu0 %v8183_v3, %s6548_s0 }
 0x28a   :  { %3962 = vrot.lane.b32.xlu1 %v8183_v3, %s6549_s1  ;;  %v3116_v7 = vcombine.high %v2590_v28, %v2590_v28  ;;  %v8207_v3 = vcombine.high %v8171_v34, %v8171_v34 }
 0x28b   :  { %v8193_v55 = vrot.slane %v3123_v33, %v6652_v52  ;;  %v8195_v11 = vpop.permute.xlu0 %3868  ;;  %v3131_v17 = vcombine.high %v3123_v33, %v3123_v33 }
 0x28c   :  { %v8197_v53 = vpop.permute.xlu1 %3874  ;;  %9844 = vst [vmem:[#allocation59_spill] sm:$0xff] %v8207_v3  ;;  %v3130_v18 = vrot.slane %v3116_v7, %v6652_v52 }
 0x28d   :  { %9841 = vst [vmem:[#allocation56_spill] sm:$0xff] %v8193_v55  ;;  %9842 = vst [vmem:[#allocation57_spill] sm:$0xff] %v8197_v53  ;;  %3584 = vrot.lane.b32.xlu0 %v8193_v55, %s6548_s0  ;;  %v8217_v63 = vrot.slane %v3131_v17, %v6652_v52 }
 0x28e   :  { %3966 = vrot.lane.b32.xlu1 %v8193_v55, %s6549_s1  ;;  %v3132_v7 = vcombine.high %v3130_v18, %v3130_v18 }
 0x28f   :  { %v8203_v51 = vpop.permute.xlu0 %3496  ;;  %9846 = vst [vmem:[#allocation61_spill] sm:$0xff] %v8217_v63 }
 0x290   :  { %9843 = vst [vmem:[#allocation58_spill] sm:$0xff] %v8203_v51  ;;  %v8209_v50 = vpop.permute.xlu1 %3494  ;;  %v8223_v51 = vcombine.high %v8193_v55, %v8193_v55  ;;  %v8238_v55 = vcombine.high %v8217_v63, %v8217_v63  ;;  %v8255_v32 = vrot.slane %v3132_v7, %v6652_v52 }
 0x291   :  { %9845 = vst [vmem:[#allocation60_spill] sm:$0xff] %v8209_v50  ;;  %3960 = vrot.lane.b32.xlu0 %v8171_v34, %s6549_s1 }
 0x292   :  { %3582 = vrot.lane.b32.xlu1 %v8207_v3, %s6548_s0  ;;  %9848 = vst [vmem:[#allocation63_spill] sm:$0xff] %v8223_v51  ;;  %9852 = vst [vmem:[#allocation67_spill] sm:$0xff] %v8238_v55 }
 0x293   :  { %v8219_v28 = vpop.permute.xlu0 %3872  ;;  %9856 = vst [vmem:[#allocation71_spill] sm:$0xff] %v8255_v32 }
 0x294   :  { %v2595_v33 = vpop.f32.mrb[22].mxu0  ;;  %9847 = vst [vmem:[#allocation62_spill] sm:$0xff] %v8219_v28  ;;  %v8225_v50 = vpop.permute.xlu1 %3498 }
 0x295   :  { %v6326_v35 = vpop.f32.mrb[23].mxu0  ;;  %9849 = vst [vmem:[#allocation64_spill] sm:$0xff] %v8225_v50  ;;  %3588 = vrot.lane.b32.xlu0 %v8223_v51, %s6548_s0  ;;  %v3165_v34 = vcombine.high %v2595_v33, %v2595_v33  ;;  %v8232_v17 = vrot.slane %v2595_v33, %v6652_v52  ;;  %v8247_v50 = vrot.slane %v3130_v18, %v6652_v52 }
 0x296   :  { %3586 = vrot.lane.b32.xlu1 %v8217_v63, %s6548_s0 }
 0x297   :  { %9850 = vst [vmem:[#allocation65_spill] sm:$0xff] %v8232_v17  ;;  %v8234_v9 = vpop.permute.xlu0 %3888  ;;  %9854 = vst [vmem:[#allocation69_spill] sm:$0xff] %v8247_v50  ;;  %v3179_v33 = vrot.slane %v3165_v34, %v6652_v52 }
 0x298   :  { %9851 = vst [vmem:[#allocation66_spill] sm:$0xff] %v8234_v9  ;;  %v8240_v35 = vpop.permute.xlu1 %3506  ;;  %v3180_v9 = vcombine.high %v8232_v17, %v8232_v17 }
 0x299   :  { %9853 = vst [vmem:[#allocation68_spill] sm:$0xff] %v8240_v35  ;;  %3964 = vrot.lane.b32.xlu0 %v8207_v3, %s6549_s1  ;;  %v8264_v18 = vrot.slane %v3179_v33, %v6652_v52  ;;  %v3181_v7 = vcombine.high %v3179_v33, %v3179_v33 }
 0x29a   :  { %3590 = vrot.lane.b32.xlu1 %v8238_v55, %s6548_s0  ;;  %v3202_v34 = vrot.slane %v3180_v9, %v6652_v52 }
 0x29b   :  { %v8252_v58 = vpop.permute.xlu0 %3504  ;;  %9858 = vst [vmem:[#allocation73_spill] sm:$0xff] %v8264_v18  ;;  %v8281_v4 = vcombine.high %v8264_v18, %v8264_v18 }
 0x29c   :  { %9855 = vst [vmem:[#allocation70_spill] sm:$0xff] %v8252_v58  ;;  %v8257_v35 = vpop.permute.xlu1 %3510 }
 0x29d   :  { %9857 = vst [vmem:[#allocation72_spill] sm:$0xff] %v8257_v35  ;;  %3592 = vrot.lane.b32.xlu0 %v8247_v50, %s6548_s0  ;;  %v8275_v35 = vcombine.high %v3202_v34, %v3202_v34  ;;  %9863 = vst [vmem:[#allocation78_spill] sm:$0xff] %v8281_v4 }
 0x29e   :  { %3594 = vrot.lane.b32.xlu1 %v8255_v32, %s6548_s0 }
 0x29f   :  { %v8267_v3 = vpop.permute.xlu0 %3508  ;;  %9861 = vst [vmem:[#allocation76_spill] sm:$0xff] %v8275_v35 }
 0x2a0   :  { %9859 = vst [vmem:[#allocation74_spill] sm:$0xff] %v8267_v3  ;;  %v8269_v55 = vpop.permute.xlu1 %3514 }
 0x2a1   :  { %9860 = vst [vmem:[#allocation75_spill] sm:$0xff] %v8269_v55  ;;  %3984 = vrot.lane.b32.xlu0 %v8264_v18, %s6549_s1 }
 0x2a2   :  { %3602 = vrot.lane.b32.xlu1 %v8264_v18, %s6548_s0 }
 0x2a3   :  { %v8277_v17 = vpop.permute.xlu0 %3892 }
 0x2a4   :  { %v2600_v58 = vpop.f32.mrb[24].mxu0  ;;  %9862 = vst [vmem:[#allocation77_spill] sm:$0xff] %v8277_v17  ;;  %v8284_v55 = vpop.permute.xlu1 %3890  ;;  %v8296_v17 = vrot.slane %v3181_v7, %v6652_v52 }
 0x2a5   :  { %v3221_v9 = vrot.slane %v2600_v58, %v6652_v52  ;;  %v6329_v3 = vpop.f32.mrb[25].mxu0  ;;  %9864 = vst [vmem:[#allocation79_spill] sm:$0xff] %v8284_v55  ;;  %3600 = vrot.lane.b32.xlu0 %v8275_v35, %s6548_s0 }
 0x2a6   :  { %3606 = vrot.lane.b32.xlu1 %v8281_v4, %s6548_s0  ;;  %9867 = vst [vmem:[#allocation82_spill] sm:$0xff] %v8296_v17 }
 0x2a7   :  { %v8291_v33 = vrot.slane %v3221_v9, %v6652_v52  ;;  %v8293_v34 = vpop.permute.xlu0 %3896  ;;  %v3229_v7 = vcombine.high %v3221_v9, %v3221_v9 }
 0x2a8   :  { %9866 = vst [vmem:[#allocation81_spill] sm:$0xff] %v8293_v34  ;;  %v8298_v18 = vpop.permute.xlu1 %3518 }
 0x2a9   :  { %9865 = vst [vmem:[#allocation80_spill] sm:$0xff] %v8291_v33  ;;  %9868 = vst [vmem:[#allocation83_spill] sm:$0xff] %v8298_v18  ;;  %3604 = vrot.lane.b32.xlu0 %v8296_v17, %s6548_s0  ;;  %v8316_v18 = vcombine.high %v8296_v17, %v8296_v17  ;;  %v8320_v55 = vcombine.high %v8291_v33, %v8291_v33  ;;  %v8329_v9 = vrot.slane %v3229_v7, %v6652_v52 }
 0x2aa   :  { %3610 = vrot.lane.b32.xlu1 %v8291_v33, %s6548_s0 }
 0x2ab   :  { %v8304_v3 = vpop.permute.xlu0 %3512  ;;  %9872 = vst [vmem:[#allocation87_spill] sm:$0xff] %v8316_v18  ;;  %9873 = vst [vmem:[#allocation88_spill] sm:$0xff] %v8320_v55 }
 0x2ac   :  { %9869 = vst [vmem:[#allocation84_spill] sm:$0xff] %v8304_v3  ;;  %v8306_v35 = vpop.permute.xlu1 %3894  ;;  %v3214_v3 = vcombine.high %v2600_v58, %v2600_v58  ;;  %9875 = vst [vmem:[#allocation90_spill] sm:$0xff] %v8329_v9 }
 0x2ad   :  { %9870 = vst [vmem:[#allocation85_spill] sm:$0xff] %v8306_v35  ;;  %3988 = vrot.lane.b32.xlu0 %v8281_v4, %s6549_s1 }
 0x2ae   :  { %3986 = vrot.lane.b32.xlu1 %v8296_v17, %s6549_s1  ;;  %v8334_v4 = vrot.slane %v3214_v3, %v6652_v52  ;;  %v8348_v3 = vcombine.high %v8329_v9, %v8329_v9 }
 0x2af   :  { %v8312_v34 = vpop.permute.xlu0 %3516 }
 0x2b0   :  { %9871 = vst [vmem:[#allocation86_spill] sm:$0xff] %v8312_v34  ;;  %v8322_v16 = vpop.permute.xlu1 %3522  ;;  %9879 = vst [vmem:[#allocation94_spill] sm:$0xff] %v8348_v3 }
 0x2b1   :  { %9874 = vst [vmem:[#allocation89_spill] sm:$0xff] %v8322_v16  ;;  %3608 = vrot.lane.b32.xlu0 %v8316_v18, %s6548_s0 }
 0x2b2   :  { %3614 = vrot.lane.b32.xlu1 %v8320_v55, %s6548_s0 }
 0x2b3   :  { %v8331_v34 = vpop.permute.xlu0 %3520 }
 0x2b4   :  { %9876 = vst [vmem:[#allocation91_spill] sm:$0xff] %v8331_v34  ;;  %v8336_v35 = vpop.permute.xlu1 %3898  ;;  %v8352_v34 = vrot.slane %v8334_v4, %v6652_v52 }
 0x2b5   :  { %v2605_v17 = vpop.f32.mrb[26].mxu0  ;;  %9877 = vst [vmem:[#allocation92_spill] sm:$0xff] %v8336_v35  ;;  %3612 = vrot.lane.b32.xlu0 %v8329_v9, %s6548_s0 }
 0x2b6   :  { %v3263_v58 = vcombine.high %v2605_v17, %v2605_v17  ;;  %v3270_v16 = vrot.slane %v2605_v17, %v6652_v52  ;;  %v6332_v30 = vpop.f32.mrb[27].mxu0  ;;  %3990 = vrot.lane.b32.xlu1 %v8316_v18, %s6549_s1  ;;  %9880 = vst [vmem:[#allocation95_spill] sm:$0xff] %v8352_v34 }
 0x2b7   :  { %v8344_v55 = vpop.permute.xlu0 %3528 }
 0x2b8   :  { %v3286_v7 = vrot.slane %v3270_v16, %v6652_v52  ;;  %9878 = vst [vmem:[#allocation93_spill] sm:$0xff] %v8344_v55  ;;  %v3277_v30 = vrot.slane %v3263_v58, %v6652_v52  ;;  %v3278_v17 = vcombine.high %v3270_v16, %v3270_v16  ;;  %v8355_v35 = vpop.permute.xlu1 %3914 }
 0x2b9   :  { %9881 = vst [vmem:[#allocation96_spill] sm:$0xff] %v8355_v35  ;;  %3616 = vrot.lane.b32.xlu0 %v8348_v3, %s6548_s0 }
 0x2ba   :  { %3618 = vrot.lane.b32.xlu1 %v8352_v34, %s6548_s0  ;;  %v8363_v55 = vcombine.high %v3286_v7, %v3286_v7  ;;  %v8368_v28 = vrot.slane %v3277_v30, %v6652_v52  ;;  %v8371_v16 = vrot.slane %v3278_v17, %v6652_v52  ;;  %v3279_v7 = vcombine.high %v3277_v30, %v3277_v30 }
 0x2bb   :  { %v8359_v18 = vpop.f32.mrb[28].mxu0  ;;  %v8365_v26 = vpop.permute.xlu0 %3532 }
 0x2bc   :  { %9882 = vst [vmem:[#allocation97_spill] sm:$0xff] %v8363_v55  ;;  %v6335_v53 = vpop.f32.mrb[29].mxu0  ;;  %9883 = vst [vmem:[#allocation98_spill] sm:$0xff] %v8365_v26  ;;  %v8373_v58 = vpop.permute.xlu1 %3530  ;;  %v8385_v26 = vcombine.high %v8371_v16, %v8371_v16  ;;  %v3319_v17 = vrot.slane %v8359_v18, %v6652_v52  ;;  %v8397_v30 = vcombine.high %v8368_v28, %v8368_v28 }
 0x2bd   :  { %9884 = vst [vmem:[#allocation99_spill] sm:$0xff] %v8368_v28  ;;  %9885 = vst [vmem:[#allocation100_spill] sm:$0xff] %v8371_v16  ;;  %3624 = vrot.lane.b32.xlu0 %v8363_v55, %s6548_s0  ;;  %v8402_v16 = vrot.slane %v3279_v7, %v6652_v52 }
 0x2be   :  { %9886 = vst [vmem:[#allocation101_spill] sm:$0xff] %v8373_v58  ;;  %4010 = vrot.lane.b32.xlu1 %v8368_v28, %s6549_s1  ;;  %9889 = vst [vmem:[#allocation104_spill] sm:$0xff] %v8385_v26 }
 0x2bf   :  { %v8379_v35 = vpop.permute.xlu0 %3536  ;;  %9891 = vst [vmem:[#allocation106_spill] sm:$0xff] %v8397_v30  ;;  %9893 = vst [vmem:[#allocation108_spill] sm:$0xff] %v8402_v16  ;;  %v8425_v3 = vcombine.high %v8402_v16, %v8402_v16 }
 0x2c0   :  { %9887 = vst [vmem:[#allocation102_spill] sm:$0xff] %v8379_v35  ;;  %v8381_v53 = vpop.permute.xlu1 %3534  ;;  %v8409_v35 = vrot.slane %v3319_v17, %v6652_v52 }
 0x2c1   :  { %9888 = vst [vmem:[#allocation103_spill] sm:$0xff] %v8381_v53  ;;  %3628 = vrot.lane.b32.xlu0 %v8368_v28, %s6548_s0  ;;  %v3327_v28 = vcombine.high %v3319_v17, %v3319_v17  ;;  %9899 = vst [vmem:[#allocation114_spill] sm:$0xff] %v8425_v3 }
 0x2c2   :  { %3626 = vrot.lane.b32.xlu1 %v8385_v26, %s6548_s0  ;;  %9894 = vst [vmem:[#allocation109_spill] sm:$0xff] %v8409_v35 }
 0x2c3   :  { %v8393_v55 = vpop.permute.xlu0 %3540 }
 0x2c4   :  { %9890 = vst [vmem:[#allocation105_spill] sm:$0xff] %v8393_v55  ;;  %v8399_v53 = vpop.permute.xlu1 %3918 }
 0x2c5   :  { %9892 = vst [vmem:[#allocation107_spill] sm:$0xff] %v8399_v53  ;;  %3632 = vrot.lane.b32.xlu0 %v8397_v30, %s6548_s0 }
 0x2c6   :  { %3630 = vrot.lane.b32.xlu1 %v8402_v16, %s6548_s0 }
 0x2c7   :  { %v8411_v58 = vpop.permute.xlu0 %3912 }
 0x2c8   :  { %9895 = vst [vmem:[#allocation110_spill] sm:$0xff] %v8411_v58  ;;  %v8413_v55 = vpop.permute.xlu1 %3922  ;;  %v8434_v58 = vrot.slane %v3327_v28, %v6652_v52 }
 0x2c9   :  { %9896 = vst [vmem:[#allocation111_spill] sm:$0xff] %v8413_v55  ;;  %3636 = vrot.lane.b32.xlu0 %v8409_v35, %s6548_s0 }
 0x2ca   :  { %4014 = vrot.lane.b32.xlu1 %v8397_v30, %s6549_s1  ;;  %9901 = vst [vmem:[#allocation116_spill] sm:$0xff] %v8434_v58  ;;  %v8452_v28 = vcombine.high %v8434_v58, %v8434_v58 }
 0x2cb   :  { %v8419_v7 = vpop.permute.xlu0 %3916 }
 0x2cc   :  { %9897 = vst [vmem:[#allocation112_spill] sm:$0xff] %v8419_v7  ;;  %v8421_v53 = vpop.permute.xlu1 %3538  ;;  %9906 = vst [vmem:[#allocation121_spill] sm:$0xff] %v8452_v28 }
 0x2cd   :  { %9898 = vst [vmem:[#allocation113_spill] sm:$0xff] %v8421_v53  ;;  %4008 = vrot.lane.b32.xlu0 %v8385_v26, %s6549_s1  ;;  %v8446_v26 = vcombine.high %v8409_v35, %v8409_v35 }
 0x2ce   :  { %3634 = vrot.lane.b32.xlu1 %v8425_v3, %s6548_s0 }
 0x2cf   :  { %v8431_v55 = vpop.permute.xlu0 %3544  ;;  %9904 = vst [vmem:[#allocation119_spill] sm:$0xff] %v8446_v26 }
 0x2d0   :  { %9900 = vst [vmem:[#allocation115_spill] sm:$0xff] %v8431_v55  ;;  %v8436_v30 = vpop.permute.xlu1 %3542 }
 0x2d1   :  { %9902 = vst [vmem:[#allocation117_spill] sm:$0xff] %v8436_v30  ;;  %4012 = vrot.lane.b32.xlu0 %v8402_v16, %s6549_s1  ;;  %v2678_v16 = vcombine.high %v7657_v46, %v7657_v46 }
 0x2d2   :  { %3638 = vrot.lane.b32.xlu1 %v8434_v58, %s6548_s0 }
 0x2d3   :  { %v8442_v17 = vpop.permute.xlu0 %3920 }
 0x2d4   :  { %9903 = vst [vmem:[#allocation118_spill] sm:$0xff] %v8442_v17  ;;  %v8448_v7 = vpop.permute.xlu1 %3546 }
 0x2d5   :  { %9905 = vst [vmem:[#allocation120_spill] sm:$0xff] %v8448_v7  ;;  %3640 = vrot.lane.b32.xlu0 %v8446_v26, %s6548_s0 }
 0x2d6   :  { %3642 = vrot.lane.b32.xlu1 %v8452_v28, %s6548_s0 }
 0x2d7   :  { %v8458_v30 = vpop.permute.xlu0 %3552 }
 0x2d8   :  { %9907 = vst [vmem:[#allocation122_spill] sm:$0xff] %v8458_v30  ;;  %v8460_v55 = vpop.permute.xlu1 %3554  ;;  %v6221_v30 = vld [vmem:[#allocation2 + $0x18] ss:$0 sm:$0xff] }
 0x2d9   :  { %9908 = vst [vmem:[#allocation123_spill] sm:$0xff] %v8460_v55  ;;  %3968 = vrot.lane.b32.xlu0 %v8217_v63, %s6549_s1  ;;  %v8479_v63 = vrot.slane %v2678_v16, %v6652_v52  ;;  %v4236_v46 = vrot.slane %v6221_v30, %v6652_v52 }
 0x2da   :  { %3970 = vrot.lane.b32.xlu1 %v8223_v51, %s6549_s1 }
 0x2db   :  { %v8466_v7 = vpop.permute.xlu0 %3936  ;;  %v8496_v16 = vrot.slane %v8479_v63, %v6652_v52 }
 0x2dc   :  { %9909 = vst [vmem:[#allocation124_spill] sm:$0xff] %v8466_v7  ;;  %v8470_v17 = vpop.permute.xlu1 %3558  ;;  %v4244_v7 = vcombine.high %v4236_v46, %v4236_v46 }
 0x2dd   :  { %9910 = vst [vmem:[#allocation125_spill] sm:$0xff] %v8470_v17  ;;  %3992 = vrot.lane.b32.xlu0 %v8291_v33, %s6549_s1  ;;  %9915 = vst [vmem:[#allocation130_spill] sm:$0xff] %v8496_v16 }
 0x2de   :  { %3994 = vrot.lane.b32.xlu1 %v8329_v9, %s6549_s1  ;;  %v8492_v9 = vcombine.high %v7813_v24, %v7813_v24  ;;  %v8528_v53 = vrot.slane %v4244_v7, %v6652_v52 }
 0x2df   :  { %v8476_v28 = vpop.permute.xlu0 %3940 }
 0x2e0   :  { %9911 = vst [vmem:[#allocation126_spill] sm:$0xff] %v8476_v28  ;;  %v8481_v51 = vpop.permute.xlu1 %3562  ;;  %9914 = vst [vmem:[#allocation129_spill] sm:$0xff] %v8492_v9  ;;  %v4229_v28 = vcombine.high %v6221_v30, %v6221_v30  ;;  %v2978_v30 = vrot.slane %v7936_v45, %v6652_v52 }
 0x2e1   :  { %9912 = vst [vmem:[#allocation127_spill] sm:$0xff] %v8481_v51  ;;  %4016 = vrot.lane.b32.xlu0 %v8425_v3, %s6549_s1  ;;  %9920 = vst [vmem:[#allocation135_spill] sm:$0xff] %v8528_v53 }
 0x2e2   :  { %4018 = vrot.lane.b32.xlu1 %v8409_v35, %s6549_s1  ;;  %v2888_v35 = vcombine.high %v7939_v29, %v7939_v29  ;;  %v4243_v17 = vrot.slane %v4229_v28, %v6652_v52  ;;  %v3747_v29 = vadd.f32 %v8029_v36, %v7781_v60  ;;  %v8545_v36 = vcombine.high %v8528_v53, %v8528_v53 }
 0x2e3   :  { %v8488_v33 = vpop.permute.xlu0 %3556 }
 0x2e4   :  { %9913 = vst [vmem:[#allocation128_spill] sm:$0xff] %v8488_v33  ;;  %v8498_v51 = vpop.permute.xlu1 %3566  ;;  %v8510_v33 = vcombine.high %v7875_v25, %v7875_v25  ;;  %v8538_v60 = vrot.slane %v2888_v35, %v6652_v52  ;;  %9922 = vst [vmem:[#allocation137_spill] sm:$0xff] %v8545_v36  ;;  %v3749_v35 = vadd.f32 %v8047_v23, %v7788_v38 }
 0x2e5   :  { %9916 = vst [vmem:[#allocation131_spill] sm:$0xff] %v8498_v51  ;;  %3476 = vrot.lane.b32.xlu0 %v8492_v9, %s6548_s0  ;;  %v3745_v51 = vadd.f32 %v8016_v27, %v7747_v48  ;;  %v3744_v48 = vadd.f32 %v8018_v40, %v7737_v59  ;;  %v4245_v27 = vcombine.high %v4243_v17, %v4243_v17 }
 0x2e6   :  { %3478 = vrot.lane.b32.xlu1 %v8496_v16, %s6548_s0  ;;  %9918 = vst [vmem:[#allocation133_spill] sm:$0xff] %v8510_v33  ;;  %v8521_v16 = vcombine.high %v7888_v41, %v7888_v41  ;;  %v2986_v59 = vcombine.high %v2978_v30, %v2978_v30  ;;  %v8555_v40 = vcombine.high %v7952_v13, %v7952_v13 }
 0x2e7   :  { %v8506_v3 = vpop.permute.xlu0 %3560  ;;  %v4129_v45 = vadd.f32 %v8080_v44, %v3745_v51  ;;  %v4128_v51 = vadd.f32 %v8031_v15, %v3744_v48  ;;  %v3748_v38 = vadd.f32 %v8078_v39, %v7758_v42  ;;  %v2694_v39 = vcombine.high %v8479_v63, %v8479_v63 }
 0x2e8   :  { %9917 = vst [vmem:[#allocation132_spill] sm:$0xff] %v8506_v3  ;;  %v8517_v55 = vpop.permute.xlu1 %3938  ;;  %9919 = vst [vmem:[#allocation134_spill] sm:$0xff] %v8521_v16  ;;  %v3746_v3 = vadd.f32 %v8060_v14, %v7744_v57  ;;  %v8541_v57 = vrot.slane %v4236_v46, %v6652_v52  ;;  %v4131_v14 = vadd.f32 %v8095_v8, %v3747_v29 }
 0x2e9   :  { %3500 = vrot.lane.b32.xlu0 %v8510_v33, %s6548_s0  ;;  %9924 = vst [vmem:[#allocation139_spill] sm:$0xff] %v8555_v40  ;;  %v4287_v15 = vadd.f32 %v8528_v53, %v4129_v45  ;;  %v8568_v46 = vrot.slane %v4245_v27, %v6652_v52  ;;  %v8573_v29 = vrot.slane %v2978_v30, %v6652_v52 }
 0x2ea   :  { %3502 = vrot.lane.b32.xlu1 %v8521_v16, %s6548_s0  ;;  %9921 = vst [vmem:[#allocation136_spill] sm:$0xff] %v8541_v57  ;;  %v8561_v28 = vcombine.high %v8541_v57, %v8541_v57  ;;  %v4130_v8 = vadd.f32 %v8049_v49, %v3746_v3  ;;  %v4289_v23 = vadd.f32 %v8545_v36, %v4131_v14 }
 0x2eb   :  { %v8548_v7 = vpop.permute.xlu0 %3944  ;;  %9926 = vst [vmem:[#allocation141_spill] sm:$0xff] %v8573_v29  ;;  %v4133_v49 = vadd.f32 %v8121_v1, %v3749_v35  ;;  %v8582_v48 = vrot.slane %v2986_v59, %v6652_v52  ;;  %v4286_v45 = vadd.f32 %v8541_v57, %v4128_v51  ;;  %v8587_v27 = vrot.slane %v8087_v56, %v6652_v52 }
 0x2ec   :  { %9923 = vst [vmem:[#allocation138_spill] sm:$0xff] %v8548_v7  ;;  %v8551_v44 = vpop.permute.xlu1 %3942  ;;  %9925 = vst [vmem:[#allocation140_spill] sm:$0xff] %v8561_v28  ;;  %v4288_v42 = vadd.f32 %v8561_v28, %v4130_v8  ;;  %v8595_v1 = vrot.slane %v4243_v17, %v6652_v52  ;;  %v4132_v14 = vadd.f32 %v8089_v19, %v3748_v38  ;;  %v4383_v59 = vmax.f32 %v4287_v15, 0.0 }
 0x2ed   :  { %3524 = vrot.lane.b32.xlu0 %v8538_v60, %s6548_s0  ;;  %9928 = vst [vmem:[#allocation143_spill] sm:$0xff] %v8582_v48  ;;  %v4385_v56 = vmax.f32 %v4289_v23, 0.0  ;;  %v4291_v51 = vadd.f32 %v8568_v46, %v4133_v49  ;;  %v8607_v63 = vcombine.high %v8157_v22, %v8157_v22  ;;  %v4382_v17 = vmax.f32 %v4286_v45, 0.0 }
 0x2ee   :  { %3526 = vrot.lane.b32.xlu1 %v8555_v40, %s6548_s0  ;;  %v8611_v19 = vrot.slane %v8587_v27, %v6652_v52  ;;  %v3312_v8 = vcombine.high %v8359_v18, %v8359_v18  ;;  %v4384_v38 = vmax.f32 %v4288_v42, 0.0  ;;  %v4290_v23 = vadd.f32 %v8595_v1, %v4132_v14 }
 0x2ef   :  { %v8579_v3 = vpop.permute.xlu0 %3564  ;;  %9931 = vst [vmem:[#allocation146_spill] sm:$0xff] %v8607_v63  ;;  %v8619_v49 = vrot.slane %v2694_v39, %v6652_v52  ;;  %v3230_v18 = vcombine.high %v8334_v4, %v8334_v4  ;;  %v8631_v42 = vcombine.high %v8247_v50, %v8247_v50  ;;  %v3759_v40 = vadd.f32 %v8173_v6, %v7834_v10 }
 0x2f0   :  { %9927 = vst [vmem:[#allocation142_spill] sm:$0xff] %v8579_v3  ;;  %v8589_v30 = vpop.permute.xlu1 %3570  ;;  %9932 = vst [vmem:[#allocation147_spill] sm:$0xff] %v8611_v19  ;;  %v4589_v45 = vcombine.low %v4384_v38, %v4385_v56  ;;  %v3326_v39 = vrot.slane %v3312_v8, %v6652_v52 }
 0x2f1   :  { %9929 = vst [vmem:[#allocation144_spill] sm:$0xff] %v8589_v30  ;;  %3548 = vrot.lane.b32.xlu0 %v8573_v29, %s6548_s0  ;;  %9933 = vst [vmem:[#allocation148_spill] sm:$0xff] %v8619_v49  ;;  %v4387_v30 = vmax.f32 %v4291_v51, 0.0  ;;  %v2725_v56 = vcombine.high %v8619_v49, %v8619_v49  ;;  %v9974_v49 = vld [vmem:[#allocation16_spill] sm:$0xff] }
 0x2f2   :  { %3550 = vrot.lane.b32.xlu1 %v8582_v48, %s6548_s0  ;;  %9935 = vst [vmem:[#allocation150_spill] sm:$0xff] %v8631_v42  ;;  %v4596_v51 = vrot.slane %v4589_v45, %v6652_v52  ;;  %v3758_v48 = vadd.f32 %v8138_v43, %v7825_v0  ;;  %v8662_v45 = vcombine.high %v8352_v34, %v8352_v34 }
 0x2f3   :  { %v8603_v35 = vpop.permute.xlu0 %3568  ;;  %v3756_v38 = vadd.f32 %v8129_v54, %v2725_v56  ;;  %v3757_v54 = vadd.f32 %v8131_v62, %v7822_v47  ;;  %v8675_v43 = vrot.slane %v3326_v39, %v6652_v52  ;;  %v4143_v62 = vadd.f32 %v8159_v20, %v3759_v40 }
 0x2f4   :  { %9930 = vst [vmem:[#allocation145_spill] sm:$0xff] %v8603_v35  ;;  %v8615_v15 = vpop.permute.xlu1 %3946  ;;  %v4574_v35 = vcombine.low %v4382_v17, %v4383_v59  ;;  %v8638_v59 = vcombine.high %v8255_v32, %v8255_v32  ;;  %v4386_v17 = vmax.f32 %v4290_v23, 0.0  ;;  %v8652_v23 = vrot.slane %v3230_v18, %v6652_v52  ;;  %9941 = vst [vmem:[#allocation156_spill] sm:$0xff] %v8662_v45 }
 0x2f5   :  { %3572 = vrot.lane.b32.xlu0 %v8607_v63, %s6548_s0  ;;  %v4142_v0 = vadd.f32 %v8195_v11, %v3758_v48  ;;  %9942 = vst [vmem:[#allocation157_spill] sm:$0xff] %v8675_v43  ;;  %v4141_v47 = vadd.f32 %v8148_v21, %v3757_v54 }
 0x2f6   :  { %3574 = vrot.lane.b32.xlu1 %v8611_v19, %s6548_s0  ;;  %9937 = vst [vmem:[#allocation152_spill] sm:$0xff] %v8638_v59  ;;  %v4581_v4 = vrot.slane %v4574_v35, %v6652_v52  ;;  %v4604_v8 = vcombine.low %v4386_v17, %v4387_v30  ;;  %9939 = vst [vmem:[#allocation154_spill] sm:$0xff] %v8652_v23  ;;  %v3328_v35 = vcombine.high %v3326_v39, %v3326_v39 }
 0x2f7   :  { %v8627_v3 = vpop.permute.xlu0 %3576  ;;  %v4140_v30 = vadd.f32 %v8168_v31, %v3756_v38  ;;  %v4603_v17 = vrot.slane %v4596_v51, %v6652_v52  ;;  %v4300_v39 = vadd.f32 %v8561_v28, %v4142_v0  ;;  %v4301_v51 = vadd.f32 %v8545_v36, %v4143_v62 }
 0x2f8   :  { %9934 = vst [vmem:[#allocation149_spill] sm:$0xff] %v8627_v3  ;;  %v8634_v14 = vpop.permute.xlu1 %3578  ;;  %v4588_v10 = vrot.slane %v4581_v4, %v6652_v52  ;;  %v4611_v6 = vrot.slane %v4604_v8, %v6652_v52  ;;  %v8685_v11 = vrot.slane %v3328_v35, %v6652_v52  ;;  %v4299_v4 = vadd.f32 %v8528_v53, %v4141_v47  ;;  %v9978_v3 = vld [vmem:[#allocation75_spill] sm:$0xff] }
 0x2f9   :  { %9936 = vst [vmem:[#allocation151_spill] sm:$0xff] %v8634_v14  ;;  %3596 = vrot.lane.b32.xlu0 %v8631_v42, %s6548_s0  ;;  %v4298_v48 = vadd.f32 %v8541_v57, %v4140_v30  ;;  %v5350_v40 = vsel %vm5342_vm11, %v4603_v17, -inf  ;;  %v3760_v38 = vadd.f32 %v8154_v2, %v7849_v61  ;;  %v4396_v54 = vmax.f32 %v4300_v39, 0.0  ;;  %v9951_v61 = vld [vmem:[#allocation14_spill] sm:$0xff]  ;;  %v9952_v39 = vld [vmem:[#allocation57_spill] sm:$0xff] }
 0x2fa   :  { %3598 = vrot.lane.b32.xlu1 %v8638_v59, %s6548_s0  ;;  %9945 = vst [vmem:[#allocation160_spill] sm:$0xff] %v8685_v11  ;;  %v4618_v21 = vrot.slane %v4611_v6, %v6652_v52  ;;  %v5343_v20 = vsel %vm5342_vm11, %v4588_v10, -inf  ;;  %v5351_v0 = vrot.slane %v5350_v40, 4  ;;  %v4395_v17 = vmax.f32 %v4299_v4, 0.0 }
 0x2fb   :  { %v8649_v19 = vpop.permute.xlu0 %3580  ;;  %v4394_v35 = vmax.f32 %v4298_v48, 0.0  ;;  %v5344_v30 = vrot.slane %v5343_v20, 4  ;;  %v4397_v47 = vmax.f32 %v4301_v51, 0.0  ;;  %v3761_v62 = vadd.f32 %v8186_v5, %v7841_v12 }
 0x2fc   :  { %9938 = vst [vmem:[#allocation153_spill] sm:$0xff] %v8649_v19  ;;  %v8658_v16 = vpop.permute.xlu1 %3962  ;;  %v5357_v10 = vsel %vm5342_vm11, %v4618_v21, -inf  ;;  %v5352_v4 = vmax.f32 %v5350_v40, %v5351_v0 }
 0x2fd   :  { %9940 = vst [vmem:[#allocation155_spill] sm:$0xff] %v8658_v16  ;;  %3620 = vrot.lane.b32.xlu0 %v8652_v23, %s6548_s0  ;;  %v4664_v2 = vcombine.low %v4394_v35, %v4395_v17  ;;  %v4679_v48 = vcombine.low %v4396_v54, %v4397_v47  ;;  %v5345_v21 = vmax.f32 %v5343_v20, %v5344_v30  ;;  %v5358_v51 = vrot.slane %v5357_v10, 4  ;;  %v9956_v17 = vld [vmem:[#allocation25_spill] sm:$0xff]  ;;  %v9972_v16 = vld [vmem:[#allocation20_spill] sm:$0xff] }
 0x2fe   :  { %3622 = vrot.lane.b32.xlu1 %v8662_v45, %s6548_s0  ;;  %v5353_v40 = vrot.slane %v5352_v4, 2 }
 0x2ff   :  { %v8677_v18 = vpop.permute.xlu0 %3584  ;;  %v4686_v35 = vrot.slane %v4679_v48, %v6652_v52  ;;  %v5346_v20 = vrot.slane %v5345_v21, 2  ;;  %v5359_v30 = vmax.f32 %v5357_v10, %v5358_v51  ;;  %v9962_v51 = vld [vmem:[#allocation34_spill] sm:$0xff] }
 0x300   :  { %9943 = vst [vmem:[#allocation158_spill] sm:$0xff] %v8677_v18  ;;  %v8682_v31 = vpop.permute.xlu1 %3966  ;;  %v4145_v18 = vadd.f32 %v9952_v39, %v3761_v62  ;;  %v9959_v62 = vld [vmem:[#allocation13_spill] sm:$0xff] }
 0x301   :  { %9944 = vst [vmem:[#allocation159_spill] sm:$0xff] %v8682_v31  ;;  %3644 = vrot.lane.b32.xlu0 %v8675_v43, %s6548_s0  ;;  %v8739_v39 = vrot.slane %v9959_v62, %v6652_v52  ;;  %v9963_v62 = vld [vmem:[#allocation65_spill] sm:$0xff]  ;;  %v9983_v43 = vld [vmem:[#allocation8_spill] sm:$0xff] }
 0x302   :  { %3646 = vrot.lane.b32.xlu1 %v8685_v11, %s6548_s0  ;;  %v9949_v11 = vld [vmem:[#allocation62_spill] sm:$0xff]  ;;  %v4303_v54 = vadd.f32 %v8568_v46, %v4145_v18  ;;  %v3083_v18 = vcombine.high %v8587_v27, %v8587_v27 }
 0x303   :  { %v8694_v56 = vpop.permute.xlu0 %3960  ;;  %v4144_v45 = vadd.f32 %v9949_v11, %v3760_v38  ;;  %v9955_v11 = vld [vmem:[#allocation21_spill] sm:$0xff]  ;;  %v4671_v38 = vrot.slane %v4664_v2, %v6652_v52  ;;  %9960 = vst [vmem:[#allocation13_spill] sm:$0xff] %v8739_v39  ;;  %v9961_v2 = vld [vmem:[#allocation35_spill] sm:$0xff]  ;;  %v2821_v27 = vcombine.high %v8739_v39, %v8739_v39  ;;  %v9971_v39 = vld [vmem:[#allocation70_spill] sm:$0xff] }
 0x304   :  { %9946 = vst [vmem:[#allocation161_spill] sm:$0xff] %v8694_v56  ;;  %v8700_v8 = vpop.permute.xlu1 %3582  ;;  %v4399_v10 = vmax.f32 %v4303_v54, 0.0  ;;  %v9967_v54 = vld [vmem:[#allocation38_spill] sm:$0xff] }
 0x305   :  { %9947 = vst [vmem:[#allocation162_spill] sm:$0xff] %v8700_v8  ;;  %3852 = vrot.lane.b32.xlu0 %v7777_v37, %s6549_s1  ;;  %v4302_v12 = vadd.f32 %v8595_v1, %v4144_v45  ;;  %v4678_v48 = vrot.slane %v4671_v38, %v6652_v52  ;;  %v9965_v38 = vld [vmem:[#allocation43_spill] sm:$0xff] }
 0x306   :  { %3854 = vrot.lane.b32.xlu1 %v7813_v24, %s6549_s1 }
 0x307   :  { %v8709_v6 = vpop.permute.xlu0 %3588  ;;  %v4398_v45 = vmax.f32 %v4302_v12, 0.0  ;;  %v5347_v12 = vmax.f32 %v5345_v21, %v5346_v20 }
 0x308   :  { %9948 = vst [vmem:[#allocation163_spill] sm:$0xff] %v8709_v6  ;;  %v8714_v59 = vpop.permute.xlu1 %3586 }
 0x309   :  { %9950 = vst [vmem:[#allocation62_spill] sm:$0xff] %v8714_v59  ;;  %3876 = vrot.lane.b32.xlu0 %v9951_v61, %s6549_s1 }
 0x30a   :  { %3878 = vrot.lane.b32.xlu1 %v7875_v25, %s6549_s1 }
 0x30b   :  { %v8721_v6 = vpop.permute.xlu0 %3964 }
 0x30c   :  { %9953 = vst [vmem:[#allocation14_spill] sm:$0xff] %v8721_v6  ;;  %v8724_v5 = vpop.permute.xlu1 %3590 }
 0x30d   :  { %9954 = vst [vmem:[#allocation57_spill] sm:$0xff] %v8724_v5  ;;  %3900 = vrot.lane.b32.xlu0 %v9955_v11, %s6549_s1  ;;  %v4693_v5 = vrot.slane %v4686_v35, %v6652_v52  ;;  %v8751_v11 = vrot.slane %v9963_v62, %v6652_v52  ;;  %v5348_v62 = vrot.slane %v5347_v12, 1 }
 0x30e   :  { %3902 = vrot.lane.b32.xlu1 %v9956_v17, %s6549_s1 }
 0x30f   :  { %v8733_v0 = vpop.permute.xlu0 %3592  ;;  %9964 = vst [vmem:[#allocation65_spill] sm:$0xff] %v8751_v11  ;;  %v3210_v21 = vcombine.high %v8751_v11, %v8751_v11  ;;  %v9976_v11 = vld [vmem:[#allocation67_spill] sm:$0xff] }
 0x310   :  { %9957 = vst [vmem:[#allocation164_spill] sm:$0xff] %v8733_v0  ;;  %v8735_v47 = vpop.permute.xlu1 %3594  ;;  %v5360_v0 = vrot.slane %v5359_v30, 2 }
 0x311   :  { %9958 = vst [vmem:[#allocation165_spill] sm:$0xff] %v8735_v47  ;;  %3924 = vrot.lane.b32.xlu0 %v9961_v2, %s6549_s1  ;;  %v5354_v47 = vmax.f32 %v5352_v4, %v5353_v40  ;;  %v4694_v2 = vcombine.low %v4398_v45, %v4399_v10  ;;  %v9966_v4 = vld [vmem:[#allocation9_spill] sm:$0xff]  ;;  %v5385_v40 = vsel %vm5342_vm11, %v4678_v48, -inf  ;;  %v5392_v45 = vsel %vm5342_vm11, %v4693_v5, -inf }
 0x312   :  { %3926 = vrot.lane.b32.xlu1 %v9962_v51, %s6549_s1  ;;  %v8763_v20 = vadd.f32 %v9967_v54, %v9966_v4  ;;  %v8768_v10 = vrot.slane %v3083_v18, %v6652_v52  ;;  %v5361_v35 = vmax.f32 %v5359_v30, %v5360_v0  ;;  %v9969_v54 = vld [vmem:[#allocation17_spill] sm:$0xff]  ;;  %v3768_v5 = vadd.f32 %v9971_v39, %v2821_v27  ;;  %v9973_v18 = vld [vmem:[#allocation72_spill] sm:$0xff]  ;;  %v9975_v30 = vld [vmem:[#allocation74_spill] sm:$0xff] }
 0x313   :  { %v3985_v17 = vpop.permute.xlu0 %3984  ;;  %v4701_v4 = vrot.slane %v4694_v2, %v6652_v52  ;;  %v3771_v31 = vadd.f32 %v9973_v18, %v9972_v16  ;;  %v5393_v14 = vrot.slane %v5392_v45, 4  ;;  %v3770_v0 = vadd.f32 %v9975_v30, %v9974_v49  ;;  %v9977_v2 = vld [vmem:[#allocation22_spill] sm:$0xff]  ;;  %v9981_v27 = vld [vmem:[#allocation84_spill] sm:$0xff]  ;;  %v9982_v16 = vld [vmem:[#allocation85_spill] sm:$0xff] }
 0x314   :  { %v3603_v59 = vpop.permute.xlu1 %3602  ;;  %9968 = vst [vmem:[#allocation9_spill] sm:$0xff] %v8763_v20  ;;  %v9970_v20 = vld [vmem:[#allocation68_spill] sm:$0xff]  ;;  %v3773_v8 = vadd.f32 %v9978_v3, %v9977_v2  ;;  %v9980_v39 = vld [vmem:[#allocation18_spill] sm:$0xff]  ;;  %v5362_v3 = vrot.slane %v5361_v35, 1 }
 0x315   :  { %3948 = vrot.lane.b32.xlu0 %v9965_v38, %s6549_s1  ;;  %v5355_v38 = vrot.slane %v5354_v47, 1  ;;  %v3769_v48 = vadd.f32 %v9970_v20, %v9969_v54  ;;  %v9979_v20 = vld [vmem:[#allocation79_spill] sm:$0xff]  ;;  %v3772_v19 = vadd.f32 %v9981_v27, %v9980_v39  ;;  %v4155_v18 = vadd.f32 %v9982_v16, %v3771_v31  ;;  %v9984_v49 = vld [vmem:[#allocation44_spill] sm:$0xff]  ;;  %v9988_v27 = vld [vmem:[#allocation77_spill] sm:$0xff] }
 0x316   :  { %3950 = vrot.lane.b32.xlu1 %v8157_v22, %s6549_s1  ;;  %v5386_v22 = vrot.slane %v5385_v40, 4  ;;  %v4154_v31 = vadd.f32 %v9988_v27, %v3770_v0  ;;  %v9989_v16 = vld [vmem:[#allocation92_spill] sm:$0xff] }
 0x317   :  { %v3601_v51 = vpop.permute.xlu0 %3600  ;;  %v4153_v54 = vadd.f32 %v9979_v20, %v3769_v48  ;;  %v5356_v7 = vmax.f32 %v5354_v47, %v5355_v38  ;;  %v4708_v48 = vrot.slane %v4701_v4, %v6652_v52  ;;  %v9987_v20 = vld [vmem:[#allocation66_spill] sm:$0xff]  ;;  %v5349_v47 = vmax.f32 %v5347_v12, %v5348_v62  ;;  %v9996_v27 = vld [vmem:[#allocation12_spill] sm:$0xff] }
 0x318   :  { %v8780_v56 = vpop.permute.xlu1 %3606  ;;  %v3816_v6 = vadd.f32 %v3601_v51, %v3210_v21  ;;  %v8796_v51 = vadd.f32 %v9984_v49, %v9983_v43  ;;  %v9985_v21 = vld [vmem:[#allocation46_spill] sm:$0xff]  ;;  %v4152_v39 = vadd.f32 %v9987_v20, %v3768_v5  ;;  %v5387_v38 = vmax.f32 %v5385_v40, %v5386_v22  ;;  %v9993_v22 = vld [vmem:[#allocation48_spill] sm:$0xff] }
 0x319   :  { %3972 = vrot.lane.b32.xlu0 %v9976_v11, %s6549_s1  ;;  %v8800_v30 = vadd.f32 %v9985_v21, %v7813_v24  ;;  %v4157_v11 = vadd.f32 %v9989_v16, %v3773_v8  ;;  %v9990_v24 = vld [vmem:[#allocation88_spill] sm:$0xff]  ;;  %v5394_v21 = vmax.f32 %v5392_v45, %v5393_v14  ;;  %v4311_v4 = vadd.f32 %v8528_v53, %v4153_v54  ;;  %v9992_v8 = vld [vmem:[#allocation94_spill] sm:$0xff] }
 0x31a   :  { %3974 = vrot.lane.b32.xlu1 %v8247_v50, %s6549_s1  ;;  %v4200_v49 = vadd.f32 %v3985_v17, %v3816_v6  ;;  %v4313_v0 = vadd.f32 %v8545_v36, %v4155_v18  ;;  %v5727_v12 = vsel %vm2327_vm3, %v5356_v7, %v5349_v47  ;;  %v8820_v40 = vadd.f32 %v9993_v22, %v7777_v37  ;;  %v9995_v17 = vld [vmem:[#allocation76_spill] sm:$0xff]  ;;  %v9997_v7 = vld [vmem:[#allocation54_spill] sm:$0xff]  ;;  %v10000_v47 = vld [vmem:[#allocation73_spill] sm:$0xff] }
 0x31b   :  { %9986 = vst [vmem:[#allocation38_spill] sm:$0xff] %v8800_v30  ;;  %v3605_v2 = vpop.permute.xlu0 %3604  ;;  %v9991_v30 = vld [vmem:[#allocation81_spill] sm:$0xff]  ;;  %v5363_v6 = vmax.f32 %v5361_v35, %v5362_v3  ;;  %v3817_v62 = vadd.f32 %v3603_v59, %v9995_v17  ;;  %v5399_v14 = vsel %vm5342_vm11, %v4708_v48, -inf  ;;  %v4310_v45 = vadd.f32 %v8541_v57, %v4152_v39 }
 0x31c   :  { %v8806_v50 = vpop.permute.xlu1 %3610  ;;  %v4156_v5 = vadd.f32 %v9991_v30, %v3772_v19  ;;  %9994 = vst [vmem:[#allocation17_spill] sm:$0xff] %v8820_v40  ;;  %v4312_v19 = vadd.f32 %v8561_v28, %v4154_v31  ;;  %v4315_v54 = vadd.f32 %v8568_v46, %v4157_v11  ;;  %v5388_v30 = vrot.slane %v5387_v38, 2 }
 0x31d   :  { %3996 = vrot.lane.b32.xlu0 %v9990_v24, %s6549_s1  ;;  %v8829_v16 = vadd.f32 %v9997_v7, %v9996_v27  ;;  %v4358_v37 = vadd.f32 %v8541_v57, %v4200_v49  ;;  %v5395_v59 = vrot.slane %v5394_v21, 2  ;;  %v4407_v3 = vmax.f32 %v4311_v4, 0.0 }
 0x31e   :  { %3998 = vrot.lane.b32.xlu1 %v9992_v8, %s6549_s1  ;;  %v4314_v48 = vadd.f32 %v8595_v1, %v4156_v5  ;;  %v4409_v39 = vmax.f32 %v4313_v0, 0.0  ;;  %v8838_v11 = vsel %vm2329_vm4, %v5363_v6, %v5727_v12  ;;  %v5400_v31 = vrot.slane %v5399_v14, 4 }
 0x31f   :  { %v3989_v20 = vpop.permute.xlu0 %3988  ;;  %9998 = vst [vmem:[#allocation68_spill] sm:$0xff] %v8829_v16  ;;  %9999 = vst [vmem:[#allocation70_spill] sm:$0xff] %v8838_v11  ;;  %v3818_v22 = vadd.f32 %v3605_v2, %v10000_v47  ;;  %v4406_v4 = vmax.f32 %v4310_v45, 0.0  ;;  %v4408_v5 = vmax.f32 %v4312_v19, 0.0  ;;  %v4411_v0 = vmax.f32 %v4315_v54, 0.0  ;;  %v10003_v2 = vld [vmem:[#allocation10_spill] sm:$0xff] }
 0x320   :  { %v3987_v18 = vpop.permute.xlu1 %3986  ;;  %v8850_v7 = vmax.f32 %v5387_v38, %v5388_v30  ;;  %v4454_v12 = vmax.f32 %v4358_v37, 0.0  ;;  %v4410_v40 = vmax.f32 %v4314_v48, 0.0  ;;  %v10004_v45 = vld [vmem:[#allocation26_spill] sm:$0xff]  ;;  %v10005_v19 = vld [vmem:[#allocation93_spill] sm:$0xff] }
 0x321   :  { %v4201_v35 = vadd.f32 %v3987_v18, %v3817_v62  ;;  %4020 = vrot.lane.b32.xlu0 %v8434_v58, %s6549_s1  ;;  %v10001_v62 = vld [vmem:[#allocation58_spill] sm:$0xff]  ;;  %v4202_v6 = vadd.f32 %v3989_v20, %v3818_v22  ;;  %v4754_v47 = vcombine.low %v4406_v4, %v4407_v3  ;;  %v4769_v11 = vcombine.low %v4408_v5, %v4409_v39  ;;  %v10007_v22 = vld [vmem:[#allocation29_spill] sm:$0xff] }
 0x322   :  { %4022 = vrot.lane.b32.xlu1 %v8446_v26, %s6549_s1  ;;  %v8846_v18 = vadd.f32 %v10001_v62, %v9951_v61  ;;  %v5401_v61 = vmax.f32 %v5399_v14, %v5400_v31  ;;  %v3780_v54 = vadd.f32 %v10005_v19, %v10004_v45  ;;  %v10006_v62 = vld [vmem:[#allocation82_spill] sm:$0xff]  ;;  %v4784_v37 = vcombine.low %v4410_v40, %v4411_v0  ;;  %v10010_v3 = vld [vmem:[#allocation101_spill] sm:$0xff]  ;;  %v10013_v31 = vld [vmem:[#allocation31_spill] sm:$0xff] }
 0x323   :  { %v4359_v49 = vadd.f32 %v8528_v53, %v4201_v35  ;;  %v8842_v17 = vpop.permute.xlu0 %3608  ;;  %v5396_v35 = vmax.f32 %v5394_v21, %v5395_v59  ;;  %v3819_v38 = vadd.f32 %v8780_v56, %v10006_v62  ;;  %v10009_v59 = vld [vmem:[#allocation27_spill] sm:$0xff]  ;;  %v10011_v39 = vld [vmem:[#allocation30_spill] sm:$0xff]  ;;  %v4360_v19 = vadd.f32 %v8561_v28, %v4202_v6 }
 0x324   :  { %10002 = vst [vmem:[#allocation20_spill] sm:$0xff] %v8846_v18  ;;  %v8848_v27 = vpop.permute.xlu1 %3614  ;;  %v3781_v48 = vadd.f32 %v10010_v3, %v10009_v59  ;;  %v10012_v4 = vld [vmem:[#allocation102_spill] sm:$0xff]  ;;  %v10014_v18 = vld [vmem:[#allocation113_spill] sm:$0xff]  ;;  %v4761_v40 = vrot.slane %v4754_v47, %v6652_v52  ;;  %v4776_v0 = vrot.slane %v4769_v11, %v6652_v52  ;;  %v10016_v62 = vld [vmem:[#allocation103_spill] sm:$0xff]  ;;  %v5402_v47 = vrot.slane %v5401_v61, 2 }
 0x325   :  { %v4455_v43 = vmax.f32 %v4359_v49, 0.0  ;;  %3856 = vrot.lane.b32.xlu0 %v10003_v2, %s6549_s1  ;;  %v10008_v49 = vld [vmem:[#allocation98_spill] sm:$0xff]  ;;  %v3784_v5 = vadd.f32 %v10012_v4, %v10011_v39  ;;  %v3785_v45 = vadd.f32 %v10014_v18, %v10013_v31  ;;  %v10018_v18 = vld [vmem:[#allocation112_spill] sm:$0xff]  ;;  %v4791_v11 = vrot.slane %v4784_v37, %v6652_v52 }
 0x326   :  { %3858 = vrot.lane.b32.xlu1 %v8492_v9, %s6549_s1  ;;  %v3782_v21 = vadd.f32 %v10008_v49, %v10007_v22  ;;  %v10017_v49 = vld [vmem:[#allocation110_spill] sm:$0xff]  ;;  %v10027_v9 = vld [vmem:[#allocation97_spill] sm:$0xff] }
 0x327   :  { %v5114_v30 = vcombine.low %v4454_v12, %v4455_v43  ;;  %v8860_v20 = vpop.permute.xlu0 %3612  ;;  %v10015_v12 = vld [vmem:[#allocation28_spill] sm:$0xff]  ;;  %v4164_v59 = vadd.f32 %v10017_v49, %v3780_v54  ;;  %v10019_v3 = vld [vmem:[#allocation118_spill] sm:$0xff]  ;;  %v10022_v49 = vld [vmem:[#allocation111_spill] sm:$0xff] }
 0x328   :  { %v3991_v14 = vpop.permute.xlu1 %3990  ;;  %v3783_v22 = vadd.f32 %v10016_v62, %v10015_v12  ;;  %v4166_v6 = vadd.f32 %v10018_v18, %v3782_v21  ;;  %v10021_v12 = vld [vmem:[#allocation107_spill] sm:$0xff]  ;;  %v4456_v21 = vmax.f32 %v4360_v19, 0.0 }
 0x329   :  { %v5121_v56 = vrot.slane %v5114_v30, %v6652_v52  ;;  %v4203_v43 = vadd.f32 %v3991_v14, %v3819_v38  ;;  %3880 = vrot.lane.b32.xlu0 %v7888_v41, %s6549_s1  ;;  %v4168_v30 = vadd.f32 %v10019_v3, %v3784_v5  ;;  %v10020_v14 = vld [vmem:[#allocation96_spill] sm:$0xff]  ;;  %v4322_v37 = vadd.f32 %v8541_v57, %v4164_v59 }
 0x32a   :  { %3882 = vrot.lane.b32.xlu1 %v8510_v33, %s6549_s1  ;;  %v4165_v31 = vadd.f32 %v10020_v14, %v3781_v48  ;;  %v4167_v54 = vadd.f32 %v10021_v12, %v3783_v22  ;;  %v4169_v33 = vadd.f32 %v10022_v49, %v3785_v45  ;;  %v4783_v48 = vrot.slane %v4776_v0, %v6652_v52  ;;  %v10023_v49 = vld [vmem:[#allocation11_spill] sm:$0xff] }
 0x32b   :  { %v5128_v38 = vrot.slane %v5121_v56, %v6652_v52  ;;  %v4361_v39 = vadd.f32 %v8545_v36, %v4203_v43  ;;  %v8885_v4 = vpop.permute.xlu0 %3616  ;;  %v5397_v56 = vrot.slane %v5396_v35, 1  ;;  %v4768_v43 = vrot.slane %v4761_v40, %v6652_v52 }
 0x32c   :  { %v8890_v62 = vpop.permute.xlu1 %3618  ;;  %v4324_v45 = vadd.f32 %v8561_v28, %v4166_v6  ;;  %v4326_v19 = vadd.f32 %v8595_v1, %v4168_v30  ;;  %v4798_v14 = vrot.slane %v4791_v11, %v6652_v52  ;;  %v4323_v40 = vadd.f32 %v8528_v53, %v4165_v31 }
 0x32d   :  { %v5595_v5 = vsel %vm5342_vm11, %v5128_v38, -inf  ;;  %v4457_v18 = vmax.f32 %v4361_v39, 0.0  ;;  %3904 = vrot.lane.b32.xlu0 %v7952_v13, %s6549_s1  ;;  %v5403_v39 = vmax.f32 %v5401_v61, %v5402_v47  ;;  %v10024_v13 = vld [vmem:[#allocation60_spill] sm:$0xff]  ;;  %v4325_v0 = vadd.f32 %v8545_v36, %v4167_v54 }
 0x32e   :  { %v5596_v3 = vrot.slane %v5595_v5, 4  ;;  %3906 = vrot.lane.b32.xlu1 %v8538_v60, %s6549_s1  ;;  %v8909_v41 = vadd.f32 %v10024_v13, %v10023_v49  ;;  %v4327_v6 = vadd.f32 %v8568_v46, %v4169_v33  ;;  %v5390_v61 = vrot.slane %v8850_v7, 1 }
 0x32f   :  { %v5129_v22 = vcombine.low %v4456_v21, %v4457_v18  ;;  %v8903_v38 = vpop.permute.xlu0 %3624  ;;  %v10026_v21 = vld [vmem:[#allocation37_spill] sm:$0xff]  ;;  %v5398_v47 = vmax.f32 %v5396_v35, %v5397_v56  ;;  %v5427_v11 = vsel %vm5342_vm11, %v4768_v43, -inf  ;;  %v4418_v31 = vmax.f32 %v4322_v37, 0.0 }
 0x330   :  { %v5597_v12 = vmax.f32 %v5595_v5, %v5596_v3  ;;  %v4011_v59 = vpop.permute.xlu1 %4010  ;;  %10025 = vst [vmem:[#allocation72_spill] sm:$0xff] %v8909_v41  ;;  %v5434_v13 = vsel %vm5342_vm11, %v4783_v48, -inf  ;;  %v4420_v5 = vmax.f32 %v4324_v45, 0.0  ;;  %v4422_v54 = vmax.f32 %v4326_v19, 0.0  ;;  %v10028_v48 = vld [vmem:[#allocation50_spill] sm:$0xff] }
 0x331   :  { %v5136_v30 = vrot.slane %v5129_v22, %v6652_v52  ;;  %3928 = vrot.lane.b32.xlu0 %v10026_v21, %s6549_s1  ;;  %v5404_v3 = vrot.slane %v5403_v39, 1  ;;  %v5441_v22 = vsel %vm5342_vm11, %v4798_v14, -inf  ;;  %v4419_v49 = vmax.f32 %v4323_v40, 0.0 }
 0x332   :  { %3930 = vrot.lane.b32.xlu1 %v8573_v29, %s6549_s1  ;;  %v5598_v21 = vrot.slane %v5597_v12, 2  ;;  %v4421_v56 = vmax.f32 %v4325_v0, 0.0  ;;  %v4423_v43 = vmax.f32 %v4327_v6, 0.0  ;;  %v5428_v45 = vrot.slane %v5427_v11, 4 }
 0x333   :  { %v5143_v33 = vrot.slane %v5136_v30, %v6652_v52  ;;  %v8922_v18 = vpop.permute.xlu0 %3628  ;;  %v5435_v19 = vrot.slane %v5434_v13, 4  ;;  %v4844_v30 = vcombine.low %v4418_v31, %v4419_v49  ;;  %v5391_v14 = vmax.f32 %v8850_v7, %v5390_v61  ;;  %v10032_v7 = vld [vmem:[#allocation83_spill] sm:$0xff] }
 0x334   :  { %v3627_v35 = vpop.permute.xlu1 %3626  ;;  %v4859_v40 = vcombine.low %v4420_v5, %v4421_v56  ;;  %v4874_v16 = vcombine.low %v4422_v54, %v4423_v43  ;;  %v8941_v49 = vmax.f32 %v5403_v39, %v5404_v3  ;;  %v10036_v54 = vld [vmem:[#allocation99_spill] sm:$0xff]  ;;  %v10038_v43 = vld [vmem:[#allocation122_spill] sm:$0xff] }
 0x335   :  { %v5602_v37 = vsel %vm5342_vm11, %v5143_v33, -inf  ;;  %v3829_v41 = vadd.f32 %v3627_v35, %v10027_v9  ;;  %3952 = vrot.lane.b32.xlu0 %v10028_v48, %s6549_s1  ;;  %v10029_v33 = vld [vmem:[#allocation64_spill] sm:$0xff]  ;;  %v5442_v35 = vrot.slane %v5441_v22, 4  ;;  %v5599_v48 = vmax.f32 %v5597_v12, %v5598_v21  ;;  %v10034_v21 = vld [vmem:[#allocation39_spill] sm:$0xff] }
 0x336   :  { %v5603_v2 = vrot.slane %v5602_v37, 4  ;;  %3954 = vrot.lane.b32.xlu1 %v8607_v63, %s6549_s1  ;;  %v8936_v9 = vadd.f32 %v10029_v33, %v7875_v25  ;;  %v8939_v31 = vsel %vm2327_vm3, %v5398_v47, %v5391_v14  ;;  %v10031_v63 = vld [vmem:[#allocation24_spill] sm:$0xff]  ;;  %v8953_v12 = vmax.f32 %v5434_v13, %v5435_v19  ;;  %v10035_v47 = vld [vmem:[#allocation123_spill] sm:$0xff]  ;;  %v10039_v14 = vld [vmem:[#allocation45_spill] sm:$0xff] }
 0x337   :  { %v4213_v0 = vadd.f32 %v4011_v59, %v3829_v41  ;;  %v8932_v6 = vpop.permute.xlu0 %3632  ;;  %v8945_v61 = vadd.f32 %v10032_v7, %v10031_v63  ;;  %v8951_v41 = vmax.f32 %v5427_v11, %v5428_v45  ;;  %v4866_v39 = vrot.slane %v4859_v40, %v6652_v52  ;;  %v10037_v13 = vld [vmem:[#allocation36_spill] sm:$0xff]  ;;  %v10040_v33 = vld [vmem:[#allocation125_spill] sm:$0xff] }
 0x338   :  { %10030 = vst [vmem:[#allocation16_spill] sm:$0xff] %v8936_v9  ;;  %v5604_v26 = vmax.f32 %v5602_v37, %v5603_v2  ;;  %v3631_v58 = vpop.permute.xlu1 %3630  ;;  %v4851_v2 = vrot.slane %v4844_v30, %v6652_v52  ;;  %v4881_v63 = vrot.slane %v4874_v16, %v6652_v52  ;;  %v3793_v5 = vadd.f32 %v10035_v47, %v10034_v21  ;;  %v10041_v7 = vld [vmem:[#allocation40_spill] sm:$0xff] }
 0x339   :  { %10033 = vst [vmem:[#allocation74_spill] sm:$0xff] %v8945_v61  ;;  %3976 = vrot.lane.b32.xlu0 %v8255_v32, %s6549_s1  ;;  %v3831_v3 = vadd.f32 %v3631_v58, %v10036_v54  ;;  %v8965_v11 = vmax.f32 %v5441_v22, %v5442_v35  ;;  %v3792_v37 = vadd.f32 %v10038_v43, %v10037_v13  ;;  %v5600_v45 = vrot.slane %v5599_v48, 1  ;;  %v10042_v16 = vld [vmem:[#allocation128_spill] sm:$0xff] }
 0x33a   :  { %v5605_v59 = vrot.slane %v5604_v26, 2  ;;  %3978 = vrot.lane.b32.xlu1 %v8631_v42, %s6549_s1  ;;  %v3795_v40 = vadd.f32 %v10040_v33, %v10039_v14  ;;  %v3794_v25 = vadd.f32 %v10042_v16, %v10041_v7  ;;  %v4177_v21 = vadd.f32 %v8517_v55, %v3793_v5  ;;  %v10043_v22 = vld [vmem:[#allocation124_spill] sm:$0xff]  ;;  %v10045_v5 = vld [vmem:[#allocation47_spill] sm:$0xff]  ;;  %v10047_v16 = vld [vmem:[#allocation126_spill] sm:$0xff] }
 0x33b   :  { %v8963_v56 = vpop.permute.xlu0 %3636  ;;  %v8977_v58 = vrot.slane %v4851_v2, %v6652_v52  ;;  %v4176_v35 = vadd.f32 %v10043_v22, %v3792_v37  ;;  %v8985_v13 = vrot.slane %v4866_v39, %v6652_v52  ;;  %v8988_v55 = vrot.slane %v4881_v63, %v6652_v52  ;;  %v10048_v39 = vld [vmem:[#allocation41_spill] sm:$0xff] }
 0x33c   :  { %v5606_v19 = vmax.f32 %v5604_v26, %v5605_v59  ;;  %v4015_v30 = vpop.permute.xlu1 %4014  ;;  %v10044_v26 = vld [vmem:[#allocation100_spill] sm:$0xff]  ;;  %v4179_v2 = vadd.f32 %v8551_v44, %v3795_v40  ;;  %v5601_v37 = vmax.f32 %v5599_v48, %v5600_v45  ;;  %v4371_v33 = vadd.f32 %v8528_v53, %v4213_v0  ;;  %v10053_v40 = vld [vmem:[#allocation138_spill] sm:$0xff]  ;;  %v10065_v42 = vld [vmem:[#allocation161_spill] sm:$0xff] }
 0x33d   :  { %v4215_v47 = vadd.f32 %v4015_v30, %v3831_v3  ;;  %4000 = vrot.lane.b32.xlu0 %v8352_v34, %s6549_s1  ;;  %v3828_v59 = vadd.f32 %v8903_v38, %v10044_v26  ;;  %v10046_v3 = vld [vmem:[#allocation127_spill] sm:$0xff]  ;;  %v4178_v22 = vadd.f32 %v10047_v16, %v3794_v25  ;;  %v10049_v26 = vld [vmem:[#allocation132_spill] sm:$0xff]  ;;  %v4335_v63 = vadd.f32 %v8528_v53, %v4177_v21 }
 0x33e   :  { %v5607_v54 = vrot.slane %v5606_v19, 1  ;;  %4002 = vrot.lane.b32.xlu1 %v8652_v23, %s6549_s1  ;;  %v3797_v43 = vadd.f32 %v10046_v3, %v10045_v5  ;;  %v3796_v9 = vadd.f32 %v10049_v26, %v10048_v39  ;;  %v10050_v5 = vld [vmem:[#allocation121_spill] sm:$0xff]  ;;  %v4334_v44 = vadd.f32 %v8541_v57, %v4176_v35  ;;  %v10051_v0 = vld [vmem:[#allocation104_spill] sm:$0xff]  ;;  %v10057_v35 = vld [vmem:[#allocation162_spill] sm:$0xff] }
 0x33f   :  { %v4009_v30 = vpop.permute.xlu0 %4008  ;;  %v3830_v45 = vadd.f32 %v8922_v18, %v10051_v0  ;;  %v4373_v16 = vadd.f32 %v8545_v36, %v4215_v47  ;;  %v4336_v26 = vadd.f32 %v8561_v28, %v4178_v22  ;;  %v4431_v0 = vmax.f32 %v4335_v63, 0.0  ;;  %v10063_v63 = vld [vmem:[#allocation52_spill] sm:$0xff] }
 0x340   :  { %v5608_v14 = vmax.f32 %v5606_v19, %v5607_v54  ;;  %v4212_v38 = vadd.f32 %v4009_v30, %v3828_v59  ;;  %v8994_v7 = vpop.permute.xlu1 %3634  ;;  %v4181_v34 = vadd.f32 %v8615_v15, %v3797_v43  ;;  %v10052_v19 = vld [vmem:[#allocation157_spill] sm:$0xff]  ;;  %v4180_v21 = vadd.f32 %v10053_v40, %v3796_v9  ;;  %v10056_v43 = vld [vmem:[#allocation55_spill] sm:$0xff] }
 0x341   :  { %4024 = vrot.lane.b32.xlu0 %v10050_v5, %s6549_s1  ;;  %v4337_v15 = vadd.f32 %v8545_v36, %v4179_v2  ;;  %v10054_v54 = vld [vmem:[#allocation53_spill] sm:$0xff]  ;;  %v3807_v30 = vadd.f32 %v10057_v35, %v10056_v43  ;;  %v10058_v2 = vcombine.high %v8768_v10, %v8768_v10  ;;  %v10061_v43 = vld [vmem:[#allocation14_spill] sm:$0xff]  ;;  %v10062_v35 = vld [vmem:[#allocation148_spill] sm:$0xff]  ;;  %v4469_v32 = vmax.f32 %v4373_v16, 0.0 }
 0x342   :  { %v9005_v48 = vsel %vm2327_vm3, %v5608_v14, %v5601_v37  ;;  %v4370_v25 = vadd.f32 %v8541_v57, %v4212_v38  ;;  %4026 = vrot.lane.b32.xlu1 %v10052_v19, %s6549_s1  ;;  %v10055_v59 = vld [vmem:[#allocation153_spill] sm:$0xff]  ;;  %v4467_v14 = vmax.f32 %v4371_v33, 0.0  ;;  %v4339_v9 = vadd.f32 %v8568_v46, %v4181_v34 }
 0x343   :  { %v3806_v3 = vadd.f32 %v10055_v59, %v10054_v54  ;;  %v4013_v37 = vpop.permute.xlu0 %4012  ;;  %v10059_v40 = vld [vmem:[#allocation149_spill] sm:$0xff]  ;;  %v10060_v59 = vld [vmem:[#allocation130_spill] sm:$0xff]  ;;  %v4430_v33 = vmax.f32 %v4334_v44, 0.0  ;;  %v4338_v22 = vadd.f32 %v8595_v1, %v4180_v21  ;;  %v4433_v34 = vmax.f32 %v4337_v15, 0.0  ;;  %v10067_v15 = vld [vmem:[#allocation155_spill] sm:$0xff] }
 0x344   :  { %v4466_v18 = vmax.f32 %v4370_v25, 0.0  ;;  %v4214_v39 = vadd.f32 %v4013_v37, %v3830_v45  ;;  %v9019_v38 = vpop.permute.xlu1 %3638  ;;  %v3804_v54 = vadd.f32 %v10059_v40, %v10058_v2  ;;  %v10064_v37 = vld [vmem:[#allocation151_spill] sm:$0xff]  ;;  %v4435_v21 = vmax.f32 %v4339_v9, 0.0 }
 0x345   :  { %3860 = vrot.lane.b32.xlu0 %v10060_v59, %s6549_s1  ;;  %v4190_v47 = vadd.f32 %v10061_v43, %v3806_v3  ;;  %v3805_v5 = vadd.f32 %v10064_v37, %v10063_v63  ;;  %v10066_v59 = vld [vmem:[#allocation159_spill] sm:$0xff]  ;;  %v9043_v43 = vcombine.low %v4430_v33, %v4431_v0  ;;  %v10068_v63 = vld [vmem:[#allocation134_spill] sm:$0xff] }
 0x346   :  { %v5204_v25 = vcombine.low %v4466_v18, %v4467_v14  ;;  %v4372_v45 = vadd.f32 %v8561_v28, %v4214_v39  ;;  %3862 = vrot.lane.b32.xlu1 %v10062_v35, %s6549_s1  ;;  %v4188_v2 = vadd.f32 %v10065_v42, %v3804_v54  ;;  %v4191_v44 = vadd.f32 %v10066_v59, %v3807_v30  ;;  %v10069_v42 = vld [vmem:[#allocation59_spill] sm:$0xff]  ;;  %v10070_v54 = vld [vmem:[#allocation158_spill] sm:$0xff] }
 0x347   :  { %v9037_v40 = vpop.permute.xlu0 %3640  ;;  %v4432_v39 = vmax.f32 %v4336_v26, 0.0  ;;  %v4189_v35 = vadd.f32 %v10067_v15, %v3805_v5  ;;  %v3808_v37 = vadd.f32 %v10070_v54, %v10069_v42  ;;  %v4348_v30 = vadd.f32 %v8561_v28, %v4190_v47  ;;  %v10072_v5 = vld [vmem:[#allocation56_spill] sm:$0xff]  ;;  %v10073_v33 = vld [vmem:[#allocation62_spill] sm:$0xff] }
 0x348   :  { %v5211_v3 = vrot.slane %v5204_v25, %v6652_v52  ;;  %v4468_v14 = vmax.f32 %v4372_v45, 0.0  ;;  %v9041_v18 = vpop.permute.xlu1 %3642  ;;  %v10071_v45 = vld [vmem:[#allocation13_spill] sm:$0xff]  ;;  %v4434_v26 = vmax.f32 %v4338_v22, 0.0  ;;  %v4346_v9 = vadd.f32 %v8541_v57, %v4188_v2 }
 0x349   :  { %3884 = vrot.lane.b32.xlu0 %v10068_v63, %s6549_s1  ;;  %v9054_v0 = vcombine.low %v4432_v39, %v4433_v34  ;;  %v3809_v59 = vadd.f32 %v10073_v33, %v10072_v5  ;;  %v4349_v63 = vadd.f32 %v8545_v36, %v4191_v44  ;;  %v4347_v54 = vadd.f32 %v8528_v53, %v4189_v35  ;;  %v10074_v39 = vld [vmem:[#allocation139_spill] sm:$0xff] }
 0x34a   :  { %v5218_v16 = vrot.slane %v5211_v3, %v6652_v52  ;;  %v5219_v25 = vcombine.low %v4468_v14, %v4469_v32  ;;  %3886 = vrot.lane.b32.xlu1 %v10071_v45, %s6549_s1  ;;  %v4964_v14 = vcombine.low %v4434_v26, %v4435_v21  ;;  %v4444_v2 = vmax.f32 %v4348_v30, 0.0  ;;  %v10075_v45 = vld [vmem:[#allocation78_spill] sm:$0xff]  ;;  %v10077_v35 = vld [vmem:[#allocation87_spill] sm:$0xff] }
 0x34b   :  { %v3969_v15 = vpop.permute.xlu0 %3968  ;;  %v3820_v5 = vadd.f32 %v8842_v17, %v10075_v45  ;;  %v4442_v21 = vmax.f32 %v4346_v9, 0.0  ;;  %v4443_v9 = vmax.f32 %v4347_v54, 0.0  ;;  %v4956_v54 = vrot.slane %v9054_v0, %v6652_v52 }
 0x34c   :  { %v5637_v42 = vsel %vm5342_vm11, %v5218_v16, -inf  ;;  %v5226_v47 = vrot.slane %v5219_v25, %v6652_v52  ;;  %v4192_v3 = vadd.f32 %v3969_v15, %v3808_v37  ;;  %v3971_v32 = vpop.permute.xlu1 %3970  ;;  %v10076_v37 = vcombine.high %v8538_v60, %v8538_v60 }
 0x34d   :  { %v5638_v22 = vrot.slane %v5637_v42, 4  ;;  %v4193_v34 = vadd.f32 %v3971_v32, %v3809_v59  ;;  %3908 = vrot.lane.b32.xlu0 %v10074_v39, %s6549_s1  ;;  %v3821_v25 = vadd.f32 %v8806_v50, %v10077_v35  ;;  %v4445_v59 = vmax.f32 %v4349_v63, 0.0  ;;  %v10079_v50 = vld [vmem:[#allocation108_spill] sm:$0xff] }
 0x34e   :  { %v5233_v44 = vrot.slane %v5226_v47, %v6652_v52  ;;  %v4350_v16 = vadd.f32 %v8595_v1, %v4192_v3  ;;  %3910 = vrot.lane.b32.xlu1 %v10076_v37, %s6549_s1  ;;  %v10078_v37 = vld [vmem:[#allocation143_spill] sm:$0xff]  ;;  %v10080_v63 = vcombine.high %v8573_v29, %v8573_v29 }
 0x34f   :  { %v5639_v26 = vmax.f32 %v5637_v42, %v5638_v22  ;;  %v4351_v33 = vadd.f32 %v8568_v46, %v4193_v34  ;;  %v3993_v30 = vpop.permute.xlu0 %3992  ;;  %v5039_v28 = vcombine.low %v4444_v2, %v4445_v59  ;;  %v3832_v42 = vadd.f32 %v8932_v6, %v10079_v50 }
 0x350   :  { %v5644_v17 = vsel %vm5342_vm11, %v5233_v44, -inf  ;;  %v4446_v15 = vmax.f32 %v4350_v16, 0.0  ;;  %v4204_v47 = vadd.f32 %v3993_v30, %v3820_v5  ;;  %v3995_v32 = vpop.permute.xlu1 %3994  ;;  %v5024_v2 = vcombine.low %v4442_v21, %v4443_v9 }
 0x351   :  { %v5640_v3 = vrot.slane %v5639_v26, 2  ;;  %v5645_v39 = vrot.slane %v5644_v17, 4  ;;  %v4447_v45 = vmax.f32 %v4351_v33, 0.0  ;;  %v4205_v36 = vadd.f32 %v3995_v32, %v3821_v25  ;;  %3932 = vrot.lane.b32.xlu0 %v10078_v37, %s6549_s1  ;;  %v10081_v25 = vld [vmem:[#allocation106_spill] sm:$0xff] }
 0x352   :  { %v4362_v22 = vadd.f32 %v8595_v1, %v4204_v47  ;;  %3934 = vrot.lane.b32.xlu1 %v10080_v63, %s6549_s1  ;;  %v3833_v6 = vadd.f32 %v8994_v7, %v10081_v25  ;;  %v4971_v59 = vrot.slane %v4964_v14, %v6652_v52  ;;  %v5469_v7 = vsel %vm5342_vm11, %v8977_v58, -inf  ;;  %v10083_v63 = vld [vmem:[#allocation152_spill] sm:$0xff] }
 0x353   :  { %v5641_v34 = vmax.f32 %v5639_v26, %v5640_v3  ;;  %v5646_v5 = vmax.f32 %v5644_v17, %v5645_v39  ;;  %v9086_v44 = vcombine.low %v4446_v15, %v4447_v45  ;;  %v4363_v16 = vadd.f32 %v8568_v46, %v4205_v36  ;;  %v4017_v35 = vpop.permute.xlu0 %4016  ;;  %v10082_v17 = vld [vmem:[#allocation147_spill] sm:$0xff] }
 0x354   :  { %v4216_v33 = vadd.f32 %v4017_v35, %v3832_v42  ;;  %v4019_v30 = vpop.permute.xlu1 %4018  ;;  %v4458_v32 = vmax.f32 %v4362_v22, 0.0  ;;  %v4941_v36 = vrot.slane %v9043_v43, %v6652_v52  ;;  %v5046_v15 = vrot.slane %v5039_v28, %v6652_v52 }
 0x355   :  { %v5647_v47 = vrot.slane %v5646_v5, 2  ;;  %v4459_v26 = vmax.f32 %v4363_v16, 0.0  ;;  %3956 = vrot.lane.b32.xlu0 %v10082_v17, %s6549_s1  ;;  %v4217_v21 = vadd.f32 %v4019_v30, %v3833_v6  ;;  %v5642_v14 = vrot.slane %v5641_v34, 1 }
 0x356   :  { %v4374_v0 = vadd.f32 %v8595_v1, %v4216_v33  ;;  %3958 = vrot.lane.b32.xlu1 %v8768_v10, %s6549_s1  ;;  %v5476_v37 = vsel %vm5342_vm11, %v8985_v13, -inf  ;;  %v4963_v43 = vrot.slane %v4956_v54, %v6652_v52  ;;  %v5031_v28 = vrot.slane %v5024_v2, %v6652_v52  ;;  %v10084_v54 = vld [vmem:[#allocation65_spill] sm:$0xff] }
 0x357   :  { %v5648_v3 = vmax.f32 %v5646_v5, %v5647_v47  ;;  %v5144_v39 = vcombine.low %v4458_v32, %v4459_v26  ;;  %v9104_v45 = vpop.permute.xlu0 %3476  ;;  %v4375_v9 = vadd.f32 %v8568_v46, %v4217_v21  ;;  %v5483_v10 = vsel %vm5342_vm11, %v8988_v55, -inf }
 0x358   :  { %v9111_v50 = vpop.permute.xlu1 %3478  ;;  %v4978_v58 = vrot.slane %v4971_v59, %v6652_v52  ;;  %v4948_v13 = vrot.slane %v4941_v36, %v6652_v52  ;;  %v5053_v5 = vrot.slane %v5046_v15, %v6652_v52  ;;  %v4470_v16 = vmax.f32 %v4374_v0, 0.0  ;;  %v10085_v0 = vld [vmem:[#allocation156_spill] sm:$0xff] }
 0x359   :  { %v5649_v42 = vrot.slane %v5648_v3, 1  ;;  %v5151_v22 = vrot.slane %v5144_v39, %v6652_v52  ;;  %3980 = vrot.lane.b32.xlu0 %v10083_v63, %s6549_s1  ;;  %v4471_v35 = vmax.f32 %v4375_v9, 0.0  ;;  %v5477_v2 = vrot.slane %v5476_v37, 4 }
 0x35a   :  { %3982 = vrot.lane.b32.xlu1 %v10084_v54, %s6549_s1  ;;  %v5643_v25 = vmax.f32 %v5641_v34, %v5642_v14  ;;  %v5470_v30 = vrot.slane %v5469_v7, 4  ;;  %v5518_v59 = vsel %vm5342_vm11, %v4963_v43, -inf  ;;  %v5038_v47 = vrot.slane %v5031_v28, %v6652_v52 }
 0x35b   :  { %v5650_v55 = vmax.f32 %v5648_v3, %v5649_v42  ;;  %v5158_v6 = vrot.slane %v5151_v22, %v6652_v52  ;;  %v9124_v33 = vpop.permute.xlu0 %3500  ;;  %v5234_v32 = vcombine.low %v4470_v16, %v4471_v35  ;;  %v5484_v17 = vrot.slane %v5483_v10, 4 }
 0x35c   :  { %v9128_v26 = vpop.permute.xlu1 %3502  ;;  %v5525_v36 = vsel %vm5342_vm11, %v4978_v58, -inf  ;;  %v5511_v21 = vsel %vm5342_vm11, %v4948_v13, -inf  ;;  %v5560_v14 = vsel %vm5342_vm11, %v5053_v5, -inf  ;;  %v10086_v43 = vcombine.high %v8652_v23, %v8652_v23 }
 0x35d   :  { %v9132_v15 = vsel %vm2327_vm3, %v5650_v55, %v5643_v25  ;;  %v5609_v34 = vsel %vm5342_vm11, %v5158_v6, -inf  ;;  %4004 = vrot.lane.b32.xlu0 %v10085_v0, %s6549_s1  ;;  %v5241_v39 = vrot.slane %v5234_v32, %v6652_v52  ;;  %v5478_v28 = vmax.f32 %v5476_v37, %v5477_v2 }
 0x35e   :  { %v5610_v3 = vrot.slane %v5609_v34, 4  ;;  %4006 = vrot.lane.b32.xlu1 %v10086_v43, %s6549_s1  ;;  %v5519_v9 = vrot.slane %v5518_v59, 4  ;;  %v5061_v58 = vrot.slane %v9086_v44, %v6652_v52  ;;  %v3358_v22 = vcombine.high %v10052_v19, %v10052_v19  ;;  %v10087_v44 = vld [vmem:[#allocation160_spill] sm:$0xff] }
 0x35f   :  { %v9146_v42 = vpop.permute.xlu0 %3524  ;;  %v5526_v63 = vrot.slane %v5525_v36, 4  ;;  %v5553_v13 = vsel %vm5342_vm11, %v5038_v47, -inf  ;;  %v5248_v16 = vrot.slane %v5241_v39, %v6652_v52  ;;  %v5437_v54 = vrot.slane %v8953_v12, 2 }
 0x360   :  { %v5611_v5 = vmax.f32 %v5609_v34, %v5610_v3  ;;  %v9152_v35 = vpop.permute.xlu1 %3526  ;;  %v5485_v37 = vmax.f32 %v5483_v10, %v5484_v17  ;;  %v5512_v2 = vrot.slane %v5511_v21, 4  ;;  %v5561_v25 = vrot.slane %v5560_v14, 4 }
 0x361   :  { %4028 = vrot.lane.b32.xlu0 %v10087_v44, %s6549_s1  ;;  %v5444_v55 = vrot.slane %v8965_v11, 2  ;;  %v5471_v6 = vmax.f32 %v5469_v7, %v5470_v30  ;;  %v5651_v0 = vsel %vm5342_vm11, %v5248_v16, -inf  ;;  %v5520_v47 = vmax.f32 %v5518_v59, %v5519_v9 }
 0x362   :  { %v5612_v32 = vrot.slane %v5611_v5, 2  ;;  %4030 = vrot.lane.b32.xlu1 %v3358_v22, %s6549_s1  ;;  %v5554_v34 = vrot.slane %v5553_v13, 4  ;;  %v5068_v3 = vrot.slane %v5061_v58, %v6652_v52  ;;  %v5652_v39 = vrot.slane %v5651_v0, 4 }
 0x363   :  { %v9161_v43 = vpop.permute.xlu0 %3548  ;;  %v5430_v10 = vrot.slane %v8951_v41, 2  ;;  %v5479_v17 = vrot.slane %v5478_v28, 2  ;;  %v5527_v53 = vmax.f32 %v5525_v36, %v5526_v63  ;;  %v5486_v7 = vrot.slane %v5485_v37, 2 }
 0x364   :  { %10088 = vst [vmem:[#allocation22_spill] sm:$0xff] %v9161_v43  ;;  %v5613_v44 = vmax.f32 %v5611_v5, %v5612_v32  ;;  %v9164_v57 = vpop.permute.xlu1 %3550  ;;  %v5513_v30 = vmax.f32 %v5511_v21, %v5512_v2  ;;  %v5562_v19 = vmax.f32 %v5560_v14, %v5561_v25  ;;  %v5653_v16 = vmax.f32 %v5651_v0, %v5652_v39 }
 0x365   :  { %v5438_v22 = vmax.f32 %v8953_v12, %v5437_v54  ;;  %v5445_v59 = vmax.f32 %v8965_v11, %v5444_v55  ;;  %v5472_v9 = vrot.slane %v5471_v6, 2  ;;  %v5521_v23 = vrot.slane %v5520_v47, 2 }
 0x366   :  { %v5614_v58 = vrot.slane %v5613_v44, 1  ;;  %v5555_v61 = vmax.f32 %v5553_v13, %v5554_v34  ;;  %v5567_v52 = vsel %vm5342_vm11, %v5068_v3, -inf  ;;  %v5654_v29 = vrot.slane %v5653_v16, 2 }
 0x367   :  { %v9169_v43 = vpop.permute.xlu0 %3572  ;;  %v5431_v36 = vmax.f32 %v8951_v41, %v5430_v10  ;;  %v5480_v63 = vmax.f32 %v5478_v28, %v5479_v17  ;;  %v5528_v5 = vrot.slane %v5527_v53, 2  ;;  %v5487_v2 = vmax.f32 %v5485_v37, %v5486_v7 }
 0x368   :  { %v5615_v21 = vmax.f32 %v5613_v44, %v5614_v58  ;;  %v9172_v14 = vpop.permute.xlu1 %3574  ;;  %v5514_v12 = vrot.slane %v5513_v30, 2  ;;  %v5563_v54 = vrot.slane %v5562_v19, 2  ;;  %v5655_v11 = vmax.f32 %v5653_v16, %v5654_v29 }
 0x369   :  { %v5439_v25 = vrot.slane %v5438_v22, 1  ;;  %v5473_v55 = vmax.f32 %v5471_v6, %v5472_v9  ;;  %v5568_v32 = vrot.slane %v5567_v52, 4  ;;  %v5446_v0 = vrot.slane %v5445_v59, 1 }
 0x36a   :  { %v9176_v13 = vsel %vm2329_vm4, %v5615_v21, %v9005_v48  ;;  %v5522_v34 = vmax.f32 %v5520_v47, %v5521_v23  ;;  %v5556_v3 = vrot.slane %v5555_v61, 2  ;;  %v5656_v41 = vrot.slane %v5655_v11, 1  ;;  %v10091_v23 = vld [vmem:[#allocation19_spill] sm:$0xff]  ;;  %v10092_v47 = vld [vmem:[#allocation86_spill] sm:$0xff] }
 0x36b   :  { %10089 = vst [vmem:[#allocation75_spill] sm:$0xff] %v9176_v13  ;;  %v9178_v28 = vpop.permute.xlu0 %3596  ;;  %v9183_v37 = vsel %vm2329_vm4, %v8941_v49, %v8939_v31  ;;  %v5432_v39 = vrot.slane %v5431_v36, 1  ;;  %v5481_v29 = vrot.slane %v5480_v63, 1  ;;  %v5529_v10 = vmax.f32 %v5527_v53, %v5528_v5 }
 0x36c   :  { %10090 = vst [vmem:[#allocation79_spill] sm:$0xff] %v9178_v28  ;;  %v9185_v6 = vpop.permute.xlu1 %3598  ;;  %v5488_v17 = vrot.slane %v5487_v2, 1  ;;  %v5515_v44 = vmax.f32 %v5513_v30, %v5514_v12  ;;  %v5564_v48 = vmax.f32 %v5562_v19, %v5563_v54  ;;  %v5657_v7 = vmax.f32 %v5655_v11, %v5656_v41  ;;  %v10094_v30 = vld [vmem:[#allocation25_spill] sm:$0xff] }
 0x36d   :  { %v5440_v16 = vmax.f32 %v5438_v22, %v5439_v25  ;;  %v9189_v9 = vadd.f32 %v10092_v47, %v10091_v23  ;;  %v5474_v58 = vrot.slane %v5473_v55, 1  ;;  %v5569_v21 = vmax.f32 %v5567_v52, %v5568_v32  ;;  %v10095_v19 = vld [vmem:[#allocation89_spill] sm:$0xff]  ;;  %v10097_v52 = vld [vmem:[#allocation91_spill] sm:$0xff] }
 0x36e   :  { %v5447_v13 = vmax.f32 %v5445_v59, %v5446_v0  ;;  %v5523_v28 = vrot.slane %v5522_v34, 1  ;;  %v5557_v31 = vmax.f32 %v5555_v61, %v5556_v3  ;;  %v9193_v49 = vsel %vm2329_vm4, %v5657_v7, %v9132_v15  ;;  %v10096_v25 = vld [vmem:[#allocation21_spill] sm:$0xff]  ;;  %v10101_v23 = vld [vmem:[#allocation115_spill] sm:$0xff] }
 0x36f   :  { %10093 = vst [vmem:[#allocation18_spill] sm:$0xff] %v9193_v49  ;;  %v9195_v53 = vpop.permute.xlu0 %3620  ;;  %v5433_v5 = vmax.f32 %v5431_v36, %v5432_v39  ;;  %v9199_v12 = vadd.f32 %v10095_v19, %v10094_v30  ;;  %v5482_v22 = vmax.f32 %v5480_v63, %v5481_v29  ;;  %v5530_v54 = vrot.slane %v5529_v10, 1  ;;  %v10098_v3 = vld [vmem:[#allocation33_spill] sm:$0xff]  ;;  %v10100_v29 = vld [vmem:[#allocation35_spill] sm:$0xff]  ;;  %v10111_v49 = vld [vmem:[#allocation144_spill] sm:$0xff] }
 0x370   :  { %v9201_v11 = vpop.permute.xlu1 %3622  ;;  %v9205_v59 = vadd.f32 %v10097_v52, %v10096_v25  ;;  %v5489_v61 = vmax.f32 %v5487_v2, %v5488_v17  ;;  %v5516_v32 = vrot.slane %v5515_v44, 1  ;;  %v5565_v0 = vrot.slane %v5564_v48, 1  ;;  %v10099_v41 = vld [vmem:[#allocation105_spill] sm:$0xff]  ;;  %v10104_v52 = vld [vmem:[#allocation34_spill] sm:$0xff] }
 0x371   :  { %v5737_v15 = vsel %vm2327_vm3, %v5440_v16, %v5433_v5  ;;  %v9210_v36 = vadd.f32 %v10099_v41, %v10098_v3  ;;  %v5475_v39 = vmax.f32 %v5473_v55, %v5474_v58  ;;  %v5570_v7 = vrot.slane %v5569_v21, 2  ;;  %v10102_v16 = vld [vmem:[#allocation32_spill] sm:$0xff]  ;;  %v10103_v5 = vld [vmem:[#allocation117_spill] sm:$0xff] }
 0x372   :  { %v9213_v63 = vsel %vm2329_vm4, %v5447_v13, %v5737_v15  ;;  %v9217_v47 = vadd.f32 %v10101_v23, %v10100_v29  ;;  %v5524_v30 = vmax.f32 %v5522_v34, %v5523_v28  ;;  %v5558_v19 = vrot.slane %v5557_v31, 1  ;;  %v10105_v55 = vld [vmem:[#allocation120_spill] sm:$0xff]  ;;  %v10106_v34 = vld [vmem:[#allocation49_spill] sm:$0xff]  ;;  %v10107_v28 = vld [vmem:[#allocation131_spill] sm:$0xff] }
 0x373   :  { %v9219_v2 = vpop.permute.xlu0 %3644  ;;  %v5742_v17 = vsel %vm2327_vm3, %v5482_v22, %v5475_v39  ;;  %v9224_v25 = vadd.f32 %v10103_v5, %v10102_v16  ;;  %v9228_v58 = vadd.f32 %v10105_v55, %v10104_v52  ;;  %v5531_v13 = vmax.f32 %v5529_v10, %v5530_v54  ;;  %v10108_v39 = vld [vmem:[#allocation42_spill] sm:$0xff]  ;;  %v10110_v5 = vld [vmem:[#allocation51_spill] sm:$0xff]  ;;  %v10113_v55 = vld [vmem:[#allocation145_spill] sm:$0xff] }
 0x374   :  { %v9230_v15 = vpop.permute.xlu1 %3646  ;;  %v9233_v3 = vsel %vm2329_vm4, %v5489_v61, %v5742_v17  ;;  %v9237_v41 = vadd.f32 %v10107_v28, %v10106_v34  ;;  %v5517_v29 = vmax.f32 %v5515_v44, %v5516_v32  ;;  %v5566_v22 = vmax.f32 %v5564_v48, %v5565_v0  ;;  %v10109_v23 = vld [vmem:[#allocation142_spill] sm:$0xff]  ;;  %v10112_v17 = vld [vmem:[#allocation43_spill] sm:$0xff]  ;;  %v10117_v28 = vld [vmem:[#allocation57_spill] sm:$0xff] }
 0x375   :  { %v9241_v16 = vadd.f32 %v10109_v23, %v10108_v39  ;;  %v9245_v52 = vadd.f32 %v10111_v49, %v10110_v5  ;;  %v5571_v10 = vmax.f32 %v5569_v21, %v5570_v7  ;;  %v9249_v54 = vcombine.high %v8595_v1, %v8595_v1  ;;  %v10114_v21 = vld [vmem:[#allocation61_spill] sm:$0xff]  ;;  %v10115_v0 = vld [vmem:[#allocation163_spill] sm:$0xff]  ;;  %v10119_v23 = vld [vmem:[#allocation164_spill] sm:$0xff] }
 0x376   :  { %v5747_v61 = vsel %vm2327_vm3, %v5524_v30, %v5517_v29  ;;  %v9254_v34 = vadd.f32 %v10113_v55, %v10112_v17  ;;  %v5559_v44 = vmax.f32 %v5557_v31, %v5558_v19  ;;  %v9258_v32 = vcombine.high %v8568_v46, %v8568_v46  ;;  %v10116_v1 = vld [vmem:[#allocation63_spill] sm:$0xff]  ;;  %v10120_v5 = vld [vmem:[#allocation69_spill] sm:$0xff] }
 0x377   :  { %v3853_v48 = vpop.permute.xlu0 %3852  ;;  %v9261_v49 = vsel %vm2329_vm4, %v5531_v13, %v5747_v61  ;;  %v9265_v7 = vadd.f32 %v10115_v0, %v10114_v21  ;;  %v9269_v30 = vadd.f32 %v10117_v28, %v10116_v1  ;;  %v10118_v19 = vld [vmem:[#allocation67_spill] sm:$0xff]  ;;  %v10121_v13 = vld [vmem:[#allocation165_spill] sm:$0xff]  ;;  %v10123_v21 = vld [vmem:[#allocation90_spill] sm:$0xff]  ;;  %v9297_v28 = vadd.f32 %v8890_v62, %v9992_v8 }
 0x378   :  { %v4134_v29 = vadd.f32 %v3853_v48, %v8796_v51  ;;  %v3855_v39 = vpop.permute.xlu1 %3854  ;;  %v5752_v31 = vsel %vm2327_vm3, %v5566_v22, %v5559_v44  ;;  %v9275_v46 = vadd.f32 %v10119_v23, %v10118_v19  ;;  %v9279_v61 = vadd.f32 %v10121_v13, %v10120_v5  ;;  %v10122_v17 = vld [vmem:[#allocation9_spill] sm:$0xff]  ;;  %v10124_v1 = vld [vmem:[#allocation80_spill] sm:$0xff] }
 0x379   :  { %v4135_v55 = vadd.f32 %v3855_v39, %v10122_v17  ;;  %v9284_v0 = vadd.f32 %v8848_v27, %v10123_v21  ;;  %v9288_v51 = vadd.f32 %v8860_v20, %v10124_v1  ;;  %v5572_v48 = vrot.slane %v5571_v10, 1  ;;  %10125 = vst [vmem:[#allocation84_spill] sm:$0xff] %v9297_v28  ;;  %v10126_v39 = vld [vmem:[#allocation114_spill] sm:$0xff]  ;;  %v10127_v20 = vld [vmem:[#allocation109_spill] sm:$0xff]  ;;  %v10130_v8 = vld [vmem:[#allocation68_spill] sm:$0xff] }
 0x37a   :  { %v4292_v22 = vadd.f32 %v9249_v54, %v4134_v29  ;;  %v9293_v44 = vadd.f32 %v8885_v4, %v9990_v24  ;;  %v9301_v19 = vadd.f32 %v8963_v56, %v10126_v39  ;;  %v9306_v5 = vadd.f32 %v9019_v38, %v10127_v20  ;;  %v10128_v29 = vld [vmem:[#allocation116_spill] sm:$0xff]  ;;  %v10129_v24 = vld [vmem:[#allocation119_spill] sm:$0xff]  ;;  %v10131_v56 = vld [vmem:[#allocation10_spill] sm:$0xff] }
 0x37b   :  { %v4293_v27 = vadd.f32 %v9258_v32, %v4135_v55  ;;  %v3877_v23 = vpop.permute.xlu0 %3876  ;;  %v9310_v13 = vadd.f32 %v9037_v40, %v10128_v29  ;;  %v9314_v4 = vadd.f32 %v9041_v18, %v10129_v24  ;;  %v9319_v21 = vadd.f32 %v9104_v45, %v10131_v56  ;;  %v10132_v39 = vld [vmem:[#allocation72_spill] sm:$0xff]  ;;  %v10133_v28 = vld [vmem:[#allocation129_spill] sm:$0xff]  ;;  %v10134_v29 = vld [vmem:[#allocation15_spill] sm:$0xff] }
 0x37c   :  { %v4146_v62 = vadd.f32 %v3877_v23, %v10130_v8  ;;  %v3879_v17 = vpop.permute.xlu1 %3878  ;;  %v4388_v55 = vmax.f32 %v4292_v22, 0.0  ;;  %v5573_v20 = vmax.f32 %v5571_v10, %v5572_v48  ;;  %v9324_v40 = vadd.f32 %v9111_v50, %v10133_v28  ;;  %v10135_v24 = vld [vmem:[#allocation133_spill] sm:$0xff]  ;;  %v10136_v45 = vld [vmem:[#allocation23_spill] sm:$0xff]  ;;  %v10138_v28 = vld [vmem:[#allocation22_spill] sm:$0xff] }
 0x37d   :  { %v4389_v1 = vmax.f32 %v4293_v27, 0.0  ;;  %v4147_v38 = vadd.f32 %v3879_v17, %v10132_v39  ;;  %v9328_v18 = vadd.f32 %v9124_v33, %v10134_v29  ;;  %v9333_v8 = vadd.f32 %v9128_v26, %v10135_v24  ;;  %v10137_v33 = vld [vmem:[#allocation37_spill] sm:$0xff]  ;;  %v10140_v39 = vld [vmem:[#allocation7_spill] sm:$0xff]  ;;  %v10141_v29 = vld [vmem:[#allocation74_spill] sm:$0xff] }
 0x37e   :  { %v4304_v23 = vadd.f32 %v9249_v54, %v4146_v62  ;;  %v9337_v22 = vadd.f32 %v9146_v42, %v10136_v45  ;;  %v9342_v50 = vadd.f32 %v9152_v35, %v8538_v60  ;;  %v9346_v17 = vadd.f32 %v10138_v28, %v10137_v33  ;;  %v10139_v62 = vld [vmem:[#allocation141_spill] sm:$0xff]  ;;  %v10142_v35 = vld [vmem:[#allocation50_spill] sm:$0xff]  ;;  %v10145_v28 = vld [vmem:[#allocation79_spill] sm:$0xff] }
 0x37f   :  { %v4619_v27 = vcombine.low %v4388_v55, %v4389_v1  ;;  %v4305_v10 = vadd.f32 %v9258_v32, %v4147_v38  ;;  %v3901_v48 = vpop.permute.xlu0 %3900  ;;  %v9350_v26 = vadd.f32 %v9164_v57, %v10139_v62  ;;  %v9356_v60 = vsel %vm2329_vm4, %v5573_v20, %v5752_v31  ;;  %v10143_v33 = vld [vmem:[#allocation146_spill] sm:$0xff] }
 0x380   :  { %v4158_v56 = vadd.f32 %v3901_v48, %v9189_v9  ;;  %v3903_v42 = vpop.permute.xlu1 %3902  ;;  %v4400_v1 = vmax.f32 %v4304_v23, 0.0  ;;  %v9360_v45 = vadd.f32 %v9169_v43, %v10142_v35  ;;  %v9364_v57 = vadd.f32 %v9172_v14, %v10143_v33  ;;  %v10144_v48 = vld [vmem:[#allocation71_spill] sm:$0xff]  ;;  %v10147_v62 = vld [vmem:[#allocation150_spill] sm:$0xff] }
 0x381   :  { %v4626_v55 = vrot.slane %v4619_v27, %v10140_v39  ;;  %v4401_v38 = vmax.f32 %v4305_v10, 0.0  ;;  %v4159_v24 = vadd.f32 %v3903_v42, %v10141_v29  ;;  %v9369_v27 = vadd.f32 %v10145_v28, %v10144_v48  ;;  %v10149_v42 = vld [vmem:[#allocation95_spill] sm:$0xff]  ;;  %v5925_v28 = vld [vmem:[#allocation2 + $0x30] sm:$0xff] }
 0x382   :  { %v4316_v9 = vadd.f32 %v9249_v54, %v4158_v56  ;;  %v9375_v43 = vadd.f32 %v9185_v6, %v10147_v62  ;;  %v9379_v14 = vadd.f32 %v9195_v53, %v10149_v42  ;;  %v5924_v48 = vld [vmem:[#allocation2 + $0x28] sm:$0xff]  ;;  %v5926_v53 = vld [vmem:[#allocation2 + $0x38] sm:$0xff]  ;;  %v10151_v42 = vld [vmem:[#allocation154_spill] sm:$0xff] }
 0x383   :  { %10146 = vst [vmem:[#allocation85_spill] sm:$0xff] %v9369_v27  ;;  %v4633_v23 = vrot.slane %v4626_v55, %v10140_v39  ;;  %v4709_v10 = vcombine.low %v4400_v1, %v4401_v38  ;;  %v4317_v31 = vadd.f32 %v9258_v32, %v4159_v24  ;;  %v3925_v20 = vpop.permute.xlu0 %3924  ;;  %v5923_v24 = vld [vmem:[#allocation2 + $0x20] sm:$0xff]  ;;  %v5928_v27 = vld [vmem:[#allocation2 + $0x48] sm:$0xff] }
 0x384   :  { %10148 = vst [vmem:[#allocation8_spill] sm:$0xff] %v9375_v43  ;;  %10150 = vst [vmem:[#allocation44_spill] sm:$0xff] %v9379_v14  ;;  %v4412_v29 = vmax.f32 %v4316_v9, 0.0  ;;  %v4170_v56 = vadd.f32 %v3925_v20, %v9210_v36  ;;  %v3927_v35 = vpop.permute.xlu1 %3926  ;;  %v6434_v43 = vpack.c.bf16 %v5924_v48, %v5923_v24  ;;  %v9388_v9 = vadd.f32 %v9201_v11, %v10151_v42  ;;  %v5927_v48 = vld [vmem:[#allocation2 + $0x40] sm:$0xff] }
 0x385   :  { %v5364_v33 = vsel %vm5342_vm11, %v4633_v23, -inf  ;;  %v4716_v55 = vrot.slane %v4709_v10, %v10140_v39  ;;  %v4413_v1 = vmax.f32 %v4317_v31, 0.0  ;;  %v4171_v38 = vadd.f32 %v3927_v35, %v9224_v25 }
 0x386   :  { %v5365_v6 = vrot.slane %v5364_v33, 4  ;;  %v4328_v62 = vadd.f32 %v9249_v54, %v4170_v56  ;;  %v9788_v20 = vmov 0.0|0.0   ;;  %v6437_v24 = vpack.c.bf16 %v5926_v53, %v5925_v28 }
 0x387   :  { %v4723_v36 = vrot.slane %v4716_v55, %v10140_v39  ;;  %v4799_v23 = vcombine.low %v4412_v29, %v4413_v1  ;;  %v4329_v10 = vadd.f32 %v9258_v32, %v4171_v38  ;;  %v3949_v31 = vpop.permute.xlu0 %3948  ;;  %6433 = vmatprep.subr.bf16.mxu1 %v9788_v20  ;;  %6475 = vmatprep.subr.bf16.mxu0 %v9788_v20 }
 0x388   :  { %v5366_v25 = vmax.f32 %v5364_v33, %v5365_v6  ;;  %v4424_v35 = vmax.f32 %v4328_v62, 0.0  ;;  %v4182_v14 = vadd.f32 %v3949_v31, %v9241_v16  ;;  %v3951_v56 = vpop.permute.xlu1 %3950  ;;  %6435 = vmatpush3.bf16.msra.mxu1 %v6434_v43  ;;  %v10152_v33 = vld [vmem:[#allocation121_spill] sm:$0xff] }
 0x389   :  { %v5406_v11 = vsel %vm5342_vm11, %v4723_v36, -inf  ;;  %v4806_v29 = vrot.slane %v4799_v23, %v10140_v39  ;;  %v4425_v55 = vmax.f32 %v4329_v10, 0.0  ;;  %v4183_v1 = vadd.f32 %v3951_v56, %v9237_v41  ;;  %6436 = vmatprep.subr.bf16.mxu1 %v9788_v20 }
 0x38a   :  { %v9401_v38 = vadd.f32 %v9219_v2, %v10152_v33  ;;  %v5367_v16 = vrot.slane %v5366_v25, 2  ;;  %v5407_v43 = vrot.slane %v5406_v11, 4  ;;  %v4340_v28 = vadd.f32 %v9249_v54, %v4182_v14  ;;  %v5929_v2 = vld [vmem:[#allocation2 + $0x50] sm:$0xff]  ;;  %v5930_v33 = vld [vmem:[#allocation2 + $0x58] sm:$0xff] }
 0x38b   :  { %v4813_v6 = vrot.slane %v4806_v29, %v10140_v39  ;;  %v4889_v62 = vcombine.low %v4424_v35, %v4425_v55  ;;  %v4341_v53 = vadd.f32 %v9258_v32, %v4183_v1  ;;  %v3973_v42 = vpop.permute.xlu0 %3972  ;;  %v6440_v36 = vpack.c.bf16 %v5928_v27, %v5927_v48 }
 0x38c   :  { %10153 = vst [vmem:[#allocation46_spill] sm:$0xff] %v9401_v38  ;;  %v5368_v23 = vmax.f32 %v5366_v25, %v5367_v16  ;;  %v5408_v10 = vmax.f32 %v5406_v11, %v5407_v43  ;;  %v4436_v41 = vmax.f32 %v4340_v28, 0.0  ;;  %v4194_v31 = vadd.f32 %v3973_v42, %v9265_v7  ;;  %v3975_v56 = vpop.permute.xlu1 %3974  ;;  %6438 = vmatpush3.bf16.msra.mxu1 %v6437_v24 }
 0x38d   :  { %v5448_v20 = vsel %vm5342_vm11, %v4813_v6, -inf  ;;  %v4896_v14 = vrot.slane %v4889_v62, %v10140_v39  ;;  %v4437_v38 = vmax.f32 %v4341_v53, 0.0  ;;  %v4195_v35 = vadd.f32 %v3975_v56, %v9269_v30 }
 0x38e   :  { %v10154_v29 = vmov 0.0|0.0   ;;  %v5369_v55 = vrot.slane %v5368_v23, 1  ;;  %v5409_v27 = vrot.slane %v5408_v10, 2  ;;  %v5449_v25 = vrot.slane %v5448_v20, 4 }
 0x38f   :  { %6439 = vmatprep.subr.bf16.mxu1 %v10154_v29  ;;  %v4352_v48 = vadd.f32 %v9249_v54, %v4194_v31  ;;  %v4903_v7 = vrot.slane %v4896_v14, %v10140_v39  ;;  %v4979_v11 = vcombine.low %v4436_v41, %v4437_v38  ;;  %v4353_v24 = vadd.f32 %v9258_v32, %v4195_v35  ;;  %v3997_v1 = vpop.permute.xlu0 %3996  ;;  %v10155_v38 = vld [vmem:[#allocation157_spill] sm:$0xff] }
 0x390   :  { %v6443_v16 = vpack.c.bf16 %v5930_v33, %v5929_v2  ;;  %v5370_v43 = vmax.f32 %v5368_v23, %v5369_v55  ;;  %v5410_v28 = vmax.f32 %v5408_v10, %v5409_v27  ;;  %v5450_v6 = vmax.f32 %v5448_v20, %v5449_v25  ;;  %v3999_v53 = vpop.permute.xlu1 %3998  ;;  %6441 = vmatpush3.bf16.msra.mxu1 %v6440_v36 }
 0x391   :  { %v4448_v62 = vmax.f32 %v4352_v48, 0.0  ;;  %v5490_v30 = vsel %vm5342_vm11, %v4903_v7, -inf  ;;  %v4986_v42 = vrot.slane %v4979_v11, %v10140_v39  ;;  %v4449_v56 = vmax.f32 %v4353_v24, 0.0  ;;  %6442 = vmatprep.subr.bf16.mxu1 %v10154_v29 }
 0x392   :  { %v4206_v31 = vadd.f32 %v3997_v1, %v9288_v51  ;;  %v9420_v41 = vadd.f32 %v9230_v15, %v10155_v38  ;;  %v5411_v2 = vrot.slane %v5410_v28, 1  ;;  %v5451_v23 = vrot.slane %v5450_v6, 2  ;;  %v10156_v15 = vld [vmem:[#allocation70_spill] sm:$0xff]  ;;  %v10157_v38 = vld [vmem:[#allocation17_spill] sm:$0xff] }
 0x393   :  { %v5491_v10 = vrot.slane %v5490_v30, 4  ;;  %v4993_v20 = vrot.slane %v4986_v42, %v10140_v39  ;;  %v5069_v33 = vcombine.low %v4448_v62, %v4449_v56  ;;  %v4207_v14 = vadd.f32 %v3999_v53, %v9284_v0  ;;  %v4021_v35 = vpop.permute.xlu0 %4020 }
 0x394   :  { %v4364_v36 = vadd.f32 %v9249_v54, %v4206_v31  ;;  %v5412_v55 = vmax.f32 %v5410_v28, %v5411_v2  ;;  %v5452_v27 = vmax.f32 %v5450_v6, %v5451_v23  ;;  %v4218_v25 = vadd.f32 %v4021_v35, %v9301_v19  ;;  %v4023_v48 = vpop.permute.xlu1 %4022  ;;  %6444 = vmatpush3.bf16.msra.mxu1 %v6443_v16 }
 0x395   :  { %v5492_v51 = vmax.f32 %v5490_v30, %v5491_v10  ;;  %v9428_v7 = vsel %vm2331_vm5, %v5370_v43, %v10156_v15  ;;  %v5532_v11 = vsel %vm5342_vm11, %v4993_v20, -inf  ;;  %v5076_v24 = vrot.slane %v5069_v33, %v10140_v39  ;;  %6445 = vmatprep.subr.bf16.mxu1 %v10154_v29 }
 0x396   :  { %v4365_v1 = vadd.f32 %v9258_v32, %v4207_v14  ;;  %v5453_v0 = vrot.slane %v5452_v27, 1  ;;  %v5533_v6 = vrot.slane %v5532_v11, 4  ;;  %v4460_v62 = vmax.f32 %v4364_v36, 0.0 }
 0x397   :  { %v5493_v28 = vrot.slane %v5492_v51, 2  ;;  %v5083_v19 = vrot.slane %v5076_v24, %v10140_v39  ;;  %v4376_v16 = vadd.f32 %v9249_v54, %v4218_v25  ;;  %v4219_v43 = vadd.f32 %v4023_v48, %v9306_v5  ;;  %v3857_v30 = vpop.permute.xlu0 %3856 }
 0x398   :  { %v4461_v53 = vmax.f32 %v4365_v1, 0.0  ;;  %v9439_v42 = vsel %vm2331_vm5, %v5412_v55, %v9183_v37  ;;  %v5534_v31 = vmax.f32 %v5532_v11, %v5533_v6  ;;  %v4136_v2 = vadd.f32 %v3857_v30, %v10157_v38  ;;  %v3859_v23 = vpop.permute.xlu1 %3858  ;;  %v10158_v37 = vld [vmem:[#allocation136_spill] sm:$0xff] }
 0x399   :  { %v5494_v56 = vmax.f32 %v5492_v51, %v5493_v28  ;;  %v5454_v10 = vmax.f32 %v5452_v27, %v5453_v0  ;;  %v5574_v20 = vsel %vm5342_vm11, %v5083_v19, -inf  ;;  %v4377_v36 = vadd.f32 %v9258_v32, %v4219_v43  ;;  %v10159_v51 = vld [vmem:[#allocation38_spill] sm:$0xff]  ;;  %v10160_v0 = vld [vmem:[#allocation20_spill] sm:$0xff] }
 0x39a   :  { %v5159_v33 = vcombine.low %v4460_v62, %v4461_v53  ;;  %v5535_v54 = vrot.slane %v5534_v31, 2  ;;  %v5575_v35 = vrot.slane %v5574_v20, 4  ;;  %v4472_v5 = vmax.f32 %v4376_v16, 0.0  ;;  %v10161_v53 = vld [vmem:[#allocation135_spill] sm:$0xff] }
 0x39b   :  { %v5495_v14 = vrot.slane %v5494_v56, 1  ;;  %v4473_v48 = vmax.f32 %v4377_v36, 0.0  ;;  %v4294_v55 = vadd.f32 %v10158_v37, %v4136_v2  ;;  %v4137_v15 = vadd.f32 %v3859_v23, %v10159_v51  ;;  %v3881_v11 = vpop.permute.xlu0 %3880 }
 0x39c   :  { %v5166_v25 = vrot.slane %v5159_v33, %v10140_v39  ;;  %v5536_v1 = vmax.f32 %v5534_v31, %v5535_v54  ;;  %v5576_v27 = vmax.f32 %v5574_v20, %v5575_v35  ;;  %v4148_v28 = vadd.f32 %v3881_v11, %v10160_v0  ;;  %v3883_v6 = vpop.permute.xlu1 %3882  ;;  %v10162_v20 = vld [vmem:[#allocation16_spill] sm:$0xff] }
 0x39d   :  { %v5496_v24 = vmax.f32 %v5494_v56, %v5495_v14  ;;  %v9450_v32 = vsel %vm2331_vm5, %v5454_v10, %v9213_v63  ;;  %v5249_v19 = vcombine.low %v4472_v5, %v4473_v48  ;;  %v4295_v16 = vadd.f32 %v10161_v53, %v4137_v15 }
 0x39e   :  { %v5173_v62 = vrot.slane %v5166_v25, %v10140_v39  ;;  %v5537_v43 = vrot.slane %v5536_v1, 1  ;;  %v5577_v30 = vrot.slane %v5576_v27, 2  ;;  %v4390_v38 = vmax.f32 %v4294_v55, 0.0 }
 0x39f   :  { %v4306_v2 = vadd.f32 %v10158_v37, %v4148_v28  ;;  %v5256_v31 = vrot.slane %v5249_v19, %v10140_v39  ;;  %v4391_v23 = vmax.f32 %v4295_v16, 0.0  ;;  %v4149_v33 = vadd.f32 %v3883_v6, %v10162_v20  ;;  %v3905_v36 = vpop.permute.xlu0 %3904 }
 0x3a0   :  { %v5616_v56 = vsel %vm5342_vm11, %v5173_v62, -inf  ;;  %v9460_v63 = vsel %vm2331_vm5, %v5496_v24, %v9233_v3  ;;  %v9462_v10 = vmax.f32 %v5536_v1, %v5537_v43  ;;  %v5578_v14 = vmax.f32 %v5576_v27, %v5577_v30  ;;  %v3907_v35 = vpop.permute.xlu1 %3906 }
 0x3a1   :  { %v5617_v54 = vrot.slane %v5616_v56, 4  ;;  %v5263_v5 = vrot.slane %v5256_v31, %v10140_v39  ;;  %v4634_v25 = vcombine.low %v4390_v38, %v4391_v23  ;;  %v4307_v48 = vadd.f32 %v10161_v53, %v4149_v33 }
 0x3a2   :  { %v4160_v55 = vadd.f32 %v3905_v36, %v9205_v59  ;;  %v5579_v51 = vrot.slane %v5578_v14, 1  ;;  %v4402_v11 = vmax.f32 %v4306_v2, 0.0  ;;  %v4161_v0 = vadd.f32 %v3907_v35, %v9199_v12 }
 0x3a3   :  { %v5618_v15 = vmax.f32 %v5616_v56, %v5617_v54  ;;  %v5658_v3 = vsel %vm5342_vm11, %v5263_v5, -inf  ;;  %v4641_v24 = vrot.slane %v4634_v25, %v10140_v39  ;;  %v4403_v1 = vmax.f32 %v4307_v48, 0.0  ;;  %v3929_v28 = vpop.permute.xlu0 %3928 }
 0x3a4   :  { %v4318_v27 = vadd.f32 %v10158_v37, %v4160_v55  ;;  %v5580_v6 = vmax.f32 %v5578_v14, %v5579_v51  ;;  %v5659_v19 = vrot.slane %v5658_v3, 4  ;;  %v4319_v16 = vadd.f32 %v10161_v53, %v4161_v0  ;;  %v3931_v43 = vpop.permute.xlu1 %3930 }
 0x3a5   :  { %v5619_v62 = vrot.slane %v5618_v15, 2  ;;  %v4648_v59 = vrot.slane %v4641_v24, %v10140_v39  ;;  %v4724_v30 = vcombine.low %v4402_v11, %v4403_v1  ;;  %v4172_v12 = vadd.f32 %v3929_v28, %v9217_v47 }
 0x3a6   :  { %v4414_v38 = vmax.f32 %v4318_v27, 0.0  ;;  %v9476_v2 = vsel %vm2331_vm5, %v5580_v6, %v9356_v60  ;;  %v5660_v31 = vmax.f32 %v5658_v3, %v5659_v19  ;;  %v4415_v23 = vmax.f32 %v4319_v16, 0.0 }
 0x3a7   :  { %v5620_v56 = vmax.f32 %v5618_v15, %v5619_v62  ;;  %v5371_v20 = vsel %vm5342_vm11, %v4648_v59, -inf  ;;  %v4731_v33 = vrot.slane %v4724_v30, %v10140_v39  ;;  %v4330_v36 = vadd.f32 %v10158_v37, %v4172_v12  ;;  %v3953_v54 = vpop.permute.xlu0 %3952  ;;  %v10163_v62 = vld [vmem:[#allocation75_spill] sm:$0xff] }
 0x3a8   :  { %v4173_v14 = vadd.f32 %v3931_v43, %v9228_v58  ;;  %v5661_v5 = vrot.slane %v5660_v31, 2  ;;  %v5372_v25 = vrot.slane %v5371_v20, 4  ;;  %v4814_v47 = vcombine.low %v4414_v38, %v4415_v23  ;;  %v3955_v48 = vpop.permute.xlu1 %3954 }
 0x3a9   :  { %v5621_v35 = vrot.slane %v5620_v56, 1  ;;  %v4738_v60 = vrot.slane %v4731_v33, %v10140_v39  ;;  %v4426_v55 = vmax.f32 %v4330_v36, 0.0  ;;  %v4184_v15 = vadd.f32 %v3953_v54, %v9254_v34 }
 0x3aa   :  { %v4331_v51 = vadd.f32 %v10161_v53, %v4173_v14  ;;  %v5662_v0 = vmax.f32 %v5660_v31, %v5661_v5  ;;  %v5373_v3 = vmax.f32 %v5371_v20, %v5372_v25  ;;  %v4821_v24 = vrot.slane %v4814_v47, %v10140_v39  ;;  %v10164_v25 = vld [vmem:[#allocation18_spill] sm:$0xff] }
 0x3ab   :  { %v5622_v11 = vmax.f32 %v5620_v56, %v5621_v35  ;;  %v5413_v58 = vsel %vm5342_vm11, %v4738_v60, -inf  ;;  %v4342_v27 = vadd.f32 %v10158_v37, %v4184_v15  ;;  %v4185_v28 = vadd.f32 %v3955_v48, %v9245_v52  ;;  %v3977_v6 = vpop.permute.xlu0 %3976 }
 0x3ac   :  { %v4427_v1 = vmax.f32 %v4331_v51, 0.0  ;;  %v5663_v16 = vrot.slane %v5662_v0, 1  ;;  %v5374_v43 = vrot.slane %v5373_v3, 2  ;;  %v5414_v34 = vrot.slane %v5413_v58, 4  ;;  %v3979_v59 = vpop.permute.xlu1 %3978 }
 0x3ad   :  { %v9491_v19 = vsel %vm2331_vm5, %v5622_v11, %v10163_v62  ;;  %v4828_v30 = vrot.slane %v4821_v24, %v10140_v39  ;;  %v4438_v12 = vmax.f32 %v4342_v27, 0.0  ;;  %v4343_v56 = vadd.f32 %v10161_v53, %v4185_v28 }
 0x3ae   :  { %v4904_v38 = vcombine.low %v4426_v55, %v4427_v1  ;;  %v5664_v31 = vmax.f32 %v5662_v0, %v5663_v16  ;;  %v5375_v23 = vmax.f32 %v5373_v3, %v5374_v43  ;;  %v5415_v20 = vmax.f32 %v5413_v58, %v5414_v34 }
 0x3af   :  { %v4196_v52 = vadd.f32 %v3977_v6, %v9275_v46  ;;  %v5455_v33 = vsel %vm5342_vm11, %v4828_v30, -inf  ;;  %v4439_v14 = vmax.f32 %v4343_v56, 0.0  ;;  %v4197_v54 = vadd.f32 %v3979_v59, %v9279_v61  ;;  %v4001_v35 = vpop.permute.xlu0 %4000  ;;  %v10165_v30 = vld [vmem:[#allocation84_spill] sm:$0xff] }
 0x3b0   :  { %v4911_v36 = vrot.slane %v4904_v38, %v10140_v39  ;;  %v9502_v5 = vsel %vm2331_vm5, %v9462_v10, %v9261_v49  ;;  %v9506_v47 = vsel %vm2331_vm5, %v5664_v31, %v10164_v25  ;;  %v5416_v48 = vrot.slane %v5415_v20, 2  ;;  %v4003_v46 = vpop.permute.xlu1 %4002 }
 0x3b1   :  { %v5456_v60 = vrot.slane %v5455_v33, 4  ;;  %v4994_v51 = vcombine.low %v4438_v12, %v4439_v14  ;;  %v4354_v15 = vadd.f32 %v10158_v37, %v4196_v52  ;;  %v4355_v61 = vadd.f32 %v10161_v53, %v4197_v54 }
 0x3b2   :  { %v4918_v55 = vrot.slane %v4911_v36, %v10140_v39  ;;  %v5376_v11 = vrot.slane %v5375_v23, 1  ;;  %v5417_v0 = vmax.f32 %v5415_v20, %v5416_v48  ;;  %v4208_v49 = vadd.f32 %v4001_v35, %v9293_v44 }
 0x3b3   :  { %v5457_v3 = vmax.f32 %v5455_v33, %v5456_v60  ;;  %v5001_v24 = vrot.slane %v4994_v51, %v10140_v39  ;;  %v4450_v58 = vmax.f32 %v4354_v15, 0.0  ;;  %v4451_v1 = vmax.f32 %v4355_v61, 0.0  ;;  %v4025_v27 = vpop.permute.xlu0 %4024 }
 0x3b4   :  { %v5497_v10 = vsel %vm5342_vm11, %v4918_v55, -inf  ;;  %v5418_v28 = vrot.slane %v5417_v0, 1  ;;  %v4366_v16 = vadd.f32 %v10158_v37, %v4208_v49  ;;  %v4027_v43 = vpop.permute.xlu1 %4026  ;;  %v4209_v38 = vadd.f32 %v4003_v46, %v10165_v30  ;;  %v10166_v49 = vld [vmem:[#allocation140_spill] sm:$0xff] }
 0x3b5   :  { %v5458_v6 = vrot.slane %v5457_v3, 2  ;;  %v5498_v62 = vrot.slane %v5497_v10, 4  ;;  %v5008_v34 = vrot.slane %v5001_v24, %v10140_v39  ;;  %v5084_v59 = vcombine.low %v4450_v58, %v4451_v1 }
 0x3b6   :  { %v4220_v44 = vadd.f32 %v4025_v27, %v9310_v13  ;;  %v9518_v12 = vmax.f32 %v5375_v23, %v5376_v11  ;;  %v9520_v56 = vmax.f32 %v5417_v0, %v5418_v28  ;;  %v4367_v36 = vadd.f32 %v10161_v53, %v4209_v38 }
 0x3b7   :  { %v5459_v31 = vmax.f32 %v5457_v3, %v5458_v6  ;;  %v5499_v20 = vmax.f32 %v5497_v10, %v5498_v62  ;;  %v5539_v52 = vsel %vm5342_vm11, %v5008_v34, -inf  ;;  %v5091_v33 = vrot.slane %v5084_v59, %v10140_v39  ;;  %v3861_v54 = vpop.permute.xlu0 %3860 }
 0x3b8   :  { %v4378_v14 = vadd.f32 %v10158_v37, %v4220_v44  ;;  %v5540_v48 = vrot.slane %v5539_v52, 4  ;;  %v4221_v13 = vadd.f32 %v4027_v43, %v9314_v4  ;;  %v3863_v23 = vpop.permute.xlu1 %3862  ;;  %v4462_v46 = vmax.f32 %v4366_v16, 0.0  ;;  %v10167_v16 = vld [vmem:[#allocation137_spill] sm:$0xff] }
 0x3b9   :  { %v5460_v35 = vrot.slane %v5459_v31, 1  ;;  %v5500_v25 = vrot.slane %v5499_v20, 2  ;;  %v5098_v60 = vrot.slane %v5091_v33, %v10140_v39  ;;  %v4463_v55 = vmax.f32 %v4367_v36, 0.0 }
 0x3ba   :  { %v4138_v51 = vadd.f32 %v3861_v54, %v9319_v21  ;;  %v5541_v61 = vmax.f32 %v5539_v52, %v5540_v48  ;;  %v4474_v11 = vmax.f32 %v4378_v14, 0.0  ;;  %v4379_v0 = vadd.f32 %v10161_v53, %v4221_v13 }
 0x3bb   :  { %v5501_v15 = vmax.f32 %v5499_v20, %v5500_v25  ;;  %v5581_v37 = vsel %vm5342_vm11, %v5098_v60, -inf  ;;  %v5174_v3 = vcombine.low %v4462_v46, %v4463_v55  ;;  %v4139_v24 = vadd.f32 %v3863_v23, %v9324_v40  ;;  %v3885_v4 = vpop.permute.xlu0 %3884 }
 0x3bc   :  { %v4296_v10 = vadd.f32 %v10166_v49, %v4138_v51  ;;  %v9533_v58 = vmax.f32 %v5459_v31, %v5460_v35  ;;  %v5542_v1 = vrot.slane %v5541_v61, 2  ;;  %v5582_v27 = vrot.slane %v5581_v37, 4  ;;  %v3887_v6 = vpop.permute.xlu1 %3886 }
 0x3bd   :  { %v4475_v28 = vmax.f32 %v4379_v0, 0.0  ;;  %v5502_v21 = vrot.slane %v5501_v15, 1  ;;  %v5181_v62 = vrot.slane %v5174_v3, %v10140_v39  ;;  %v4297_v43 = vadd.f32 %v10167_v16, %v4139_v24 }
 0x3be   :  { %v4150_v53 = vadd.f32 %v3885_v4, %v9328_v18  ;;  %v5543_v34 = vmax.f32 %v5541_v61, %v5542_v1  ;;  %v5583_v59 = vmax.f32 %v5581_v37, %v5582_v27  ;;  %v4392_v38 = vmax.f32 %v4296_v10, 0.0 }
 0x3bf   :  { %v5264_v30 = vcombine.low %v4474_v11, %v4475_v28  ;;  %v5188_v40 = vrot.slane %v5181_v62, %v10140_v39  ;;  %v4393_v44 = vmax.f32 %v4297_v43, 0.0  ;;  %v4151_v20 = vadd.f32 %v3887_v6, %v9333_v8  ;;  %v3909_v52 = vpop.permute.xlu0 %3908 }
 0x3c0   :  { %v4308_v31 = vadd.f32 %v10166_v49, %v4150_v53  ;;  %v5544_v33 = vrot.slane %v5543_v34, 1  ;;  %v5584_v36 = vrot.slane %v5583_v59, 2  ;;  %v4162_v54 = vadd.f32 %v3909_v52, %v9337_v22  ;;  %v3911_v35 = vpop.permute.xlu1 %3910 }
 0x3c1   :  { %v5271_v14 = vrot.slane %v5264_v30, %v10140_v39  ;;  %v9543_v18 = vmax.f32 %v5501_v15, %v5502_v21  ;;  %v5623_v25 = vsel %vm5342_vm11, %v5188_v40, -inf  ;;  %v4649_v48 = vcombine.low %v4392_v38, %v4393_v44 }
 0x3c2   :  { %v4309_v13 = vadd.f32 %v10167_v16, %v4151_v20  ;;  %v5585_v23 = vmax.f32 %v5583_v59, %v5584_v36  ;;  %v5624_v60 = vrot.slane %v5623_v25, 4  ;;  %v4404_v8 = vmax.f32 %v4308_v31, 0.0 }
 0x3c3   :  { %v5278_v46 = vrot.slane %v5271_v14, %v10140_v39  ;;  %v4656_v55 = vrot.slane %v4649_v48, %v10140_v39  ;;  %v4320_v61 = vadd.f32 %v10166_v49, %v4162_v54  ;;  %v4163_v22 = vadd.f32 %v3911_v35, %v9342_v50  ;;  %v3933_v11 = vpop.permute.xlu0 %3932 }
 0x3c4   :  { %v4405_v51 = vmax.f32 %v4309_v13, 0.0  ;;  %v9551_v15 = vmax.f32 %v5543_v34, %v5544_v33  ;;  %v5625_v0 = vmax.f32 %v5623_v25, %v5624_v60  ;;  %v4174_v3 = vadd.f32 %v3933_v11, %v9346_v17  ;;  %v3935_v10 = vpop.permute.xlu1 %3934 }
 0x3c5   :  { %v5665_v37 = vsel %vm5342_vm11, %v5278_v46, -inf  ;;  %v5586_v24 = vrot.slane %v5585_v23, 1  ;;  %v4663_v1 = vrot.slane %v4656_v55, %v10140_v39  ;;  %v4416_v6 = vmax.f32 %v4320_v61, 0.0 }
 0x3c6   :  { %v5666_v4 = vrot.slane %v5665_v37, 4  ;;  %v4739_v27 = vcombine.low %v4404_v8, %v4405_v51  ;;  %v5626_v28 = vrot.slane %v5625_v0, 2  ;;  %v4321_v21 = vadd.f32 %v10167_v16, %v4163_v22 }
 0x3c7   :  { %v4332_v50 = vadd.f32 %v10166_v49, %v4174_v3  ;;  %v5378_v43 = vsel %vm5342_vm11, %v4663_v1, -inf  ;;  %v4175_v34 = vadd.f32 %v3935_v10, %v9350_v26  ;;  %v3957_v17 = vpop.permute.xlu0 %3956  ;;  %v9567_v46 = vmax.f32 %v5585_v23, %v5586_v24  ;;  %v10168_v10 = vld [vmem:[#allocation85_spill] sm:$0xff] }
 0x3c8   :  { %v5667_v62 = vmax.f32 %v5665_v37, %v5666_v4  ;;  %v4746_v53 = vrot.slane %v4739_v27, %v10140_v39  ;;  %v5627_v59 = vmax.f32 %v5625_v0, %v5626_v28  ;;  %v5379_v30 = vrot.slane %v5378_v43, 4  ;;  %v3959_v44 = vpop.permute.xlu1 %3958  ;;  %v10169_v27 = vld [vmem:[#allocation8_spill] sm:$0xff] }
 0x3c9   :  { %v4417_v38 = vmax.f32 %v4321_v21, 0.0  ;;  %v4428_v40 = vmax.f32 %v4332_v50, 0.0  ;;  %v4333_v52 = vadd.f32 %v10167_v16, %v4175_v34  ;;  %v4186_v33 = vadd.f32 %v3957_v17, %v9360_v45 }
 0x3ca   :  { %v5668_v31 = vrot.slane %v5667_v62, 2  ;;  %v4753_v20 = vrot.slane %v4746_v53, %v10140_v39  ;;  %v5628_v36 = vrot.slane %v5627_v59, 1  ;;  %v5380_v14 = vmax.f32 %v5378_v43, %v5379_v30 }
 0x3cb   :  { %v4829_v54 = vcombine.low %v4416_v6, %v4417_v38  ;;  %v4187_v35 = vadd.f32 %v3959_v44, %v9364_v57  ;;  %v4429_v48 = vmax.f32 %v4333_v52, 0.0  ;;  %v4344_v13 = vadd.f32 %v10166_v49, %v4186_v33  ;;  %v3981_v60 = vpop.permute.xlu0 %3980 }
 0x3cc   :  { %v5669_v25 = vmax.f32 %v5667_v62, %v5668_v31  ;;  %v5420_v26 = vsel %vm5342_vm11, %v4753_v20, -inf  ;;  %v5381_v8 = vrot.slane %v5380_v14, 2  ;;  %v3983_v61 = vpop.permute.xlu1 %3982  ;;  %v9570_v45 = vmax.f32 %v5627_v59, %v5628_v36  ;;  %v10170_v31 = vld [vmem:[#allocation44_spill] sm:$0xff] }
 0x3cd   :  { %v5421_v55 = vrot.slane %v5420_v26, 4  ;;  %v4836_v51 = vrot.slane %v4829_v54, %v10140_v39  ;;  %v4919_v11 = vcombine.low %v4428_v40, %v4429_v48  ;;  %v4345_v57 = vadd.f32 %v10167_v16, %v4187_v35 }
 0x3ce   :  { %v5670_v22 = vrot.slane %v5669_v25, 1  ;;  %v5382_v0 = vmax.f32 %v5380_v14, %v5381_v8  ;;  %v4198_v4 = vadd.f32 %v3981_v60, %v10168_v10  ;;  %v4440_v24 = vmax.f32 %v4344_v13, 0.0 }
 0x3cf   :  { %v5422_v37 = vmax.f32 %v5420_v26, %v5421_v55  ;;  %v4843_v3 = vrot.slane %v4836_v51, %v10140_v39  ;;  %v4926_v23 = vrot.slane %v4919_v11, %v10140_v39  ;;  %v4441_v1 = vmax.f32 %v4345_v57, 0.0  ;;  %v4005_v6 = vpop.permute.xlu0 %4004  ;;  %v10171_v55 = vld [vmem:[#allocation46_spill] sm:$0xff] }
 0x3d0   :  { %v4199_v28 = vadd.f32 %v3983_v61, %v10169_v27  ;;  %v9577_v21 = vmax.f32 %v5669_v25, %v5670_v22  ;;  %v4356_v43 = vadd.f32 %v10166_v49, %v4198_v4  ;;  %v4007_v53 = vpop.permute.xlu1 %4006  ;;  %v5383_v38 = vrot.slane %v5382_v0, 1 }
 0x3d1   :  { %v5423_v50 = vrot.slane %v5422_v37, 2  ;;  %v5462_v62 = vsel %vm5342_vm11, %v4843_v3, -inf  ;;  %v4933_v17 = vrot.slane %v4926_v23, %v10140_v39  ;;  %v5009_v59 = vcombine.low %v4440_v24, %v4441_v1 }
 0x3d2   :  { %v5463_v34 = vrot.slane %v5462_v62, 4  ;;  %v4357_v30 = vadd.f32 %v10167_v16, %v4199_v28  ;;  %v4452_v44 = vmax.f32 %v4356_v43, 0.0  ;;  %v4210_v20 = vadd.f32 %v4005_v6, %v10170_v31 }
 0x3d3   :  { %v5424_v40 = vmax.f32 %v5422_v37, %v5423_v50  ;;  %v5504_v33 = vsel %vm5342_vm11, %v4933_v17, -inf  ;;  %v5016_v36 = vrot.slane %v5009_v59, %v10140_v39  ;;  %v4029_v54 = vpop.permute.xlu0 %4028  ;;  %v4211_v48 = vadd.f32 %v4007_v53, %v9388_v9 }
 0x3d4   :  { %v5464_v52 = vmax.f32 %v5462_v62, %v5463_v34  ;;  %v4453_v14 = vmax.f32 %v4357_v30, 0.0  ;;  %v5505_v25 = vrot.slane %v5504_v33, 4  ;;  %v4368_v26 = vadd.f32 %v10166_v49, %v4210_v20  ;;  %v4031_v61 = vpop.permute.xlu1 %4030 }
 0x3d5   :  { %v5425_v35 = vrot.slane %v5424_v40, 1  ;;  %v5023_v60 = vrot.slane %v5016_v36, %v10140_v39  ;;  %v4222_v51 = vadd.f32 %v4029_v54, %v10171_v55  ;;  %v5384_v22 = vmax.f32 %v5382_v0, %v5383_v38 }
 0x3d6   :  { %v5465_v13 = vrot.slane %v5464_v52, 2  ;;  %v5099_v8 = vcombine.low %v4452_v44, %v4453_v14  ;;  %v5506_v57 = vmax.f32 %v5504_v33, %v5505_v25  ;;  %v4369_v37 = vadd.f32 %v10167_v16, %v4211_v48 }
 0x3d7   :  { %v5426_v11 = vmax.f32 %v5424_v40, %v5425_v35  ;;  %v5546_v10 = vsel %vm5342_vm11, %v5023_v60, -inf  ;;  %v4464_v23 = vmax.f32 %v4368_v26, 0.0  ;;  %v4223_v27 = vadd.f32 %v4031_v61, %v9420_v41 }
 0x3d8   :  { %v5466_v3 = vmax.f32 %v5464_v52, %v5465_v13  ;;  %v5106_v4 = vrot.slane %v5099_v8, %v10140_v39  ;;  %v5507_v24 = vrot.slane %v5506_v57, 2  ;;  %v5547_v9 = vrot.slane %v5546_v10, 4 }
 0x3d9   :  { %v4465_v1 = vmax.f32 %v4369_v37, 0.0  ;;  %v4380_v0 = vadd.f32 %v10166_v49, %v4222_v51  ;;  %v5730_v50 = vsel %vm2333_vm6, %v9518_v12, %v9428_v7  ;;  %v4381_v34 = vadd.f32 %v10167_v16, %v4223_v27 }
 0x3da   :  { %v5467_v28 = vrot.slane %v5466_v3, 1  ;;  %v5113_v6 = vrot.slane %v5106_v4, %v10140_v39  ;;  %v5508_v62 = vmax.f32 %v5506_v57, %v5507_v24  ;;  %v5548_v43 = vmax.f32 %v5546_v10, %v5547_v9  ;;  %v10172_v57 = vld [vmem:[#allocation6_spill] sm:$0xff] }
 0x3db   :  { %v5189_v53 = vcombine.low %v4464_v23, %v4465_v1  ;;  %v5731_v30 = vsel %vm2335_vm7, %v5384_v22, %v5730_v50  ;;  %v5735_v41 = vsel %vm2333_vm6, %v9520_v56, %v9439_v42  ;;  %v4476_v7 = vmax.f32 %v4380_v0, 0.0 }
 0x3dc   :  { %v5468_v17 = vmax.f32 %v5466_v3, %v5467_v28  ;;  %v5588_v59 = vsel %vm5342_vm11, %v5113_v6, -inf  ;;  %v5509_v38 = vrot.slane %v5508_v62, 1  ;;  %v5549_v49 = vrot.slane %v5548_v43, 2 }
 0x3dd   :  { %v5589_v40 = vrot.slane %v5588_v59, 4  ;;  %v5196_v44 = vrot.slane %v5189_v53, %v10140_v39  ;;  %v4477_v12 = vmax.f32 %v4381_v34, 0.0  ;;  %v5736_v31 = vsel %vm2335_vm7, %v5426_v11, %v5735_v41 }
 0x3de   :  { %v5740_v16 = vsel %vm2333_vm6, %v9533_v58, %v9450_v32  ;;  %v5510_v20 = vmax.f32 %v5508_v62, %v5509_v38  ;;  %v5550_v52 = vmax.f32 %v5548_v43, %v5549_v49  ;;  %v5745_v56 = vsel %vm2333_vm6, %v9543_v18, %v9460_v63  ;;  %v5931_v49 = vld [vmem:[#allocation2 + $0x60] sm:$0xff] }
 0x3df   :  { %v5590_v33 = vmax.f32 %v5588_v59, %v5589_v40  ;;  %v5203_v36 = vrot.slane %v5196_v44, %v10140_v39  ;;  %v5279_v14 = vcombine.low %v4476_v7, %v4477_v12  ;;  %v5741_v42 = vsel %vm2335_vm7, %v5468_v17, %v5740_v16  ;;  %v5932_v40 = vld [vmem:[#allocation2 + $0x68] sm:$0xff] }
 0x3e0   :  { %v5750_v54 = vsel %vm2333_vm6, %v9551_v15, %v9502_v5  ;;  %v5551_v35 = vrot.slane %v5550_v52, 1  ;;  %v5746_v58 = vsel %vm2335_vm7, %v5510_v20, %v5745_v56  ;;  %v5760_v13 = vsel %vm2333_vm6, %v9570_v45, %v9491_v19  ;;  %v5933_v20 = vld [vmem:[#allocation2 + $0x70] sm:$0xff] }
 0x3e1   :  { %v5591_v25 = vrot.slane %v5590_v33, 2  ;;  %v5630_v32 = vsel %vm5342_vm11, %v5203_v36, -inf  ;;  %v5286_v48 = vrot.slane %v5279_v14, %v10140_v39  ;;  %v5765_v63 = vsel %vm2333_vm6, %v9577_v21, %v9506_v47 }
 0x3e2   :  { %v5631_v26 = vrot.slane %v5630_v32, 4  ;;  %v5552_v18 = vmax.f32 %v5550_v52, %v5551_v35  ;;  %v5775_v5 = vcombine.low %v5731_v30, %v5741_v42  ;;  %v5791_v15 = vcombine.low %v5736_v31, %v5746_v58  ;;  %v5934_v52 = vld [vmem:[#allocation2 + $0x78] sm:$0xff] }
 0x3e3   :  { %v5592_v60 = vmax.f32 %v5590_v33, %v5591_v25  ;;  %v5293_v55 = vrot.slane %v5286_v48, %v10140_v39  ;;  %v5776_v51 = vcombine.high %v5731_v30, %v5741_v42  ;;  %v5792_v61 = vcombine.high %v5736_v31, %v5746_v58  ;;  %v10173_v31 = vld [vmem:[#allocation5_spill] sm:$0xff] }
 0x3e4   :  { %v5632_v8 = vmax.f32 %v5630_v32, %v5631_v26  ;;  %v5751_v11 = vsel %vm2335_vm7, %v5552_v18, %v5750_v54  ;;  %v5783_v37 = vrot.slane %v5775_v5, %v10172_v57  ;;  %v5799_v19 = vrot.slane %v5791_v15, %v10172_v57 }
 0x3e5   :  { %v5593_v22 = vrot.slane %v5592_v60, 1  ;;  %v5672_v3 = vsel %vm5342_vm11, %v5293_v55, -inf  ;;  %v5790_v47 = vrot.slane %v5776_v51, %v10172_v57  ;;  %v5806_v21 = vrot.slane %v5792_v61, %v10172_v57 }
 0x3e6   :  { %v5633_v45 = vrot.slane %v5632_v8, 2  ;;  %v5673_v4 = vrot.slane %v5672_v3, 4  ;;  %v5840_v23 = vcombine.high %v5783_v37, %v5799_v19  ;;  %v5839_v39 = vcombine.low %v5783_v37, %v5799_v19  ;;  %v6016_v37 = vld [vmem:[#allocation2 + $0x90] sm:$0xff] }
 0x3e7   :  { %v5594_v10 = vmax.f32 %v5592_v60, %v5593_v22  ;;  %v5755_v9 = vsel %vm2333_vm6, %v9567_v46, %v9476_v2  ;;  %v5855_v1 = vcombine.low %v5790_v47, %v5806_v21  ;;  %v6551_v43 = vmov 1934713408  }
 0x3e8   :  { %v5634_v24 = vmax.f32 %v5632_v8, %v5633_v45  ;;  %v5674_v27 = vmax.f32 %v5672_v3, %v5673_v4  ;;  %v5842_v53 = vunpack.c.l.s4 %v6551_v43  ;;  %v6446_v2 = vpack.c.bf16 %v5932_v40, %v5931_v49  ;;  %v6018_v4 = vld [vmem:[#allocation2 + $0xa0] sm:$0xff] }
 0x3e9   :  { %v5756_v28 = vsel %vm2335_vm7, %v5594_v10, %v5755_v9  ;;  %v6449_v42 = vpack.c.bf16 %v5934_v52, %v5933_v20  ;;  %v6017_v10 = vld [vmem:[#allocation2 + $0x98] sm:$0xff]  ;;  %v6019_v9 = vld [vmem:[#allocation2 + $0xa8] sm:$0xff]  ;;  %v6030_v49 = vld [vmem:[#allocation2 + $0x100] sm:$0xff] }
 0x3ea   :  { %v5635_v6 = vrot.slane %v5634_v24, 1  ;;  %v5675_v0 = vrot.slane %v5674_v27, 2  ;;  %v5843_v38 = vunpack.c.0.s8 %v5842_v53  ;;  %6447 = vmatpush3.bf16.msra.mxu1 %v6446_v2  ;;  %v6025_v53 = vld [vmem:[#allocation2 + $0xd8] sm:$0xff]  ;;  %v6107_v2 = vld [vmem:[#allocation2 + $0x110] sm:$0xff] }
 0x3eb   :  { %6448 = vmatprep.subr.bf16.mxu1 %v10154_v29  ;;  %v6112_v20 = vld [vmem:[#allocation2 + $0x138] sm:$0xff] }
 0x3ec   :  { %v5636_v50 = vmax.f32 %v5634_v24, %v5635_v6  ;;  %v5676_v62 = vmax.f32 %v5674_v27, %v5675_v0  ;;  %v5846_v16 = vsub.s32 %v5843_v38, %v10173_v31  ;;  %v10174_v24 = vmov 0.0   ;;  %v6022_v6 = vld [vmem:[#allocation2 + $0xc0] sm:$0xff]  ;;  %v6029_v38 = vld [vmem:[#allocation2 + $0xf8] sm:$0xff] }
 0x3ed   :  { %v6473_v40 = vpack.c.bf16 %v6030_v49, %v6029_v38 }
 0x3ee   :  { %v5761_v34 = vsel %vm2335_vm7, %v5636_v50, %v5760_v13  ;;  %v5677_v17 = vrot.slane %v5676_v62, 1  ;;  %6450 = vmatpush3.bf16.msra.mxu1 %v6449_v42  ;;  %v5854_v25 = vrot.slane %v5840_v23, %v5846_v16  ;;  %v5847_v32 = vrot.slane %v5839_v39, %v5846_v16  ;;  %v6023_v50 = vld [vmem:[#allocation2 + $0xc8] sm:$0xff]  ;;  %v6115_v42 = vld [vmem:[#allocation2 + $0x150] sm:$0xff] }
 0x3ef   :  { %v5807_v59 = vcombine.low %v5751_v11, %v5761_v34  ;;  %v5808_v30 = vcombine.high %v5751_v11, %v5761_v34  ;;  %6451 = vmatprep.subr.bf16.mxu1 %v10154_v29  ;;  %v5862_v48 = vrot.slane %v5855_v1, %v5846_v16  ;;  %v6455_v39 = vpack.c.bf16 %v6018_v4, %v6017_v10  ;;  %v6020_v1 = vld [vmem:[#allocation2 + $0xb0] sm:$0xff]  ;;  %v6026_v34 = vld [vmem:[#allocation2 + $0xe0] sm:$0xff] }
 0x3f0   :  { %v5678_v41 = vmax.f32 %v5676_v62, %v5677_v17  ;;  %v6458_v27 = vpack.c.bf16 %v6020_v1, %v6019_v9  ;;  %v6024_v62 = vld [vmem:[#allocation2 + $0xd0] sm:$0xff]  ;;  %v6467_v17 = vpack.c.bf16 %v6026_v34, %v6025_v53 }
 0x3f1   :  { %v5815_v12 = vrot.slane %v5807_v59, %v10172_v57  ;;  %v5822_v36 = vrot.slane %v5808_v30, %v10172_v57  ;;  %v6464_v43 = vpack.c.bf16 %v6024_v62, %v6023_v50  ;;  %v6027_v59 = vld [vmem:[#allocation2 + $0xe8] sm:$0xff]  ;;  %v6028_v30 = vld [vmem:[#allocation2 + $0xf0] sm:$0xff] }
 0x3f2   :  { %v5766_v46 = vsel %vm2335_vm7, %v5678_v41, %v5765_v63  ;;  %v6470_v41 = vpack.c.bf16 %v6028_v30, %v6027_v59 }
 0x3f3   :  { %v5823_v44 = vcombine.low %v5756_v28, %v5766_v46  ;;  %v5824_v7 = vcombine.high %v5756_v28, %v5766_v46  ;;  %v6021_v28 = vld [vmem:[#allocation2 + $0xb8] sm:$0xff] }
 0x3f4   :  { %v6461_v0 = vpack.c.bf16 %v6022_v6, %v6021_v28  ;;  %v6108_v46 = vld [vmem:[#allocation2 + $0x118] sm:$0xff] }
 0x3f5   :  { %v5831_v33 = vrot.slane %v5823_v44, %v10172_v57  ;;  %v5838_v14 = vrot.slane %v5824_v7, %v10172_v57  ;;  %v6015_v57 = vld [vmem:[#allocation2 + $0x88] sm:$0xff]  ;;  %v6109_v44 = vld [vmem:[#allocation2 + $0x120] sm:$0xff]  ;;  %v6476_v7 = vpack.c.bf16 %v6108_v46, %v6107_v2 }
 0x3f6   :  { %v6452_v3 = vpack.c.bf16 %v6016_v37, %v6015_v57  ;;  %v6225_v37 = vld [vmem:[#allocation2 + $0x190] ss:$0 sm:$0xff] }
 0x3f7   :  { %v5864_v56 = vcombine.high %v5815_v12, %v5831_v33  ;;  %v5863_v54 = vcombine.low %v5815_v12, %v5831_v33  ;;  %v5879_v35 = vcombine.low %v5822_v36, %v5838_v14  ;;  %v6110_v12 = vld [vmem:[#allocation2 + $0x128] sm:$0xff]  ;;  %6477 = vmatpush3.bf16.msra.mxu0 %v6476_v7  ;;  %v6113_v33 = vld [vmem:[#allocation2 + $0x140] sm:$0xff] }
 0x3f8   :  { %v6479_v31 = vpack.c.bf16 %v6110_v12, %v6109_v44  ;;  %6478 = vmatprep.subr.bf16.mxu0 %v10154_v29  ;;  %v6114_v36 = vld [vmem:[#allocation2 + $0x148] sm:$0xff] }
 0x3f9   :  { %v5878_v58 = vrot.slane %v5864_v56, %v5846_v16  ;;  %v5871_v26 = vrot.slane %v5863_v54, %v5846_v16  ;;  %v5886_v13 = vrot.slane %v5879_v35, %v5846_v16  ;;  %v6111_v16 = vld [vmem:[#allocation2 + $0x130] sm:$0xff]  ;;  %v6485_v14 = vpack.c.bf16 %v6114_v36, %v6113_v33  ;;  %v6116_v56 = vld [vmem:[#allocation2 + $0x158] sm:$0xff]  ;;  %v6117_v35 = vld [vmem:[#allocation2 + $0x160] sm:$0xff] }
 0x3fa   :  { %v6482_v52 = vpack.c.bf16 %v6112_v20, %v6111_v16  ;;  %v6488_v54 = vpack.c.bf16 %v6116_v56, %v6115_v42 }
 0x3fb   :  { %v5889_v63 = vcombine.low %v5854_v25, %v5878_v58  ;;  %v5888_v18 = vcombine.high %v5847_v32, %v5871_v26  ;;  %v5891_v60 = vcombine.low %v5862_v48, %v5886_v13  ;;  %v5890_v5 = vcombine.high %v5854_v25, %v5878_v58  ;;  %6480 = vmatpush3.bf16.msra.mxu0 %v6479_v31  ;;  %v6118_v25 = vld [vmem:[#allocation2 + $0x168] sm:$0xff]  ;;  %v6119_v58 = vld [vmem:[#allocation2 + $0x170] sm:$0xff] }
 0x3fc   :  { %v5892_v15 = vcombine.high %v5862_v48, %v5886_v13  ;;  %v5887_v8 = vcombine.low %v5847_v32, %v5871_v26  ;;  %6481 = vmatprep.subr.bf16.mxu0 %v10154_v29  ;;  %v6491_v32 = vpack.c.bf16 %v6118_v25, %v6117_v35  ;;  %v6120_v26 = vld [vmem:[#allocation2 + $0x178] sm:$0xff]  ;;  %v6121_v13 = vld [vmem:[#allocation2 + $0x180] sm:$0xff] }
 0x3fd   :  { %5898 = vrot.lane.b32.xlu1 %v5889_v63, %s6552_s25  ;;  %5894 = vrot.lane.b32.xlu0 %v5888_v18, %s6553_s26  ;;  %v6494_v48 = vpack.c.bf16 %v6120_v26, %v6119_v58  ;;  %v6122_v63 = vld [vmem:[#allocation2 + $0x188] sm:$0xff] }
 0x3fe   :  { %v6497_v18 = vpack.c.bf16 %v6122_v63, %v6121_v13 }
 0x3ff   :  { %6483 = vmatpush3.bf16.msra.mxu0 %v6482_v52 }
 0x400   :  { %6484 = vmatprep.subr.bf16.mxu0 %v10154_v29 }
 0x401   :  { %5906 = vrot.lane.b32.xlu1 %v5891_v60, %s6554_s27  ;;  %5902 = vrot.lane.b32.xlu0 %v5890_v5, %s6555_s28  ;;  %v6222_v60 = vld [vmem:[#allocation2 + $0x80] ss:$0 sm:$0xff] }
 0x403   :  { %6486 = vmatpush3.bf16.msra.mxu0 %v6485_v14 }
 0x404   :  { %6487 = vmatprep.subr.bf16.mxu0 %v10154_v29 }
 0x405   :  { %5910 = vrot.lane.b32.xlu0 %v5892_v15, %s6556_s29 }
 0x407   :  { %6489 = vmatpush3.bf16.msra.mxu0 %v6488_v54 }
 0x408   :  { %6490 = vmatprep.subr.bf16.mxu0 %v10154_v29 }
 0x40b   :  { %6492 = vmatpush3.bf16.msra.mxu0 %v6491_v32 }
 0x40c   :  { %6493 = vmatprep.subr.bf16.mxu0 %v10154_v29 }
 0x40f   :  { %6495 = vmatpush3.bf16.msra.mxu0 %v6494_v48 }
 0x410   :  { %6496 = vmatprep.subr.bf16.mxu0 %v10154_v29 }
 0x413   :  { %6498 = vmatpush3.bf16.msra.mxu0 %v6497_v18 }
 0x46f   :  { %v5899_v55 = vpop.permute.xlu1 %5898  ;;  %v5895_v51 = vpop.permute.xlu0 %5894 }
 0x470   :  { %v5914_v61 = vsel %vm5913_vm12, %v5887_v8, %v5895_v51  ;;  %v6224_v51 = vld [vmem:[#allocation2 + $0x108] ss:$0 sm:$0xff] }
 0x471   :  { %v5916_v11 = vsel %vm5915_vm13, %v5914_v61, %v5899_v55 }
 0x473   :  { %v5903_v22 = vpop.permute.xlu0 %5902  ;;  %v5907_v19 = vpop.permute.xlu1 %5906 }
 0x474   :  { %v5918_v45 = vsel %vm5917_vm14, %v5916_v11, %v5903_v22 }
 0x475   :  { %v5920_v21 = vsel %vm5919_vm15, %v5918_v45, %v5907_v19 }
 0x477   :  { %v5911_v47 = vpop.permute.xlu0 %5910 }
 0x478   :  { %v5922_v23 = vsel %vm5921_vm0, %v5920_v21, %v5911_v47 }
 0x479   :  { %6361 = vmatmul.mubr.msk.f32.vlgmr.msra.gmra.mrb[0].mxu1 %vm5940_vm2, %v5922_v23 }
 0x47a   :  { %6453 = vmatpush3.bf16.msra.mxu1 %v6452_v3  ;;  %6395 = vmatprep.mubr.msk.f32.mxu1 %vm6545_vm1, %v10174_v24 }
 0x47b   :  { %6454 = vmatprep.subr.bf16.mxu1 %v10154_v29 }
 0x47e   :  { %6456 = vmatpush3.bf16.msra.mxu1 %v6455_v39 }
 0x47f   :  { %6457 = vmatprep.subr.bf16.mxu1 %v10154_v29 }
 0x482   :  { %6459 = vmatpush3.bf16.msra.mxu1 %v6458_v27 }
 0x483   :  { %6460 = vmatprep.subr.bf16.mxu1 %v10154_v29 }
 0x486   :  { %6462 = vmatpush3.bf16.msra.mxu1 %v6461_v0 }
 0x487   :  { %6463 = vmatprep.subr.bf16.mxu1 %v10154_v29 }
 0x48a   :  { %6465 = vmatpush3.bf16.msra.mxu1 %v6464_v43 }
 0x48b   :  { %6466 = vmatprep.subr.bf16.mxu1 %v10154_v29 }
 0x48e   :  { %6468 = vmatpush3.bf16.msra.mxu1 %v6467_v17 }
 0x48f   :  { %6469 = vmatprep.subr.bf16.mxu1 %v10154_v29 }
 0x492   :  { %6471 = vmatpush3.bf16.msra.mxu1 %v6470_v41 }
 0x493   :  { %6472 = vmatprep.subr.bf16.mxu1 %v10154_v29 }
 0x496   :  { %6474 = vmatpush3.bf16.msra.mxu1 %v6473_v40 }
 0x54c   :  { %v6010_v5 = vpop.f32.mrb[0].mxu1 }
 0x54d   :  { %v6011_v15 = vadd.f32 %v6222_v60, %v6010_v5  ;;  %v6362_v8 = vpop.f32.mrb[1].mxu1 }
 0x54f   :  { %v6014_v55 = vmax.f32 %v6011_v15, 0.0 }
 0x551   :  { %6396 = vmatmul.mubr.f32.vlgmr.msra.gmra.mrb[2].mxu1 %v6014_v55 }
 0x624   :  { %v6102_v61 = vpop.f32.mrb[2].mxu1 }
 0x625   :  { %v6103_v22 = vadd.f32 %v6224_v51, %v6102_v61  ;;  %v6397_v11 = vpop.f32.mrb[3].mxu1 }
 0x627   :  { %v6106_v57 = vmax.f32 %v6103_v22, 0.0 }
 0x629   :  { %6431 = vmatmul.mubr.f32.vlgmr.msra.gmra.mrb[30].mxu0 %v6106_v57 }
 0x6fc   :  { %v6194_v19 = vpop.f32.mrb[30].mxu0 }
 0x6fd   :  { %v6195_v45 = vadd.f32 %v6225_v37, %v6194_v19  ;;  %v6432_v3 = vpop.f32.mrb[31].mxu0 }
 0x6ff   :  { %6198 = vst [vmem:[%s9668_s2] sm:$0xff] %v6195_v45 }
 0x700   :  { %6203 = vsyncpa [#allocation3], 1 }

</bundles_post_ra>
